<compile_context>
chip_gen: v5e
topology: v5e:2x2
jax: 0.10.0
libtpu: 0.0.40
codegen_flags: <defaults>
</compile_context>

<pallas_src>
import functools

import jax
import jax.numpy as jnp
from jax import lax
from jax.experimental import pallas as pl
from jax.experimental.pallas import tpu as pltpu

BN_EPS = 1e-5


# ---------------------------------------------------------------------------
# Fused Bottleneck kernel (one image per grid step)
# ---------------------------------------------------------------------------
def _bottleneck_kernel(*refs, dims, stride, proj):
    h, w = dims
    hw = h * w
    f32, bf16 = jnp.float32, jnp.bfloat16

    it = iter(refs)
    x_ref = next(it)                                   # (1, H*W, Cin) bf16
    m_ref = next(it)                                   # (H*W, 9) f32 tap mask
    s_ref = next(it) if stride > 1 else None           # (Ho*Wo, H*W) bf16
    w1_ref, b1_ref = next(it), next(it)
    w2_ref, b2_ref = next(it), next(it)
    w3_ref, b3_ref = next(it), next(it)
    ws_ref, bs_ref = (next(it), next(it)) if proj else (None, None)
    o_ref = next(it)

    c1 = w1_ref.shape[1]
    x = x_ref[0]                                       # (hw, Cin) bf16

    # ---- conv1 (1x1) + BN + ReLU  (BN scale folded into w1) -----------------
    a1 = jnp.dot(x, w1_ref[...], preferred_element_type=f32) + b1_ref[...]
    a1 = jnp.maximum(a1, 0.0)                          # (hw, C1) f32

    # ---- conv2 (3x3, pad=1) as ONE K=9*C1 matmul ----------------------------
    # im2col columns are shifted copies of a1; the (hw, 9) mask zeroes taps
    # that fall outside the image (replaces explicit zero padding).  Vertical
    # (+/-W) shifts are sublane-aligned (W % 8 == 0); only the two +/-1
    # horizontal shifts need a misaligned placement.
    zrow = jnp.zeros((1, c1), f32)
    zblk = jnp.zeros((w, c1), f32)
    hx = (
        jnp.concatenate([zrow, a1[:hw - 1]], axis=0),  # ox = -1 : a1[p-1]
        a1,                                            # ox =  0
        jnp.concatenate([a1[1:], zrow], axis=0),       # ox = +1 : a1[p+1]
    )
    cols = []
    for dy in range(3):
        for dx in range(3):
            hxv = hx[dx]
            if dy == 0:                                # oy = -1 : hx[p - w]
                win = jnp.concatenate([zblk, hxv[:hw - w]], axis=0)
            elif dy == 2:                              # oy = +1 : hx[p + w]
                win = jnp.concatenate([hxv[w:], zblk], axis=0)
            else:                                      # oy =  0
                win = hxv
            if not (dy == 1 and dx == 1):              # center tap mask == 1
                k = dy * 3 + dx
                win = win * m_ref[:, k:k + 1]
            cols.append(win.astype(bf16))
    im2col = jnp.concatenate(cols, axis=1)             # (hw, 9*C1) bf16
    a2 = jnp.dot(im2col, w2_ref[...], preferred_element_type=f32)
    a2 = jnp.maximum(a2 + b2_ref[...], 0.0).astype(bf16)   # (hw, C1)
    if stride > 1:
        # Strided sub-sampling as an exact one-hot selection matmul (MXU).
        a2 = jnp.dot(s_ref[...], a2, preferred_element_type=f32).astype(bf16)

    # ---- conv3 (1x1) + BN ----------------------------------------------------
    a3 = jnp.dot(a2, w3_ref[...], preferred_element_type=f32) + b3_ref[...]

    # ---- shortcut, add, ReLU -------------------------------------------------
    if proj:
        xs = x
        if stride > 1:
            xs = jnp.dot(s_ref[...], x, preferred_element_type=f32).astype(bf16)
        res = jnp.dot(xs, ws_ref[...], preferred_element_type=f32) + bs_ref[...]
    else:
        res = x.astype(f32)                            # identity residual
    o_ref[0] = jnp.maximum(a3 + res, 0.0).astype(o_ref.dtype)


# ---------------------------------------------------------------------------
# BN folding + weight / constant prep (plain JAX, done once outside the kernel)
# ---------------------------------------------------------------------------
def fold_bn(bn):
    scale = bn["gamma"] / jnp.sqrt(bn["var"] + BN_EPS)
    bias = bn["beta"] - bn["mean"] * scale
    return scale, bias


def _fold_1x1(w, scale):
    # torch (Cout, Cin, 1, 1) -> (Cin, Cout) bf16 with BN scale folded
    return (w[:, :, 0, 0] * scale[:, None]).T.astype(jnp.bfloat16)


def _fold_3x3(w, scale):
    # torch (Cout, Cin, 3, 3) -> (9*Cin, Cout) bf16; row index = (dy*3+dx)*Cin + cin
    cout, cin = w.shape[0], w.shape[1]
    wf = jnp.transpose(w * scale[:, None, None, None], (2, 3, 1, 0))  # (3,3,Cin,Cout)
    return wf.reshape(9 * cin, cout).astype(jnp.bfloat16)


def _conv3x3_tap_mask(h, w):
    # (H*W, 9) f32: 1.0 where tap (dy, dx) stays inside the image, else 0.0
    iy = jnp.arange(h)[:, None]
    ix = jnp.arange(w)[None, :]
    cols = []
    for dy in range(3):
        for dx in range(3):
            oy, ox = dy - 1, dx - 1
            m = ((iy + oy >= 0) & (iy + oy < h) &
                 (ix + ox >= 0) & (ix + ox < w))
            cols.append(m.reshape(h * w))
    return jnp.stack(cols, axis=1).astype(jnp.float32)


def _stride_selector(h, w, s):
    # One-hot (Ho*Wo, H*W) bf16 selection matrix: row (iy,ix) picks (iy*s, ix*s)
    ho, wo = h // s, w // s
    src = (jnp.arange(ho)[:, None] * s * w
           + jnp.arange(wo)[None, :] * s).reshape(ho * wo)
    return jax.nn.one_hot(src, h * w, dtype=jnp.bfloat16)


# ---------------------------------------------------------------------------
# Wrappers
# ---------------------------------------------------------------------------
def bottleneck_forward_nhwc(params, x_nhwc, *, stride, out_dtype=jnp.float32):
    n, h, w, cin = x_nhwc.shape
    c1 = params["w1"].shape[0]
    c4 = params["w3"].shape[0]
    proj = "ws" in params
    assert h % stride == 0 and w % stride == 0
    assert w % 8 == 0, "W must be a multiple of 8 (sublane-aligned row shifts)"
    if not proj:
        assert stride == 1 and cin == c4
    ho, wo = h // stride, w // stride
    hw = h * w

    # bf16 activations on the 128-lane channel axis, spatial flattened
    x2d = x_nhwc.astype(jnp.bfloat16).reshape(n, hw, cin)

    s1, b1 = fold_bn(params["bn1"])
    s2, b2 = fold_bn(params["bn2"])
    s3, b3 = fold_bn(params["bn3"])
    w1m = _fold_1x1(params["w1"], s1)
    w2m = _fold_3x3(params["w2"], s2)
    w3m = _fold_1x1(params["w3"], s3)

    args = [x2d, _conv3x3_tap_mask(h, w)]
    in_specs = [pl.BlockSpec((1, hw, cin), lambda i: (i, 0, 0)),
                pl.BlockSpec((hw, 9), lambda i: (0, 0))]
    if stride > 1:
        args.append(_stride_selector(h, w, stride))
        in_specs.append(pl.BlockSpec((ho * wo, hw), lambda i: (0, 0)))
    args += [w1m, b1.reshape(1, c1),
             w2m, b2.reshape(1, c1),
             w3m, b3.reshape(1, c4)]
    in_specs += [pl.BlockSpec((cin, c1), lambda i: (0, 0)),
                 pl.BlockSpec((1, c1), lambda i: (0, 0)),
                 pl.BlockSpec((9 * c1, c1), lambda i: (0, 0)),
                 pl.BlockSpec((1, c1), lambda i: (0, 0)),
                 pl.BlockSpec((c1, c4), lambda i: (0, 0)),
                 pl.BlockSpec((1, c4), lambda i: (0, 0))]
    if proj:
        ss, bs = fold_bn(params["bns"])
        args += [_fold_1x1(params["ws"], ss), bs.reshape(1, c4)]
        in_specs += [pl.BlockSpec((cin, c4), lambda i: (0, 0)),
                     pl.BlockSpec((1, c4), lambda i: (0, 0))]

    kernel = functools.partial(_bottleneck_kernel,
                               dims=(h, w), stride=stride, proj=proj)
    out = pl.pallas_call(
        kernel,
        out_shape=jax.ShapeDtypeStruct((n, ho * wo, c4), out_dtype),
        grid=(n,),
        in_specs=in_specs,
        out_specs=pl.BlockSpec((1, ho * wo, c4), lambda i: (i, 0, 0)),
        compiler_params=pltpu.CompilerParams(
            dimension_semantics=("parallel",)),
    )(*args)
    return out.reshape(n, ho, wo, c4)


def bottleneck_forward(params, x_nchw, *, stride, out_dtype=jnp.float32):
    # NCHW adapter matching the torch module.  In a full ResNet keep NHWC
    # between blocks and call bottleneck_forward_nhwc directly: the two
    # transposes below are full HBM round-trips done by XLA outside the kernel.
    x = jnp.transpose(x_nchw, (0, 2, 3, 1))
    y = bottleneck_forward_nhwc(params, x, stride=stride, out_dtype=out_dtype)
    return jnp.transpose(y, (0, 3, 1, 2))


# ---------------------------------------------------------------------------
# Pure-JAX reference (f32) for a correctness sanity check
# ---------------------------------------------------------------------------
def _conv_ref(x, w, stride=1, padding=0):
    return lax.conv_general_dilated(
        x, w, (stride, stride), [(padding, padding), (padding, padding)],
        dimension_numbers=("NCHW", "OIHW", "NCHW"),
        precision=lax.Precision.HIGHEST)


def _bn_ref(x, bn):
    s, b = fold_bn(bn)
    return x * s[None, :, None, None] + b[None, :, None, None]


def bottleneck_ref(params, x, *, stride):
    out = jax.nn.relu(_bn_ref(_conv_ref(x, params["w1"]), params["bn1"]))
    out = jax.nn.relu(_bn_ref(_conv_ref(out, params["w2"], stride, 1),
                              params["bn2"]))
    out = _bn_ref(_conv_ref(out, params["w3"]), params["bn3"])
    if "ws" in params:
        sc = _bn_ref(_conv_ref(x, params["ws"], stride), params["bns"])
    else:
        sc = x
    return jax.nn.relu(out + sc)


# ---------------------------------------------------------------------------
# Deterministic synthetic parameters
# ---------------------------------------------------------------------------
def init_conv(key, cout, cin, k):
    fan_in = cin * k * k
    return jax.random.normal(key, (cout, cin, k, k), jnp.float32) / jnp.sqrt(fan_in)


def init_bn(key, c):
    k1, k2, k3, k4 = jax.random.split(key, 4)
    return dict(
        gamma=1.0 + 0.1 * jax.random.normal(k1, (c,), jnp.float32),
        beta=0.1 * jax.random.normal(k2, (c,), jnp.float32),
        mean=0.1 * jax.random.normal(k3, (c,), jnp.float32),
        var=1.0 + 0.5 * jax.random.uniform(k4, (c,), jnp.float32),
    )


def init_bottleneck(key, in_channel, out_channel, stride):
    c4 = out_channel * 4
    keys = jax.random.split(key, 8)
    p = {
        "w1": init_conv(keys[0], out_channel, in_channel, 1),
        "bn1": init_bn(keys[1], out_channel),
        "w2": init_conv(keys[2], out_channel, out_channel, 3),
        "bn2": init_bn(keys[3], out_channel),
        "w3": init_conv(keys[4], c4, out_channel, 1),
        "bn3": init_bn(keys[5], c4),
    }
    if stride != 1 or in_channel != c4:
        p["ws"] = init_conv(keys[6], c4, in_channel, 1)
        p["bns"] = init_bn(keys[7], c4)
    return p


def _check(out, ref, name):
    err = float(jnp.max(jnp.abs(out - ref)))
    scale = float(jnp.max(jnp.abs(ref)))
    assert err <= 3e-2 * scale + 3e-2, (name, err, scale)


# ---------------------------------------------------------------------------
if __name__ == "__main__":
    key = jax.random.PRNGKey(0)
    k1, k2, k3, k4 = jax.random.split(key, 4)

    # Config A: identity shortcut (in_channel == out_channel*4, stride=1)
    pa = init_bottleneck(k1, 256, 64, 1)
    xa = jax.random.normal(k2, (2, 256, 16, 16), jnp.float32)
    fa = jax.jit(lambda x: bottleneck_forward(pa, x, stride=1))
    oa = fa(xa)
    jax.block_until_ready(oa)
    assert oa.shape == (2, 256, 16, 16) and oa.dtype == jnp.float32
    _check(oa, bottleneck_ref(pa, xa, stride=1), "stride1_identity")

    # Config B: projection shortcut with stride=2
    pb = init_bottleneck(k3, 128, 64, 2)
    xb = jax.random.normal(k4, (2, 128, 16, 16), jnp.float32)
    fb = jax.jit(lambda x: bottleneck_forward(pb, x, stride=2))
    ob = fb(xb)
    jax.block_until_ready(ob)
    assert ob.shape == (2, 256, 8, 8) and ob.dtype == jnp.float32
    _check(ob, bottleneck_ref(pb, xb, stride=2), "stride2_projection")

    print("KERNEL_OK")
</pallas_src>

<mosaic_0001>
module attributes {stable_mosaic.version = 11 : i64} {
  func.func @_bottleneck_kernel(%arg0: i32, %arg1: memref<1x256x256xbf16, #tpu.memory_space<vmem>>, %arg2: memref<256x9xf32, #tpu.memory_space<vmem>>, %arg3: memref<256x64xbf16, #tpu.memory_space<vmem>>, %arg4: memref<1x64xf32, #tpu.memory_space<vmem>>, %arg5: memref<576x64xbf16, #tpu.memory_space<vmem>>, %arg6: memref<1x64xf32, #tpu.memory_space<vmem>>, %arg7: memref<64x256xbf16, #tpu.memory_space<vmem>>, %arg8: memref<1x256xf32, #tpu.memory_space<vmem>>, %arg9: memref<1x256x256xf32, #tpu.memory_space<vmem>>) attributes {dimension_semantics = [#tpu.dimension_semantics<parallel>], iteration_bounds = array<i64: 2>, scalar_prefetch = 0 : i64, scratch_operands = 0 : i64, tpu.core_type = #tpu.core_type<tc>, window_params = [{transform_indices = @transform_0, window_bounds = array<i64: 1, 256, 256>}, {pipeline_mode = #tpu.pipeline_mode<synchronous>, transform_indices = @transform_1, window_bounds = array<i64: 256, 9>}, {pipeline_mode = #tpu.pipeline_mode<synchronous>, transform_indices = @transform_2, window_bounds = array<i64: 256, 64>}, {pipeline_mode = #tpu.pipeline_mode<synchronous>, transform_indices = @transform_3, window_bounds = array<i64: 1, 64>}, {pipeline_mode = #tpu.pipeline_mode<synchronous>, transform_indices = @transform_4, window_bounds = array<i64: 576, 64>}, {pipeline_mode = #tpu.pipeline_mode<synchronous>, transform_indices = @transform_5, window_bounds = array<i64: 1, 64>}, {pipeline_mode = #tpu.pipeline_mode<synchronous>, transform_indices = @transform_6, window_bounds = array<i64: 64, 256>}, {pipeline_mode = #tpu.pipeline_mode<synchronous>, transform_indices = @transform_7, window_bounds = array<i64: 1, 256>}, {transform_indices = @transform_8, window_bounds = array<i64: 1, 256, 256>}]} {
    %c0 = arith.constant 0 : index
    %c0_0 = arith.constant 0 : index
    %c0_1 = arith.constant 0 : index
    %0 = vector.load %arg1[%c0, %c0_0, %c0_1] : memref<1x256x256xbf16, #tpu.memory_space<vmem>>, vector<1x256x256xbf16>
    %1 = vector.shape_cast %0 : vector<1x256x256xbf16> to vector<256x256xbf16>
    %c0_2 = arith.constant 0 : index
    %c0_3 = arith.constant 0 : index
    %2 = vector.load %arg3[%c0_2, %c0_3] : memref<256x64xbf16, #tpu.memory_space<vmem>>, vector<256x64xbf16>
    %cst = arith.constant dense<0.000000e+00> : vector<256x64xf32>
    %3 = tpu.matmul %1, %2, %cst {dimension_numbers = #tpu.dot_dimension_numbers<[1], [0], [0], [1], [0, 0, 1, 1], [], []>} : vector<256x256xbf16>, vector<256x64xbf16>, vector<256x64xf32> -> vector<256x64xf32>
    %c0_4 = arith.constant 0 : index
    %c0_5 = arith.constant 0 : index
    %4 = vector.load %arg4[%c0_4, %c0_5] : memref<1x64xf32, #tpu.memory_space<vmem>>, vector<1x64xf32>
    %5 = vector.broadcast %4 : vector<1x64xf32> to vector<256x64xf32>
    %6 = arith.addf %3, %5 : vector<256x64xf32>
    %cst_6 = arith.constant 0.000000e+00 : f32
    %7 = vector.broadcast %cst_6 : f32 to vector<256x64xf32>
    %8 = arith.maximumf %6, %7 : vector<256x64xf32>
    %cst_7 = arith.constant 0.000000e+00 : f32
    %9 = vector.broadcast %cst_7 : f32 to vector<1x64xf32>
    %cst_8 = arith.constant 0.000000e+00 : f32
    %10 = vector.broadcast %cst_8 : f32 to vector<16x64xf32>
    %11 = vector.extract_strided_slice %8 {offsets = [0, 0], sizes = [255, 64], strides = [1, 1]} : vector<256x64xf32> to vector<255x64xf32>
    %12 = tpu.concatenate %9, %11 in 0 : vector<1x64xf32>, vector<255x64xf32> -> vector<256x64xf32>
    %13 = vector.extract_strided_slice %8 {offsets = [1, 0], sizes = [255, 64], strides = [1, 1]} : vector<256x64xf32> to vector<255x64xf32>
    %14 = tpu.concatenate %13, %9 in 0 : vector<255x64xf32>, vector<1x64xf32> -> vector<256x64xf32>
    %15 = vector.extract_strided_slice %12 {offsets = [0, 0], sizes = [240, 64], strides = [1, 1]} : vector<256x64xf32> to vector<240x64xf32>
    %16 = tpu.concatenate %10, %15 in 0 : vector<16x64xf32>, vector<240x64xf32> -> vector<256x64xf32>
    %c0_9 = arith.constant 0 : index
    %c0_10 = arith.constant 0 : index
    %17 = vector.load %arg2[%c0_9, %c0_10] : memref<256x9xf32, #tpu.memory_space<vmem>>, vector<256x1xf32>
    %18 = vector.broadcast %17 : vector<256x1xf32> to vector<256x64xf32>
    %19 = arith.mulf %16, %18 : vector<256x64xf32>
    %20 = arith.truncf %19 : vector<256x64xf32> to vector<256x64xbf16>
    %21 = vector.extract_strided_slice %8 {offsets = [0, 0], sizes = [240, 64], strides = [1, 1]} : vector<256x64xf32> to vector<240x64xf32>
    %22 = tpu.concatenate %10, %21 in 0 : vector<16x64xf32>, vector<240x64xf32> -> vector<256x64xf32>
    %c0_11 = arith.constant 0 : index
    %c1 = arith.constant 1 : index
    %23 = vector.load %arg2[%c0_11, %c1] : memref<256x9xf32, #tpu.memory_space<vmem>>, vector<256x1xf32>
    %24 = vector.broadcast %23 : vector<256x1xf32> to vector<256x64xf32>
    %25 = arith.mulf %22, %24 : vector<256x64xf32>
    %26 = arith.truncf %25 : vector<256x64xf32> to vector<256x64xbf16>
    %27 = vector.extract_strided_slice %14 {offsets = [0, 0], sizes = [240, 64], strides = [1, 1]} : vector<256x64xf32> to vector<240x64xf32>
    %28 = tpu.concatenate %10, %27 in 0 : vector<16x64xf32>, vector<240x64xf32> -> vector<256x64xf32>
    %c0_12 = arith.constant 0 : index
    %c2 = arith.constant 2 : index
    %29 = vector.load %arg2[%c0_12, %c2] : memref<256x9xf32, #tpu.memory_space<vmem>>, vector<256x1xf32>
    %30 = vector.broadcast %29 : vector<256x1xf32> to vector<256x64xf32>
    %31 = arith.mulf %28, %30 : vector<256x64xf32>
    %32 = arith.truncf %31 : vector<256x64xf32> to vector<256x64xbf16>
    %c0_13 = arith.constant 0 : index
    %c3 = arith.constant 3 : index
    %33 = vector.load %arg2[%c0_13, %c3] : memref<256x9xf32, #tpu.memory_space<vmem>>, vector<256x1xf32>
    %34 = vector.broadcast %33 : vector<256x1xf32> to vector<256x64xf32>
    %35 = arith.mulf %12, %34 : vector<256x64xf32>
    %36 = arith.truncf %35 : vector<256x64xf32> to vector<256x64xbf16>
    %37 = arith.truncf %8 : vector<256x64xf32> to vector<256x64xbf16>
    %c0_14 = arith.constant 0 : index
    %c5 = arith.constant 5 : index
    %38 = vector.load %arg2[%c0_14, %c5] : memref<256x9xf32, #tpu.memory_space<vmem>>, vector<256x1xf32>
    %39 = vector.broadcast %38 : vector<256x1xf32> to vector<256x64xf32>
    %40 = arith.mulf %14, %39 : vector<256x64xf32>
    %41 = arith.truncf %40 : vector<256x64xf32> to vector<256x64xbf16>
    %42 = vector.extract_strided_slice %12 {offsets = [16, 0], sizes = [240, 64], strides = [1, 1]} : vector<256x64xf32> to vector<240x64xf32>
    %43 = tpu.concatenate %42, %10 in 0 : vector<240x64xf32>, vector<16x64xf32> -> vector<256x64xf32>
    %c0_15 = arith.constant 0 : index
    %c6 = arith.constant 6 : index
    %44 = vector.load %arg2[%c0_15, %c6] : memref<256x9xf32, #tpu.memory_space<vmem>>, vector<256x1xf32>
    %45 = vector.broadcast %44 : vector<256x1xf32> to vector<256x64xf32>
    %46 = arith.mulf %43, %45 : vector<256x64xf32>
    %47 = arith.truncf %46 : vector<256x64xf32> to vector<256x64xbf16>
    %48 = vector.extract_strided_slice %8 {offsets = [16, 0], sizes = [240, 64], strides = [1, 1]} : vector<256x64xf32> to vector<240x64xf32>
    %49 = tpu.concatenate %48, %10 in 0 : vector<240x64xf32>, vector<16x64xf32> -> vector<256x64xf32>
    %c0_16 = arith.constant 0 : index
    %c7 = arith.constant 7 : index
    %50 = vector.load %arg2[%c0_16, %c7] : memref<256x9xf32, #tpu.memory_space<vmem>>, vector<256x1xf32>
    %51 = vector.broadcast %50 : vector<256x1xf32> to vector<256x64xf32>
    %52 = arith.mulf %49, %51 : vector<256x64xf32>
    %53 = arith.truncf %52 : vector<256x64xf32> to vector<256x64xbf16>
    %54 = vector.extract_strided_slice %14 {offsets = [16, 0], sizes = [240, 64], strides = [1, 1]} : vector<256x64xf32> to vector<240x64xf32>
    %55 = tpu.concatenate %54, %10 in 0 : vector<240x64xf32>, vector<16x64xf32> -> vector<256x64xf32>
    %c0_17 = arith.constant 0 : index
    %c8 = arith.constant 8 : index
    %56 = vector.load %arg2[%c0_17, %c8] : memref<256x9xf32, #tpu.memory_space<vmem>>, vector<256x1xf32>
    %57 = vector.broadcast %56 : vector<256x1xf32> to vector<256x64xf32>
    %58 = arith.mulf %55, %57 : vector<256x64xf32>
    %59 = arith.truncf %58 : vector<256x64xf32> to vector<256x64xbf16>
    %60 = tpu.concatenate %20, %26, %32, %36, %37, %41, %47, %53, %59 in 1 : vector<256x64xbf16>, vector<256x64xbf16>, vector<256x64xbf16>, vector<256x64xbf16>, vector<256x64xbf16>, vector<256x64xbf16>, vector<256x64xbf16>, vector<256x64xbf16>, vector<256x64xbf16> -> vector<256x576xbf16>
    %c0_18 = arith.constant 0 : index
    %c0_19 = arith.constant 0 : index
    %61 = vector.load %arg5[%c0_18, %c0_19] : memref<576x64xbf16, #tpu.memory_space<vmem>>, vector<576x64xbf16>
    %cst_20 = arith.constant dense<0.000000e+00> : vector<256x64xf32>
    %62 = tpu.matmul %60, %61, %cst_20 {dimension_numbers = #tpu.dot_dimension_numbers<[1], [0], [0], [1], [0, 0, 1, 1], [], []>} : vector<256x576xbf16>, vector<576x64xbf16>, vector<256x64xf32> -> vector<256x64xf32>
    %c0_21 = arith.constant 0 : index
    %c0_22 = arith.constant 0 : index
    %63 = vector.load %arg6[%c0_21, %c0_22] : memref<1x64xf32, #tpu.memory_space<vmem>>, vector<1x64xf32>
    %64 = vector.broadcast %63 : vector<1x64xf32> to vector<256x64xf32>
    %65 = arith.addf %62, %64 : vector<256x64xf32>
    %cst_23 = arith.constant 0.000000e+00 : f32
    %66 = vector.broadcast %cst_23 : f32 to vector<256x64xf32>
    %67 = arith.maximumf %65, %66 : vector<256x64xf32>
    %68 = arith.truncf %67 : vector<256x64xf32> to vector<256x64xbf16>
    %c0_24 = arith.constant 0 : index
    %c0_25 = arith.constant 0 : index
    %69 = vector.load %arg7[%c0_24, %c0_25] : memref<64x256xbf16, #tpu.memory_space<vmem>>, vector<64x256xbf16>
    %cst_26 = arith.constant dense<0.000000e+00> : vector<256x256xf32>
    %70 = tpu.matmul %68, %69, %cst_26 {dimension_numbers = #tpu.dot_dimension_numbers<[1], [0], [0], [1], [0, 0, 1, 1], [], []>} : vector<256x64xbf16>, vector<64x256xbf16>, vector<256x256xf32> -> vector<256x256xf32>
    %c0_27 = arith.constant 0 : index
    %c0_28 = arith.constant 0 : index
    %71 = vector.load %arg8[%c0_27, %c0_28] : memref<1x256xf32, #tpu.memory_space<vmem>>, vector<1x256xf32>
    %72 = vector.broadcast %71 : vector<1x256xf32> to vector<256x256xf32>
    %73 = arith.addf %70, %72 : vector<256x256xf32>
    %74 = arith.extf %1 : vector<256x256xbf16> to vector<256x256xf32>
    %75 = arith.addf %73, %74 : vector<256x256xf32>
    %cst_29 = arith.constant 0.000000e+00 : f32
    %76 = vector.broadcast %cst_29 : f32 to vector<256x256xf32>
    %77 = arith.maximumf %75, %76 : vector<256x256xf32>
    %c0_30 = arith.constant 0 : index
    %c0_31 = arith.constant 0 : index
    %c0_32 = arith.constant 0 : index
    %78 = vector.load %arg9[%c0_30, %c0_31, %c0_32] : memref<1x256x256xf32, #tpu.memory_space<vmem>>, vector<1x256x256xf32>
    %79 = vector.shape_cast %78 : vector<1x256x256xf32> to vector<256x256xf32>
    %80 = vector.shape_cast %77 : vector<256x256xf32> to vector<1x256x256xf32>
    tpu.vector_store %arg9[%c0_30, %c0_31, %c0_32], %80 {strides = array<i32>} : memref<1x256x256xf32, #tpu.memory_space<vmem>>, vector<1x256x256xf32>,
    return
  }
  func.func @transform_0(%arg0: i32) -> (i32, i32, i32) {
    %c0_i32 = arith.constant 0 : i32
    %c0_i32_0 = arith.constant 0 : i32
    %c0_i32_1 = arith.constant 0 : i32
    return %arg0, %c0_i32, %c0_i32_0 : i32, i32, i32
  }
  func.func @transform_1(%arg0: i32) -> (i32, i32) {
    %c0_i32 = arith.constant 0 : i32
    %c0_i32_0 = arith.constant 0 : i32
    %c0_i32_1 = arith.constant 0 : i32
    return %c0_i32, %c0_i32_0 : i32, i32
  }
  func.func @transform_2(%arg0: i32) -> (i32, i32) {
    %c0_i32 = arith.constant 0 : i32
    %c0_i32_0 = arith.constant 0 : i32
    %c0_i32_1 = arith.constant 0 : i32
    return %c0_i32, %c0_i32_0 : i32, i32
  }
  func.func @transform_3(%arg0: i32) -> (i32, i32) {
    %c0_i32 = arith.constant 0 : i32
    %c0_i32_0 = arith.constant 0 : i32
    %c0_i32_1 = arith.constant 0 : i32
    return %c0_i32, %c0_i32_0 : i32, i32
  }
  func.func @transform_4(%arg0: i32) -> (i32, i32) {
    %c0_i32 = arith.constant 0 : i32
    %c0_i32_0 = arith.constant 0 : i32
    %c0_i32_1 = arith.constant 0 : i32
    return %c0_i32, %c0_i32_0 : i32, i32
  }
  func.func @transform_5(%arg0: i32) -> (i32, i32) {
    %c0_i32 = arith.constant 0 : i32
    %c0_i32_0 = arith.constant 0 : i32
    %c0_i32_1 = arith.constant 0 : i32
    return %c0_i32, %c0_i32_0 : i32, i32
  }
  func.func @transform_6(%arg0: i32) -> (i32, i32) {
    %c0_i32 = arith.constant 0 : i32
    %c0_i32_0 = arith.constant 0 : i32
    %c0_i32_1 = arith.constant 0 : i32
    return %c0_i32, %c0_i32_0 : i32, i32
  }
  func.func @transform_7(%arg0: i32) -> (i32, i32) {
    %c0_i32 = arith.constant 0 : i32
    %c0_i32_0 = arith.constant 0 : i32
    %c0_i32_1 = arith.constant 0 : i32
    return %c0_i32, %c0_i32_0 : i32, i32
  }
  func.func @transform_8(%arg0: i32) -> (i32, i32, i32) {
    %c0_i32 = arith.constant 0 : i32
    %c0_i32_0 = arith.constant 0 : i32
    %c0_i32_1 = arith.constant 0 : i32
    return %arg0, %c0_i32, %c0_i32_0 : i32, i32, i32
  }
}

</mosaic_0001>

<bundles_post_ra>
// kernel: _lambda_.1
= control target key start
LH: loop header
LB: loop body
LE: loop exit
PB: predicated region body
PF: predicated region fallthrough
CT: control target
= control target key end

     0   :  { %13 = vsyncpa [#allocation3], 0  ;;  %s9323_s0 = inlined_call_operand.vmem [shape: bf16[2,256,256], index: 0, kind: input, shape index: {}]   ;;  %s9324_s1 = inlined_call_operand.vmem [shape: f32[256,9], index: 1, kind: input, shape index: {}]   ;;  %s9325_s2 = inlined_call_operand.vmem [shape: bf16[256,64], index: 2, kind: input, shape index: {}]   ;;  %s9326_s3 = inlined_call_operand.vmem [shape: f32[1,64], index: 3, kind: input, shape index: {}]   ;;  %s9327_s4 = inlined_call_operand.vmem [shape: bf16[576,64], index: 4, kind: input, shape index: {}]   ;;  %s9328_s5 = inlined_call_operand.vmem [shape: f32[1,64], index: 5, kind: input, shape index: {}]   ;;  %s9329_s6 = inlined_call_operand.vmem [shape: bf16[64,256], index: 6, kind: input, shape index: {}]   ;;  %s9330_s7 = inlined_call_operand.vmem [shape: f32[1,256], index: 7, kind: input, shape index: {}]   ;;  %s9331_s8 = inlined_call_operand.hbm [shape: f32[2,256,256], index: 8, kind: output, shape index: {}]  }
   0x1   :  { %15 = vsyncpa [#allocation3 + $0x1], 0  ;;  %s6103_s27 = smov 0   ;;  %s6105_s28 = smov 0  }
   0x2   :  { %s6107_s29 = smov 0   ;;  %s6109_s30 = smov 0  }
   0x3 LB: > { %s6124_s9 = sadd.s32 4294967295, %s6045_s30   ;;  %s5249_s10 = sadd.s32 4294967294, %s6045_s30   ;;  %s6045_s30 = sphi %s6109_s30, %s10075_s30   ;;  %s6041_s29 = sphi %s6107_s29, %s10074_s29   ;;  %s6037_s28 = sphi %s6105_s28, %s10073_s28   ;;  %s6033_s27 = sphi %s6103_s27, %s10072_s27  }
   0x4   : > { %s6128_s11 = sadd.s32 1, %s6045_s30   ;;  %s201_s12 = sadd.s32 1, %s6041_s29 }
   0x5   : > { %s198_s13 = ssub.s32 %s6045_s30, %s6128_s11  ;;  %p211_p0 = scmp.ne.s32.totalorder %s6041_s29, %s6037_s28 }
   0x6   : > { %p199_p1 = scmp.eq.s32.totalorder %s198_s13, 0  ;;  %p212_p2 = scmp.eq.s32.totalorder %s6124_s9, 1 }
   0x7   : > { %p217_p3 = scmp.ne.s32.totalorder %s6037_s28, %s6033_s27  ;;  %p218_p4 = scmp.eq.s32.totalorder %s5249_s10, 1 }
   0x8   : > { %s6139_s14 = scalar_select %p199_p1, %s6041_s29, %s201_s12  }
   0x9   : > { %p6141_p5 = por %p212_p2, %p211_p0  ;;  %p6145_p6 = por %p218_p4, %p217_p3 }
   0xa   : > { %p5252_p7 = scmp.ge.s32.totalorder %s6045_s30, 1  ;;  %p265_p8 = scmp.lt.s32.totalorder %s6045_s30, 3 }
   0xc   : > { %p266_p9 = pnand %p5252_p7, %p265_p8 }
   0xe   : > { %269 = sbr.rel (%p266_p9) target bundleno = 1684 (0x694), region = 52 }
  0x13   : > { %v6154_v0 = vld [vmem:[%s9324_s1 + $0x20] sm:$0xff]  ;;  %v6159_v1 = vld [vmem:[%s9324_s1 + $0x10] sm:$0xff]  ;;  %v6047_v3 = vmov 0   ;;  %v5717_v4 = vld [vmem:[%s9325_s2 + $0x38] sm:$0xff]  ;;  %p299_p10 = scmp.lt.s32.totalorder %s6124_s9, 1  ;;  %s6052_s21 = smov 64  }
  0x14   : > { %v6164_v2 = vld [vmem:[%s9324_s1] sm:$0xff]  ;;  %5847 = vset.pattern.permute.xlu2 %v6047_v3  ;;  %5846 = vset.pattern.permute.xlu1 %v6047_v3  ;;  %v5716_v5 = vld [vmem:[%s9325_s2 + $0x30] sm:$0xff]  ;;  %v6178_v6 = vld [vmem:[%s9324_s1 + $0x28] sm:$0xff]  ;;  %vm968_vm0 = vcmask 1046528   ;;  %vm871_vm1 = vcmask 1040384   ;;  %vm3545_vm2 = vcmask 523264  }
  0x15   : > { %5845 = vset.pattern.permute.xlu0 %v6047_v3  ;;  %1119 = vperm.xlu2 %5847, %v6154_v0   ;;  %v6183_v7 = vld [vmem:[%s9324_s1 + $0x18] sm:$0xff]  ;;  %v6188_v8 = vld [vmem:[%s9324_s1 + $0x8] sm:$0xff]  ;;  %v5714_v10 = vld [vmem:[%s9325_s2 + $0x20] sm:$0xff]  ;;  %s300_s19 = scalar_select %p299_p10, %s6124_s9, 1 }
  0x16   : > { %1109 = vperm.xlu1 %5846, %v6159_v1   ;;  %1099 = vperm.xlu0 %5845, %v6164_v2   ;;  %v5715_v9 = vld [vmem:[%s9325_s2 + $0x28] sm:$0xff]  ;;  %v6202_v11 = vld [vmem:[%s9324_s1 + $0x40] sm:$0xff]  ;;  %v6208_v12 = vld [vmem:[%s9324_s1 + $0x38] sm:$0xff]  ;;  %s6003_s25 = scalar_lea.hbm %s9331_s8, 1024 }
  0x17   : > { %5771 = vmatpush.bf16.msra.mxu1 %v5717_v4  ;;  %629 = vmatpush.bf16.msra.mxu0 %v5717_v4  ;;  %v6213_v13 = vld [vmem:[%s9324_s1 + $0x30] sm:$0xff]  ;;  %v5713_v14 = vld [vmem:[%s9325_s2 + $0x18] sm:$0xff]  ;;  %s5677_s24 = sshll.u32 %s300_s19, 8  ;;  %v6238_v18 = vld [vmem:[%s9324_s1 + $0x48] sm:$0xff]  ;;  %s296_s19 = sand.u32 1, %s6037_s28  }
  0x18   : > { %5772 = vmatpush.bf16.msra.mxu2 %v5717_v4  ;;  %5773 = vmatpush.bf16.msra.mxu3 %v5717_v4  ;;  %v5712_v15 = vld [vmem:[%s9325_s2 + $0x10] sm:$0xff]  ;;  %v6228_v16 = vld [vmem:[%s9324_s1 + $0x58] sm:$0xff]  ;;  %v5711_v19 = vld [vmem:[%s9325_s2 + $0x8] sm:$0xff]  ;;  %s6247_s20 = scalar_lea.vmem %s9323_s0, %s5677_s24  ;;  %s5253_s22 = sshll.u32 %s296_s19, 9 }
  0x19   : > { %v6233_v17 = vld [vmem:[%s9324_s1 + $0x50] sm:$0xff]  ;;  %v5710_v20 = vld [vmem:[%s9325_s2] sm:$0xff]  ;;  %v5687_v22 = vld [vmem:[%s6247_s20 + $0x44] sm:$0xf0]  ;;  %s9066_s23 = scalar_lea.vmem [#allocation2], %s5253_s22  ;;  %s5770_s24 = sshll.u32 %s6124_s9, 9 }
  0x1a   : > { %v5290_v21 = vld [vmem:[%s6247_s20 + $0x40] sm:$0xf]  ;;  %v6259_v23 = vld [vmem:[%s9324_s1 + $0x70] sm:$0xff]  ;;  %v6264_v24 = vld [vmem:[%s9324_s1 + $0x68] sm:$0xff]  ;;  %s5183_s10 = scalar_lea.hbm %s9331_s8, %s5770_s24  ;;  %s5184_s12 = sshll.u32 %s9066_s23, 4  ;;  %s5185_s12 = int_to_ptr.vmem [resolvable:$true] %s5184_s12 }
  0x1b   : > { %5774 = vmatpush.bf16.msra.mxu1 %v5716_v5  ;;  %630 = vmatpush.bf16.msra.mxu0 %v5716_v5  ;;  %v6269_v25 = vld [vmem:[%s9324_s1 + $0x60] sm:$0xff]  ;;  %v5291_v26 = vor.u32 %v5687_v22, %v5290_v21  ;;  %v5725_v27 = vld [vmem:[%s9325_s2 + $0x78] sm:$0xff]  ;;  %v5724_v28 = vld [vmem:[%s9325_s2 + $0x70] sm:$0xff]  ;;  %s5186_s13 = sshll.u32 %s5183_s10, 4  ;;  %s5172_s9 = scalar_lea.sflag [#allocation3], %s296_s19  ;;  %s5187_s13 = int_to_ptr.hbm [resolvable:$true] %s5186_s13 }
  0x1c   : > { %5775 = vmatpush.bf16.msra.mxu2 %v5716_v5  ;;  %5776 = vmatpush.bf16.msra.mxu3 %v5716_v5  ;;  %v6283_v29 = vld [vmem:[%s9324_s1 + $0x88] sm:$0xff]  ;;  %v6288_v30 = vld [vmem:[%s9324_s1 + $0x80] sm:$0xff]  ;;  %v6293_v31 = vld [vmem:[%s9324_s1 + $0x78] sm:$0xff]  ;;  %s5997_s17 = sshra.s32 %s5187_s13, 4  ;;  %s5998_s17 = int_to_ptr.hbm [resolvable:$true] %s5997_s17 }
  0x1d   : > { %1124 = vperm.xlu2 %5847, %v6178_v6   ;;  %v5723_v32 = vld [vmem:[%s9325_s2 + $0x68] sm:$0xff]  ;;  %v5298_v33 = vld [vmem:[%s6247_s20 + $0x50] sm:$0xf]  ;;  %v5689_v34 = vld [vmem:[%s6247_s20 + $0x54] sm:$0xf0]  ;;  %s5999_s18 = scalar_lea.hbm %s5998_s17, 512  ;;  %p6004_p0 = scmp.lt.s32.totalorder %s5998_s17, %s9331_s8 }
  0x1e   : > { %1114 = vperm.xlu1 %5846, %v6183_v7   ;;  %1104 = vperm.xlu0 %5845, %v6188_v8   ;;  %v5722_v35 = vld [vmem:[%s9325_s2 + $0x60] sm:$0xff]  ;;  %v6314_v37 = vld [vmem:[%s9324_s1 + $0x98] sm:$0xff]  ;;  %v6319_v38 = vld [vmem:[%s9324_s1 + $0x90] sm:$0xff]  ;;  %v5299_v39 = vor.u32 %v5689_v34, %v5298_v33  ;;  %p6000_p11 = scmp.ne.s32.totalorder %s5998_s17, %s5999_s18  ;;  %p6005_p1 = scmp.lt.s32.totalorder %s6003_s25, %s5999_s18 }
  0x1f   : > { %5777 = vmatpush.bf16.msra.mxu1 %v5715_v9  ;;  %631 = vmatpush.bf16.msra.mxu0 %v5715_v9  ;;  %v6309_v36 = vld [vmem:[%s9324_s1 + $0xa0] sm:$0xff]  ;;  %v5721_v40 = vld [vmem:[%s9325_s2 + $0x58] sm:$0xff]  ;;  %v5720_v41 = vld [vmem:[%s9325_s2 + $0x50] sm:$0xff] }
  0x20   : > { %5778 = vmatpush.bf16.msra.mxu2 %v5715_v9  ;;  %5779 = vmatpush.bf16.msra.mxu3 %v5715_v9  ;;  %v6333_v42 = vld [vmem:[%s9324_s1 + $0xb8] sm:$0xff]  ;;  %v6338_v43 = vld [vmem:[%s9324_s1 + $0xb0] sm:$0xff]  ;;  %v6343_v44 = vld [vmem:[%s9324_s1 + $0xa8] sm:$0xff]  ;;  %v6048_v9 = vmov 1   ;;  %p6001_p12 = pnand %p6000_p11, %p6141_p5  ;;  %p6006_p2 = por %p6005_p1, %p6004_p0 }
  0x21   : > { %v5719_v45 = vld [vmem:[%s9325_s2 + $0x48] sm:$0xff]  ;;  %v5306_v46 = vld [vmem:[%s6247_s20 + $0x60] sm:$0xf]  ;;  %v6361_v52 = vld [vmem:[%s9324_s1 + $0xd0] sm:$0xff] }
  0x22   : > { %v5691_v47 = vld [vmem:[%s6247_s20 + $0x64] sm:$0xf0]  ;;  %v5718_v48 = vld [vmem:[%s9325_s2 + $0x40] sm:$0xff]  ;;  %v6389_v58 = vld [vmem:[%s9324_s1 + $0xd8] sm:$0xff]  ;;  %p6002_p13 = pneg %p6001_p12 }
  0x23   : > { %5780 = vmatpush.bf16.msra.mxu1 %v5714_v10  ;;  %632 = vmatpush.bf16.msra.mxu0 %v5714_v10  ;;  %v5258_v49 = vld [vmem:[%s6247_s20] sm:$0xf]  ;;  %v5679_v50 = vld [vmem:[%s6247_s20 + $0x4] sm:$0xf0]  ;;  %v5307_v55 = vor.u32 %v5691_v47, %v5306_v46  ;;  %v5314_v59 = vld [vmem:[%s6247_s20 + $0x70] sm:$0xf] }
  0x24   : > { %5781 = vmatpush.bf16.msra.mxu2 %v5714_v10  ;;  %5782 = vmatpush.bf16.msra.mxu3 %v5714_v10  ;;  %v5259_v51 = vor.u32 %v5679_v50, %v5258_v49  ;;  %v6366_v53 = vld [vmem:[%s9324_s1 + $0xc8] sm:$0xff]  ;;  %v6371_v54 = vld [vmem:[%s9324_s1 + $0xc0] sm:$0xff]  ;;  %v5693_v60 = vld [vmem:[%s6247_s20 + $0x74] sm:$0xf0]  ;;  %p6007_p3 = pnand %p6006_p2, %p6002_p13 }
  0x25   : > { %1139 = vperm.xlu2 %5847, %v6202_v11   ;;  %v6379_v56 = vld [vmem:[%s9324_s1 + $0xe8] sm:$0xff]  ;;  %v6384_v57 = vld [vmem:[%s9324_s1 + $0xe0] sm:$0xff]  ;;  %v5266_v61 = vld [vmem:[%s6247_s20 + $0x10] sm:$0xf]  ;;  %v5315_v5 = vor.u32 %v5693_v60, %v5314_v59 }
  0x26   : > { %1134 = vperm.xlu1 %5846, %v6208_v12   ;;  %1129 = vperm.xlu0 %5845, %v6213_v13   ;;  %v5681_v62 = vld [vmem:[%s6247_s20 + $0x14] sm:$0xf0]  ;;  %v6406_v4 = vld [vmem:[%s9324_s1 + $0xf0] sm:$0xff]  ;;  %v5682_v49 = vld [vmem:[%s6247_s20 + $0x24] sm:$0xf] }
  0x27   : > { %5783 = vmatpush.bf16.msra.mxu1 %v5713_v14  ;;  %633 = vmatpush.bf16.msra.mxu0 %v5713_v14  ;;  %v5267_v63 = vor.u32 %v5681_v62, %v5266_v61  ;;  %v6401_v3 = vld [vmem:[%s9324_s1 + $0xf8] sm:$0xff]  ;;  %v5282_v33 = vld [vmem:[%s6247_s20 + $0x30] sm:$0xf]  ;;  %v5276_v50 = vld [vmem:[%s6247_s20 + $0x28] sm:$0xf0] }
  0x28   : > { %5784 = vmatpush.bf16.msra.mxu2 %v5713_v14  ;;  %5785 = vmatpush.bf16.msra.mxu3 %v5713_v14  ;;  %v5678_v14 = vld [vmem:[%s6247_s20 + $0x4] sm:$0xf]  ;;  %v5685_v34 = vld [vmem:[%s6247_s20 + $0x34] sm:$0xf0] }
  0x2b   : > { %5786 = vmatpush.bf16.msra.mxu1 %v5712_v15  ;;  %634 = vmatpush.bf16.msra.mxu0 %v5712_v15 }
  0x2c   : > { %5787 = vmatpush.bf16.msra.mxu2 %v5712_v15  ;;  %5788 = vmatpush.bf16.msra.mxu3 %v5712_v15  ;;  %v5260_v15 = vld [vmem:[%s6247_s20 + $0x8] sm:$0xf0] }
  0x2d   : > { %1154 = vperm.xlu2 %5847, %v6228_v16   ;;  %v5263_v21 = vor.u32 %v5678_v14, %v5260_v15 }
  0x2e   : > { %1149 = vperm.xlu1 %5846, %v6233_v17   ;;  %1144 = vperm.xlu0 %5845, %v6238_v18  }
  0x2f   : > { %5789 = vmatpush.bf16.msra.mxu1 %v5711_v19  ;;  %635 = vmatpush.bf16.msra.mxu0 %v5711_v19 }
  0x30   : > { %5790 = vmatpush.bf16.msra.mxu2 %v5711_v19  ;;  %5791 = vmatpush.bf16.msra.mxu3 %v5711_v19  ;;  %v5274_v19 = vld [vmem:[%s6247_s20 + $0x20] sm:$0xf] }
  0x33   : > { %5792 = vmatpush.bf16.msra.mxu1 %v5710_v20  ;;  %636 = vmatpush.bf16.msra.mxu0 %v5710_v20 }
  0x34   : > { %5793 = vmatpush.bf16.msra.mxu2 %v5710_v20  ;;  %5794 = vmatpush.bf16.msra.mxu3 %v5710_v20  ;;  %v5683_v20 = vld [vmem:[%s6247_s20 + $0x24] sm:$0xf0] }
  0x35   : > { %1169 = vperm.xlu2 %5847, %v6259_v23   ;;  %v5275_v22 = vor.u32 %v5683_v20, %v5274_v19 }
  0x36   : > { %1164 = vperm.xlu1 %5846, %v6264_v24   ;;  %1159 = vperm.xlu0 %5845, %v6269_v25  }
  0x37   : > { %657 = vmatmul.bf16.vlgmr.msra.gmra.mxu1 %v5291_v26  ;;  %637 = vmatmul.bf16.vlgmr.msra.gmra.mxu0 %v5259_v51  ;;  %v5279_v51 = vor.u32 %v5682_v49, %v5276_v50 }
  0x38   : > { %718 = vmatpush.bf16.msrb.mxu1 %v5725_v27 }
  0x3c   : > { %719 = vmatpush.bf16.msrb.mxu1 %v5724_v28  ;;  %v5680_v28 = vld [vmem:[%s6247_s20 + $0x14] sm:$0xf] }
  0x3d   : > { %1184 = vperm.xlu2 %5847, %v6283_v29  }
  0x3e   : > { %1179 = vperm.xlu1 %5846, %v6288_v30   ;;  %1174 = vperm.xlu0 %5845, %v6293_v31  }
  0x40   : > { %720 = vmatpush.bf16.msrb.mxu1 %v5723_v32  ;;  %v5268_v32 = vld [vmem:[%s6247_s20 + $0x18] sm:$0xf0] }
  0x44   : > { %721 = vmatpush.bf16.msrb.mxu1 %v5722_v35  ;;  %v5283_v35 = vor.u32 %v5685_v34, %v5282_v33  ;;  %v5292_v33 = vld [vmem:[%s6247_s20 + $0x48] sm:$0xf0] }
  0x45   : > { %1199 = vperm.xlu2 %5847, %v6309_v36  }
  0x46   : > { %1194 = vperm.xlu1 %5846, %v6314_v37   ;;  %1189 = vperm.xlu0 %5845, %v6319_v38  }
  0x47   : > { %662 = vmatmul.bf16.gmra.mxu1 %v5299_v39  ;;  %642 = vmatmul.bf16.gmra.mxu0 %v5267_v63  ;;  %v5271_v39 = vor.u32 %v5680_v28, %v5268_v32  ;;  %v5686_v32 = vld [vmem:[%s6247_s20 + $0x44] sm:$0xf] }
  0x48   : > { %722 = vmatpush.bf16.msrb.mxu1 %v5721_v40  ;;  %v5295_v34 = vor.u32 %v5686_v32, %v5292_v33  ;;  %v5688_v32 = vld [vmem:[%s6247_s20 + $0x54] sm:$0xf]  ;;  %v5300_v33 = vld [vmem:[%s6247_s20 + $0x58] sm:$0xf0] }
  0x4c   : > { %723 = vmatpush.bf16.msrb.mxu1 %v5720_v41 }
  0x4d   : > { %1214 = vperm.xlu2 %5847, %v6333_v42  }
  0x4e   : > { %1209 = vperm.xlu1 %5846, %v6338_v43   ;;  %1204 = vperm.xlu0 %5845, %v6343_v44  }
  0x50   : > { %724 = vmatpush.bf16.msrb.mxu1 %v5719_v45 }
  0x54   : > { %725 = vmatpush.bf16.msrb.mxu1 %v5718_v48 }
  0x55   : > { %1229 = vperm.xlu2 %5847, %v6361_v52  }
  0x56   : > { %1224 = vperm.xlu1 %5846, %v6366_v53   ;;  %1219 = vperm.xlu0 %5845, %v6371_v54  }
  0x57   : > { %667 = vmatmul.bf16.gmra.mxu1 %v5307_v55  ;;  %647 = vmatmul.bf16.gmra.mxu0 %v5275_v22 }
  0x5d   : > { %1244 = vperm.xlu2 %5847, %v6379_v56  }
  0x5e   : > { %1239 = vperm.xlu1 %5846, %v6384_v57   ;;  %1234 = vperm.xlu0 %5845, %v6389_v58  }
  0x65   : > { %5848 = vset.pattern.permute.xlu2 %v6048_v9 }
  0x66   : > { %1254 = vperm.xlu1 %5846, %v6401_v3   ;;  %1249 = vperm.xlu0 %5845, %v6406_v4  }
  0x67   : > { %672 = vmatmul.bf16.gmra.mxu1 %v5315_v5  ;;  %1322 = vperm.xlu2 %5848, %v6164_v2   ;;  %v5684_v5 = vld [vmem:[%s6247_s20 + $0x34] sm:$0xf] }
  0x68   : > { %652 = vmatmul.bf16.gmra.mxu0 %v5283_v35 }
  0x6e   : > { %5850 = vset.pattern.permute.xlu1 %v6048_v9  ;;  %5849 = vset.pattern.permute.xlu0 %v6048_v9  ;;  %v5284_v9 = vld [vmem:[%s6247_s20 + $0x38] sm:$0xf0] }
  0x6f   : > { %1330 = vperm.xlu1 %5850, %v6159_v1   ;;  %1334 = vperm.xlu2 %5848, %v6183_v7   ;;  %v6413_v10 = vpop.permute.xlu2 %1119  ;;  %v5287_v14 = vor.u32 %v5684_v5, %v5284_v9  ;;  %v6049_v5 = vmov 2  }
  0x70   : > { %9475 = vst [vmem:[#allocation5_spill] sm:$0xff] %v6413_v10  ;;  %1326 = vperm.xlu0 %5849, %v6188_v8  }
  0x77   : > { %726 = vmatmul.bf16.vlgmr.msrb.gmra.mxu1 %v5263_v21  ;;  %1338 = vperm.xlu1 %5850, %v6154_v0   ;;  %v6421_v26 = vpop.permute.xlu2 %1124 }
  0x78   : > { %9476 = vst [vmem:[#allocation6_spill] sm:$0xff] %v6421_v26  ;;  %1342 = vperm.xlu2 %5848, %v6178_v6   ;;  %1346 = vperm.xlu0 %5849, %v6213_v13  }
  0x7f   : > { %1350 = vperm.xlu1 %5850, %v6208_v12   ;;  %v6426_v27 = vpop.permute.xlu2 %1139 }
  0x80   : > { %9477 = vst [vmem:[#allocation7_spill] sm:$0xff] %v6426_v27  ;;  %1354 = vperm.xlu2 %5848, %v6202_v11   ;;  %1358 = vperm.xlu0 %5849, %v6238_v18   ;;  %v5324_v27 = vld [vmem:[%s6247_s20 + $0x88] sm:$0xf0] }
  0x87   : > { %731 = vmatmul.bf16.gmra.mxu1 %v5271_v39  ;;  %1362 = vperm.xlu1 %5850, %v6233_v17   ;;  %v6435_v40 = vpop.permute.xlu2 %1154 }
  0x88   : > { %9478 = vst [vmem:[#allocation8_spill] sm:$0xff] %v6435_v40  ;;  %1366 = vperm.xlu2 %5848, %v6228_v16   ;;  %1370 = vperm.xlu0 %5849, %v6269_v25   ;;  %v6439_v41 = vpop.permute.xlu1 %1109  ;;  %v6441_v45 = vpop.permute.xlu0 %1099  ;;  %v5338_v40 = vld [vmem:[%s6247_s20 + $0xa0] sm:$0xf] }
  0x89   : > { %9479 = vst [vmem:[#allocation9_spill] sm:$0xff] %v6439_v41 }
  0x8a   : > { %9480 = vst [vmem:[#allocation10_spill] sm:$0xff] %v6441_v45 }
  0x8f   : > { %1374 = vperm.xlu1 %5850, %v6264_v24   ;;  %v6444_v46 = vpop.permute.xlu2 %1169 }
  0x90   : > { %9481 = vst [vmem:[#allocation11_spill] sm:$0xff] %v6444_v46  ;;  %1378 = vperm.xlu2 %5848, %v6259_v23   ;;  %1382 = vperm.xlu0 %5849, %v6293_v31   ;;  %v6448_v47 = vpop.permute.xlu1 %1114  ;;  %v6450_v48 = vpop.permute.xlu0 %1104  ;;  %v5316_v46 = vld [vmem:[%s6247_s20 + $0x78] sm:$0xf0] }
  0x91   : > { %9482 = vst [vmem:[#allocation12_spill] sm:$0xff] %v6448_v47  ;;  %v5346_v47 = vld [vmem:[%s6247_s20 + $0xb0] sm:$0xf] }
  0x92   : > { %9483 = vst [vmem:[#allocation13_spill] sm:$0xff] %v6450_v48  ;;  %v5332_v48 = vld [vmem:[%s6247_s20 + $0x98] sm:$0xf0] }
  0x97   : > { %736 = vmatmul.bf16.gmra.mxu1 %v5279_v51  ;;  %1386 = vperm.xlu1 %5850, %v6288_v30   ;;  %v6455_v55 = vpop.permute.xlu2 %1184 }
  0x98   : > { %9484 = vst [vmem:[#allocation14_spill] sm:$0xff] %v6455_v55  ;;  %1390 = vperm.xlu2 %5848, %v6283_v29   ;;  %1394 = vperm.xlu0 %5849, %v6319_v38   ;;  %v6459_v59 = vpop.permute.xlu1 %1134  ;;  %v6461_v60 = vpop.permute.xlu0 %1129  ;;  %v5330_v55 = vld [vmem:[%s6247_s20 + $0x90] sm:$0xf] }
  0x99   : > { %9485 = vst [vmem:[#allocation15_spill] sm:$0xff] %v6459_v59 }
  0x9a   : > { %9486 = vst [vmem:[#allocation16_spill] sm:$0xff] %v6461_v60 }
  0x9f   : > { %1398 = vperm.xlu1 %5850, %v6314_v37   ;;  %v6464_v61 = vpop.permute.xlu2 %1199 }
  0xa0   : > { %9487 = vst [vmem:[#allocation17_spill] sm:$0xff] %v6464_v61  ;;  %1402 = vperm.xlu2 %5848, %v6309_v36   ;;  %1406 = vperm.xlu0 %5849, %v6343_v44   ;;  %v6468_v62 = vpop.permute.xlu1 %1149  ;;  %v6470_v63 = vpop.permute.xlu0 %1144 }
  0xa1   : > { %9488 = vst [vmem:[#allocation18_spill] sm:$0xff] %v6468_v62 }
  0xa2   : > { %9489 = vst [vmem:[#allocation19_spill] sm:$0xff] %v6470_v63 }
  0xa7   : > { %741 = vmatmul.bf16.gmra.mxu1 %v5287_v14  ;;  %1410 = vperm.xlu1 %5850, %v6338_v43   ;;  %v6475_v15 = vpop.permute.xlu2 %1214 }
  0xa8   : > { %9490 = vst [vmem:[#allocation20_spill] sm:$0xff] %v6475_v15  ;;  %1414 = vperm.xlu2 %5848, %v6333_v42   ;;  %1418 = vperm.xlu0 %5849, %v6371_v54   ;;  %v6479_v19 = vpop.permute.xlu1 %1164  ;;  %v6481_v20 = vpop.permute.xlu0 %1159 }
  0xa9   : > { %9491 = vst [vmem:[#allocation21_spill] sm:$0xff] %v6479_v19 }
  0xaa   : > { %9492 = vst [vmem:[#allocation22_spill] sm:$0xff] %v6481_v20 }
  0xaf   : > { %1422 = vperm.xlu1 %5850, %v6366_v53   ;;  %v6484_v21 = vpop.permute.xlu2 %1229 }
  0xb0   : > { %9493 = vst [vmem:[#allocation23_spill] sm:$0xff] %v6484_v21  ;;  %1426 = vperm.xlu2 %5848, %v6361_v52   ;;  %1430 = vperm.xlu0 %5849, %v6389_v58   ;;  %v6488_v22 = vpop.permute.xlu1 %1179  ;;  %v6490_v28 = vpop.permute.xlu0 %1174 }
  0xb1   : > { %9494 = vst [vmem:[#allocation24_spill] sm:$0xff] %v6488_v22 }
  0xb2   : > { %9495 = vst [vmem:[#allocation25_spill] sm:$0xff] %v6490_v28 }
  0xb4   : > { %v6494_v35 = vpop.f32.mrf.mxu1 }
  0xb7   : > { %746 = vmatmul.bf16.gmra.mxu1 %v5295_v34  ;;  %1434 = vperm.xlu1 %5850, %v6384_v57   ;;  %v6497_v39 = vpop.permute.xlu2 %1244 }
  0xb8   : > { %9496 = vst [vmem:[#allocation26_spill] sm:$0xff] %v6497_v39  ;;  %1438 = vperm.xlu2 %5848, %v6379_v56   ;;  %1442 = vperm.xlu0 %5849, %v6406_v4   ;;  %v6501_v49 = vpop.permute.xlu1 %1194  ;;  %v6503_v50 = vpop.permute.xlu0 %1189  ;;  %v5303_v39 = vor.u32 %v5688_v32, %v5300_v33  ;;  %v5322_v32 = vld [vmem:[%s6247_s20 + $0x80] sm:$0xf]  ;;  %v5695_v33 = vld [vmem:[%s6247_s20 + $0x84] sm:$0xf0] }
  0xb9   : > { %9497 = vst [vmem:[#allocation27_spill] sm:$0xff] %v6501_v49 }
  0xba   : > { %9498 = vst [vmem:[#allocation28_spill] sm:$0xff] %v6503_v50 }
  0xbc   : > { %v6505_v51 = vpop.f32.mrf.mxu1 }
  0xbd   : > { %9499 = vst [vmem:[#allocation29_spill] sm:$0xff] %v6505_v51 }
  0xbf   : > { %1446 = vperm.xlu1 %5850, %v6401_v3  }
  0xc0   : > { %5851 = vset.pattern.permute.xlu2 %v6049_v5  ;;  %5852 = vset.pattern.permute.xlu0 %v6049_v5  ;;  %v6508_v9 = vpop.permute.xlu1 %1209  ;;  %v6510_v14 = vpop.permute.xlu0 %1204 }
  0xc1   : > { %9500 = vst [vmem:[#allocation30_spill] sm:$0xff] %v6508_v9  ;;  %1514 = vperm.xlu2 %5851, %v6164_v2   ;;  %1518 = vperm.xlu0 %5852, %v6188_v8   ;;  %v6516_v34 = vpop.permute.xlu2 %1322 }
  0xc2   : > { %9501 = vst [vmem:[#allocation31_spill] sm:$0xff] %v6510_v14 }
  0xc4   : > { %v6518_v21 = vpop.f32.mrf.mxu1 }
  0xc7   : > { %751 = vmatmul.bf16.gmra.mxu1 %v5303_v39  ;;  %5853 = vset.pattern.permute.xlu1 %v6049_v5  ;;  %v5323_v39 = vor.u32 %v5695_v33, %v5322_v32 }
  0xc8   : > { %1522 = vperm.xlu1 %5853, %v6159_v1   ;;  %v6521_v9 = vpop.permute.xlu1 %1224  ;;  %v6523_v15 = vpop.permute.xlu0 %1219 }
  0xc9   : > { %9502 = vst [vmem:[#allocation32_spill] sm:$0xff] %v6521_v9  ;;  %1526 = vperm.xlu2 %5851, %v6183_v7   ;;  %1538 = vperm.xlu0 %5852, %v6213_v13   ;;  %v6527_v61 = vpop.permute.xlu2 %1334  ;;  %v5308_v9 = vld [vmem:[%s6247_s20 + $0x68] sm:$0xf0] }
  0xca   : > { %9503 = vst [vmem:[#allocation33_spill] sm:$0xff] %v6523_v15  ;;  %677 = vmatmul.bf16.vlgmr.msra.gmra.mxu2 %v5323_v39  ;;  %v5690_v15 = vld [vmem:[%s6247_s20 + $0x64] sm:$0xf] }
  0xcb   : > { %v5311_v22 = vor.u32 %v5690_v15, %v5308_v9  ;;  %v5697_v15 = vld [vmem:[%s6247_s20 + $0x94] sm:$0xf0] }
  0xcc   : > { %v6529_v14 = vpop.f32.mrf.mxu1  ;;  %v5331_v9 = vor.u32 %v5697_v15, %v5330_v55 }
  0xcd   : > { %9504 = vst [vmem:[#allocation34_spill] sm:$0xff] %v6529_v14  ;;  %v5348_v14 = vld [vmem:[%s6247_s20 + $0xb8] sm:$0xf0] }
  0xd0   : > { %1530 = vperm.xlu1 %5853, %v6154_v0   ;;  %v6534_v5 = vpop.permute.xlu1 %1239  ;;  %v6536_v50 = vpop.permute.xlu0 %1234 }
  0xd1   : > { %9505 = vst [vmem:[#allocation35_spill] sm:$0xff] %v6534_v5  ;;  %1534 = vperm.xlu2 %5851, %v6178_v6   ;;  %1550 = vperm.xlu0 %5852, %v6238_v18  }
  0xd2   : > { %9506 = vst [vmem:[#allocation36_spill] sm:$0xff] %v6536_v50  ;;  %v6542_v49 = vpop.permute.xlu2 %1342 }
  0xd4   : > { %v6544_v32 = vpop.f32.mrf.mxu1 }
  0xd7   : > { %756 = vmatmul.bf16.gmra.mxu1 %v5311_v22  ;;  %v5692_v22 = vld [vmem:[%s6247_s20 + $0x74] sm:$0xf] }
  0xd8   : > { %1542 = vperm.xlu1 %5853, %v6208_v12   ;;  %v6547_v33 = vpop.permute.xlu1 %1254  ;;  %v6549_v39 = vpop.permute.xlu0 %1249  ;;  %v5319_v20 = vor.u32 %v5692_v22, %v5316_v46  ;;  %v5699_v46 = vld [vmem:[%s6247_s20 + $0xa4] sm:$0xf0] }
  0xd9   : > { %9507 = vst [vmem:[#allocation37_spill] sm:$0xff] %v6547_v33  ;;  %1546 = vperm.xlu2 %5851, %v6202_v11   ;;  %1562 = vperm.xlu0 %5852, %v6269_v25   ;;  %v5339_v22 = vor.u32 %v5699_v46, %v5338_v40 }
  0xda   : > { %9508 = vst [vmem:[#allocation38_spill] sm:$0xff] %v6549_v39  ;;  %v6553_v5 = vpop.permute.xlu2 %1354  ;;  %682 = vmatmul.bf16.gmra.mxu2 %v5331_v9 }
  0xdb   : > { %9509 = vst [vmem:[#allocation39_spill] sm:$0xff] %v6553_v5  ;;  %v5707_v5 = vld [vmem:[%s6247_s20 + $0xe4] sm:$0xf0] }
  0xdc   : > { %v6555_v50 = vpop.f32.mrf.mxu1 }
  0xe0   : > { %1554 = vperm.xlu1 %5853, %v6233_v17  }
  0xe1   : > { %1558 = vperm.xlu2 %5851, %v6228_v16   ;;  %1574 = vperm.xlu0 %5852, %v6293_v31   ;;  %v6564_v39 = vpop.permute.xlu1 %1330 }
  0xe2   : > { %v6566_v33 = vpop.permute.xlu2 %1366  ;;  %v6568_v28 = vpop.permute.xlu0 %1326 }
  0xe3   : > { %9510 = vst [vmem:[#allocation40_spill] sm:$0xff] %v6566_v33 }
  0xe4   : > { %v6570_v55 = vpop.f32.mrf.mxu1 }
  0xe5   : > { %9511 = vst [vmem:[#allocation41_spill] sm:$0xff] %v6570_v55 }
  0xe7   : > { %761 = vmatmul.bf16.gmra.mxu1 %v5319_v20  ;;  %v5694_v20 = vld [vmem:[%s6247_s20 + $0x84] sm:$0xf] }
  0xe8   : > { %1566 = vperm.xlu1 %5853, %v6264_v24   ;;  %v5327_v10 = vor.u32 %v5694_v20, %v5324_v27  ;;  %v5701_v27 = vld [vmem:[%s6247_s20 + $0xb4] sm:$0xf0] }
  0xe9   : > { %1570 = vperm.xlu2 %5851, %v6259_v23   ;;  %1586 = vperm.xlu0 %5852, %v6319_v38   ;;  %v6575_v15 = vpop.permute.xlu1 %1338  ;;  %v5347_v20 = vor.u32 %v5701_v27, %v5346_v47 }
  0xea   : > { %v6577_v9 = vpop.permute.xlu2 %1378  ;;  %v6579_v19 = vpop.permute.xlu0 %1346  ;;  %687 = vmatmul.bf16.gmra.mxu2 %v5339_v22 }
  0xeb   : > { %9512 = vst [vmem:[#allocation42_spill] sm:$0xff] %v6577_v9 }
  0xec   : > { %v6581_v62 = vpop.f32.mrf.mxu1 }
  0xed   : > { %9513 = vst [vmem:[#allocation43_spill] sm:$0xff] %v6581_v62 }
  0xf0   : > { %1578 = vperm.xlu1 %5853, %v6288_v30  }
  0xf1   : > { %1582 = vperm.xlu2 %5851, %v6283_v29   ;;  %1598 = vperm.xlu0 %5852, %v6343_v44   ;;  %v6590_v63 = vpop.permute.xlu1 %1350 }
  0xf2   : > { %v6592_v60 = vpop.permute.xlu2 %1390  ;;  %v6594_v59 = vpop.permute.xlu0 %1358 }
  0xf3   : > { %9514 = vst [vmem:[#allocation44_spill] sm:$0xff] %v6592_v60 }
  0xf4   : > { %9515 = vst [vmem:[#allocation45_spill] sm:$0xff] %v6594_v59  ;;  %v6596_v40 = vpop.f32.mrf.mxu1 }
  0xf7   : > { %766 = vmatmul.bf16.gmra.mxu1 %v5327_v10  ;;  %v5696_v10 = vld [vmem:[%s6247_s20 + $0x94] sm:$0xf] }
  0xf8   : > { %1590 = vperm.xlu1 %5853, %v6314_v37   ;;  %v5335_v55 = vor.u32 %v5696_v10, %v5332_v48  ;;  %v5703_v48 = vld [vmem:[%s6247_s20 + $0xc4] sm:$0xf0] }
  0xf9   : > { %1594 = vperm.xlu2 %5851, %v6309_v36   ;;  %1610 = vperm.xlu0 %5852, %v6371_v54   ;;  %v6601_v46 = vpop.permute.xlu1 %1362 }
  0xfa   : > { %9516 = vst [vmem:[#allocation46_spill] sm:$0xff] %v6601_v46  ;;  %v6603_v22 = vpop.permute.xlu2 %1402  ;;  %v6605_v26 = vpop.permute.xlu0 %1370  ;;  %692 = vmatmul.bf16.gmra.mxu2 %v5347_v20  ;;  %v6050_v46 = vmov 3  }
  0xfb   : > { %9517 = vst [vmem:[#allocation47_spill] sm:$0xff] %v6603_v22 }
  0xfc   : > { %9518 = vst [vmem:[#allocation48_spill] sm:$0xff] %v6605_v26  ;;  %v6607_v41 = vpop.f32.mrf.mxu1  ;;  %v5354_v26 = vld [vmem:[%s6247_s20 + $0xc0] sm:$0xf] }
  0xfd   : > { %v5355_v10 = vor.u32 %v5703_v48, %v5354_v26 }
  0xff   : > { %697 = vmatmul.bf16.vlgmr.msra.gmra.mxu3 %v5355_v10 }
 0x100   : > { %1602 = vperm.xlu1 %5853, %v6338_v43  }
 0x101   : > { %1606 = vperm.xlu2 %5851, %v6333_v42   ;;  %1622 = vperm.xlu0 %5852, %v6389_v58   ;;  %v6616_v45 = vpop.permute.xlu1 %1374 }
 0x102   : > { %9519 = vst [vmem:[#allocation49_spill] sm:$0xff] %v6616_v45  ;;  %v6618_v22 = vpop.permute.xlu2 %1414  ;;  %v6620_v60 = vpop.permute.xlu0 %1382  ;;  %v5340_v45 = vld [vmem:[%s6247_s20 + $0xa8] sm:$0xf0] }
 0x103   : > { %9520 = vst [vmem:[#allocation50_spill] sm:$0xff] %v6618_v22 }
 0x104   : > { %v6622_v47 = vpop.f32.mrf.mxu1 }
 0x107   : > { %771 = vmatmul.bf16.gmra.mxu1 %v5335_v55  ;;  %v5698_v55 = vld [vmem:[%s6247_s20 + $0xa4] sm:$0xf] }
 0x108   : > { %1614 = vperm.xlu1 %5853, %v6366_v53   ;;  %v5343_v26 = vor.u32 %v5698_v55, %v5340_v45  ;;  %v5362_v45 = vld [vmem:[%s6247_s20 + $0xd0] sm:$0xf]  ;;  %v5705_v55 = vld [vmem:[%s6247_s20 + $0xd4] sm:$0xf0] }
 0x109   : > { %1618 = vperm.xlu2 %5851, %v6361_v52   ;;  %1634 = vperm.xlu0 %5852, %v6406_v4   ;;  %v6627_v27 = vpop.permute.xlu1 %1386  ;;  %v5363_v33 = vor.u32 %v5705_v55, %v5362_v45 }
 0x10a   : > { %9521 = vst [vmem:[#allocation51_spill] sm:$0xff] %v6627_v27  ;;  %v6629_v20 = vpop.permute.xlu2 %1426  ;;  %v6631_v62 = vpop.permute.xlu0 %1394 }
 0x10b   : > { %9522 = vst [vmem:[#allocation52_spill] sm:$0xff] %v6629_v20 }
 0x10c   : > { %9523 = vst [vmem:[#allocation53_spill] sm:$0xff] %v6631_v62  ;;  %v6633_v22 = vpop.f32.mrf.mxu1 }
 0x10f   : > { %702 = vmatmul.bf16.gmra.mxu3 %v5363_v33 }
 0x110   : > { %1626 = vperm.xlu1 %5853, %v6384_v57  }
 0x111   : > { %1630 = vperm.xlu2 %5851, %v6379_v56   ;;  %5855 = vset.pattern.permute.xlu0 %v6050_v46  ;;  %v6641_v27 = vpop.permute.xlu1 %1398 }
 0x112   : > { %9524 = vst [vmem:[#allocation54_spill] sm:$0xff] %v6641_v27  ;;  %v6643_v20 = vpop.permute.xlu2 %1438  ;;  %1710 = vperm.xlu0 %5855, %v6188_v8   ;;  %v6646_v62 = vpop.permute.xlu0 %1406 }
 0x113   : > { %9525 = vst [vmem:[#allocation55_spill] sm:$0xff] %v6643_v20 }
 0x114   : > { %9526 = vst [vmem:[#allocation56_spill] sm:$0xff] %v6646_v62  ;;  %v6648_v48 = vpop.f32.mrf.mxu1 }
 0x117   : > { %776 = vmatmul.bf16.gmra.mxu1 %v5343_v26  ;;  %v5700_v26 = vld [vmem:[%s6247_s20 + $0xb4] sm:$0xf] }
 0x118   : > { %1638 = vperm.xlu1 %5853, %v6401_v3   ;;  %v5351_v33 = vor.u32 %v5700_v26, %v5348_v14  ;;  %v5702_v26 = vld [vmem:[%s6247_s20 + $0xc4] sm:$0xf] }
 0x119   : > { %5854 = vset.pattern.permute.xlu2 %v6050_v46  ;;  %v6651_v10 = vpop.permute.xlu1 %1410 }
 0x11a   : > { %9527 = vst [vmem:[#allocation57_spill] sm:$0xff] %v6651_v10  ;;  %1706 = vperm.xlu2 %5854, %v6164_v2   ;;  %1730 = vperm.xlu0 %5855, %v6213_v13   ;;  %v6655_v20 = vpop.permute.xlu0 %1418 }
 0x11b   : > { %9528 = vst [vmem:[#allocation58_spill] sm:$0xff] %v6655_v20  ;;  %v6657_v27 = vpop.permute.xlu2 %1514 }
 0x11c   : > { %9529 = vst [vmem:[#allocation59_spill] sm:$0xff] %v6657_v27  ;;  %v6659_v62 = vpop.f32.mrf.mxu1 }
 0x120   : > { %5856 = vset.pattern.permute.xlu1 %v6050_v46 }
 0x121   : > { %1714 = vperm.xlu1 %5856, %v6159_v1   ;;  %v6666_v10 = vpop.permute.xlu1 %1422 }
 0x122   : > { %9530 = vst [vmem:[#allocation60_spill] sm:$0xff] %v6666_v10  ;;  %1718 = vperm.xlu2 %5854, %v6183_v7   ;;  %1742 = vperm.xlu0 %5855, %v6238_v18   ;;  %v6670_v27 = vpop.permute.xlu0 %1430 }
 0x123   : > { %9531 = vst [vmem:[#allocation61_spill] sm:$0xff] %v6670_v27  ;;  %v6672_v20 = vpop.permute.xlu2 %1526 }
 0x124   : > { %9532 = vst [vmem:[#allocation62_spill] sm:$0xff] %v6672_v20  ;;  %v6674_v46 = vpop.f32.mrf.mxu1  ;;  %v5370_v20 = vld [vmem:[%s6247_s20 + $0xe0] sm:$0xf] }
 0x125   : > { %v5371_v14 = vor.u32 %v5707_v5, %v5370_v20 }
 0x127   : > { %781 = vmatmul.bf16.gmra.mxu1 %v5351_v33  ;;  %707 = vmatmul.bf16.gmra.mxu3 %v5371_v14  ;;  %v5356_v33 = vld [vmem:[%s6247_s20 + $0xc8] sm:$0xf0] }
 0x129   : > { %1722 = vperm.xlu1 %5856, %v6154_v0   ;;  %v6677_v45 = vpop.permute.xlu1 %1434 }
 0x12a   : > { %9533 = vst [vmem:[#allocation63_spill] sm:$0xff] %v6677_v45  ;;  %1726 = vperm.xlu2 %5854, %v6178_v6   ;;  %1754 = vperm.xlu0 %5855, %v6269_v25   ;;  %v6681_v55 = vpop.permute.xlu0 %1442  ;;  %v6694_v45 = vld [vmem:[%s9326_s3] ss:$0 sm:$0xff] }
 0x12b   : > { %9534 = vst [vmem:[#allocation64_spill] sm:$0xff] %v6681_v55  ;;  %v6683_v10 = vpop.permute.xlu2 %1534  ;;  %v659_v5 = vadd.f32 %v6694_v45, %v6494_v35 }
 0x12c   : > { %9535 = vst [vmem:[#allocation65_spill] sm:$0xff] %v6683_v10  ;;  %v6685_v27 = vpop.f32.mrf.mxu1  ;;  %v5359_v10 = vor.u32 %v5702_v26, %v5356_v33  ;;  %v5378_v26 = vld [vmem:[%s6247_s20 + $0xf0] sm:$0xf]  ;;  %v5709_v33 = vld [vmem:[%s6247_s20 + $0xf4] sm:$0xf0] }
 0x12d   : > { %v5379_v9 = vor.u32 %v5709_v33, %v5378_v26 }
 0x131   : > { %1734 = vperm.xlu1 %5856, %v6208_v12   ;;  %v6697_v59 = vpop.permute.xlu1 %1446 }
 0x132   : > { %9536 = vst [vmem:[#allocation66_spill] sm:$0xff] %v6697_v59  ;;  %1738 = vperm.xlu2 %5854, %v6202_v11   ;;  %1766 = vperm.xlu0 %5855, %v6293_v31  }
 0x133   : > { %v6703_v20 = vpop.permute.xlu2 %1546  ;;  %v6705_v14 = vpop.permute.xlu0 %1518 }
 0x134   : > { %9537 = vst [vmem:[#allocation67_spill] sm:$0xff] %v6703_v20  ;;  %v747_v55 = vpop.f32.mrf.mxu1 }
 0x135   : > { %9538 = vst [vmem:[#allocation68_spill] sm:$0xff] %v6705_v14  ;;  %v6707_v51 = vadd.f32 %v747_v55, %v659_v5  ;;  %v5704_v55 = vld [vmem:[%s6247_s20 + $0xd4] sm:$0xf] }
 0x137   : > { %9539 = vst [vmem:[#allocation69_spill] sm:$0xff] %v6707_v51  ;;  %786 = vmatmul.bf16.gmra.mxu1 %v5359_v10  ;;  %712 = vmatmul.bf16.gmra.mxu3 %v5379_v9  ;;  %v5364_v10 = vld [vmem:[%s6247_s20 + $0xd8] sm:$0xf0] }
 0x138   : > { %v5367_v9 = vor.u32 %v5704_v55, %v5364_v10 }
 0x139   : > { %1746 = vperm.xlu1 %5856, %v6233_v17  }
 0x13a   : > { %1750 = vperm.xlu2 %5854, %v6228_v16   ;;  %1778 = vperm.xlu0 %5855, %v6319_v38   ;;  %v6712_v59 = vpop.permute.xlu1 %1522 }
 0x13b   : > { %9540 = vst [vmem:[#allocation70_spill] sm:$0xff] %v6712_v59  ;;  %v6714_v35 = vpop.permute.xlu2 %1558  ;;  %v6716_v20 = vpop.permute.xlu0 %1538 }
 0x13c   : > { %9541 = vst [vmem:[#allocation71_spill] sm:$0xff] %v6714_v35  ;;  %v6718_v14 = vpop.f32.mrf.mxu1  ;;  %v664_v35 = vadd.f32 %v6694_v45, %v6518_v21 }
 0x13d   : > { %9542 = vst [vmem:[#allocation72_spill] sm:$0xff] %v6716_v20 }
 0x141   : > { %1758 = vperm.xlu1 %5856, %v6264_v24  }
 0x142   : > { %1762 = vperm.xlu2 %5854, %v6259_v23   ;;  %1790 = vperm.xlu0 %5855, %v6343_v44   ;;  %v6727_v5 = vpop.permute.xlu1 %1530 }
 0x143   : > { %9543 = vst [vmem:[#allocation73_spill] sm:$0xff] %v6727_v5  ;;  %v6731_v20 = vpop.permute.xlu2 %1570  ;;  %v6733_v59 = vpop.permute.xlu0 %1550 }
 0x144   : > { %9544 = vst [vmem:[#allocation74_spill] sm:$0xff] %v6731_v20  ;;  %v752_v26 = vpop.f32.mrf.mxu1  ;;  %v5706_v20 = vld [vmem:[%s6247_s20 + $0xe4] sm:$0xf] }
 0x145   : > { %9545 = vst [vmem:[#allocation75_spill] sm:$0xff] %v6733_v59  ;;  %v6735_v33 = vadd.f32 %v752_v26, %v664_v35  ;;  %v5372_v59 = vld [vmem:[%s6247_s20 + $0xe8] sm:$0xf0] }
 0x147   : > { %791 = vmatmul.bf16.gmra.mxu1 %v5367_v9  ;;  %v5375_v9 = vor.u32 %v5706_v20, %v5372_v59  ;;  %v6051_v59 = vmov 5  }
 0x149   : > { %1770 = vperm.xlu1 %5856, %v6288_v30  }
 0x14a   : > { %1774 = vperm.xlu2 %5854, %v6283_v29   ;;  %1802 = vperm.xlu0 %5855, %v6371_v54   ;;  %v6740_v51 = vpop.permute.xlu1 %1542 }
 0x14b   : > { %9546 = vst [vmem:[#allocation76_spill] sm:$0xff] %v6740_v51  ;;  %v6742_v5 = vpop.permute.xlu2 %1582  ;;  %v6744_v21 = vpop.permute.xlu0 %1562  ;;  %v5708_v51 = vld [vmem:[%s6247_s20 + $0xf4] sm:$0xf] }
 0x14c   : > { %9547 = vst [vmem:[#allocation77_spill] sm:$0xff] %v6742_v5 }
 0x14d   : > { %9548 = vst [vmem:[#allocation78_spill] sm:$0xff] %v6744_v21 }
 0x151   : > { %1782 = vperm.xlu1 %5856, %v6314_v37  }
 0x152   : > { %1786 = vperm.xlu2 %5854, %v6309_v36   ;;  %1814 = vperm.xlu0 %5855, %v6389_v58   ;;  %v6751_v35 = vpop.permute.xlu1 %1554 }
 0x153   : > { %9549 = vst [vmem:[#allocation79_spill] sm:$0xff] %v6751_v35  ;;  %v6753_v55 = vpop.permute.xlu2 %1594  ;;  %v6755_v10 = vpop.permute.xlu0 %1574  ;;  %v5380_v35 = vld [vmem:[%s6247_s20 + $0xf8] sm:$0xf0] }
 0x154   : > { %9550 = vst [vmem:[#allocation80_spill] sm:$0xff] %v6753_v55  ;;  %v5383_v55 = vor.u32 %v5708_v51, %v5380_v35 }
 0x155   : > { %9551 = vst [vmem:[#allocation81_spill] sm:$0xff] %v6755_v10 }
 0x157   : > { %796 = vmatmul.bf16.gmra.mxu1 %v5375_v9 }
 0x159   : > { %1794 = vperm.xlu1 %5856, %v6338_v43  }
 0x15a   : > { %1798 = vperm.xlu2 %5854, %v6333_v42   ;;  %1826 = vperm.xlu0 %5855, %v6406_v4   ;;  %v6760_v26 = vpop.permute.xlu1 %1566 }
 0x15b   : > { %9552 = vst [vmem:[#allocation82_spill] sm:$0xff] %v6760_v26  ;;  %v6762_v5 = vpop.permute.xlu2 %1606  ;;  %v6764_v21 = vpop.permute.xlu0 %1586 }
 0x15c   : > { %9553 = vst [vmem:[#allocation83_spill] sm:$0xff] %v6762_v5 }
 0x15d   : > { %9554 = vst [vmem:[#allocation84_spill] sm:$0xff] %v6764_v21 }
 0x161   : > { %1806 = vperm.xlu1 %5856, %v6366_v53  }
 0x162   : > { %1810 = vperm.xlu2 %5854, %v6361_v52   ;;  %5858 = vset.pattern.permute.xlu0 %v6051_v59  ;;  %v6770_v20 = vpop.permute.xlu1 %1578 }
 0x163   : > { %9555 = vst [vmem:[#allocation85_spill] sm:$0xff] %v6770_v20  ;;  %v6772_v9 = vpop.permute.xlu2 %1618  ;;  %1934 = vperm.xlu0 %5858, %v6188_v8   ;;  %v6775_v4 = vpop.permute.xlu0 %1598 }
 0x164   : > { %9556 = vst [vmem:[#allocation86_spill] sm:$0xff] %v6772_v9  ;;  %v638_v20 = vpop.f32.mrf.mxu0 }
 0x165   : > { %9557 = vst [vmem:[#allocation87_spill] sm:$0xff] %v6775_v4  ;;  %v639_v4 = vadd.f32 %v6694_v45, %v638_v20 }
 0x167   : > { %801 = vmatmul.bf16.gmra.mxu1 %v5383_v55  ;;  %v6795_v55 = vpop.f32.mrf.mxu1 }
 0x169   : > { %1818 = vperm.xlu1 %5856, %v6384_v57  }
 0x16a   : > { %1822 = vperm.xlu2 %5854, %v6379_v56   ;;  %v6779_v5 = vpop.permute.xlu1 %1590 }
 0x16b   : > { %9558 = vst [vmem:[#allocation88_spill] sm:$0xff] %v6779_v5  ;;  %v6781_v21 = vpop.permute.xlu2 %1630  ;;  %1954 = vperm.xlu0 %5858, %v6213_v13   ;;  %v6784_v10 = vpop.permute.xlu0 %1610 }
 0x16c   : > { %9559 = vst [vmem:[#allocation89_spill] sm:$0xff] %v6781_v21  ;;  %v640_v21 = vpop.f32.mrf.mxu0 }
 0x16d   : > { %9560 = vst [vmem:[#allocation90_spill] sm:$0xff] %v6784_v10 }
 0x171   : > { %1830 = vperm.xlu1 %5856, %v6401_v3  }
 0x172   : > { %5857 = vset.pattern.permute.xlu2 %v6051_v59  ;;  %v6787_v8 = vpop.permute.xlu1 %1602 }
 0x173   : > { %9561 = vst [vmem:[#allocation91_spill] sm:$0xff] %v6787_v8  ;;  %1930 = vperm.xlu2 %5857, %v6164_v2   ;;  %1966 = vperm.xlu0 %5858, %v6238_v18   ;;  %v6791_v51 = vpop.permute.xlu0 %1622  ;;  %v6806_v18 = vpop.f32.mrf.mxu1 }
 0x174   : > { %9562 = vst [vmem:[#allocation92_spill] sm:$0xff] %v6791_v51  ;;  %v6793_v35 = vpop.permute.xlu2 %1706  ;;  %v643_v10 = vpop.f32.mrf.mxu0 }
 0x179   : > { %5859 = vset.pattern.permute.xlu1 %v6051_v59 }
 0x17a   : > { %1938 = vperm.xlu1 %5859, %v6159_v1   ;;  %v6798_v13 = vpop.permute.xlu1 %1614 }
 0x17b   : > { %9563 = vst [vmem:[#allocation93_spill] sm:$0xff] %v6798_v13  ;;  %1942 = vperm.xlu2 %5857, %v6183_v7   ;;  %1978 = vperm.xlu0 %5858, %v6269_v25   ;;  %v6802_v9 = vpop.permute.xlu0 %1634  ;;  %v6820_v59 = vpop.f32.mrf.mxu1  ;;  %v641_v13 = vadd.f32 %v6694_v45, %v640_v21 }
 0x17c   : > { %9564 = vst [vmem:[#allocation94_spill] sm:$0xff] %v6802_v9  ;;  %v6804_v2 = vpop.permute.xlu2 %1718 }
 0x17d   : > { %v730_v5 = vadd.f32 %v6607_v41, %v641_v13  ;;  %v644_v41 = vadd.f32 %v6694_v45, %v643_v10 }
 0x182   : > { %1946 = vperm.xlu1 %5859, %v6154_v0   ;;  %v6809_v51 = vpop.permute.xlu1 %1626 }
 0x183   : > { %9565 = vst [vmem:[#allocation95_spill] sm:$0xff] %v6809_v51  ;;  %1950 = vperm.xlu2 %5857, %v6178_v6   ;;  %1990 = vperm.xlu0 %5858, %v6293_v31   ;;  %v645_v6 = vpop.f32.mrf.mxu0 }
 0x184   : > { %v6813_v1 = vpop.permute.xlu2 %1726  ;;  %v6815_v7 = vpop.permute.xlu0 %1710 }
 0x18a   : > { %1958 = vperm.xlu1 %5859, %v6208_v12   ;;  %v6818_v25 = vpop.permute.xlu1 %1638 }
 0x18b   : > { %9566 = vst [vmem:[#allocation96_spill] sm:$0xff] %v6818_v25  ;;  %1962 = vperm.xlu2 %5857, %v6202_v11   ;;  %2002 = vperm.xlu0 %5858, %v6319_v38   ;;  %v6837_v11 = vpop.f32.mrf.mxu1  ;;  %v648_v38 = vpop.f32.mrf.mxu0 }
 0x18c   : > { %v6824_v0 = vpop.permute.xlu2 %1738  ;;  %v6826_v9 = vpop.permute.xlu0 %1730 }
 0x192   : > { %1970 = vperm.xlu1 %5859, %v6233_v17  }
 0x193   : > { %1974 = vperm.xlu2 %5857, %v6228_v16   ;;  %2014 = vperm.xlu0 %5858, %v6343_v44   ;;  %v6831_v12 = vpop.permute.xlu1 %1714  ;;  %v6848_v51 = vpop.f32.mrf.mxu1 }
 0x194   : > { %v6833_v31 = vpop.permute.xlu2 %1750  ;;  %v6835_v25 = vpop.permute.xlu0 %1742 }
 0x195   : > { %9567 = vst [vmem:[#allocation97_spill] sm:$0xff] %v6833_v31  ;;  %v650_v8 = vpop.f32.mrf.mxu0 }
 0x19a   : > { %1982 = vperm.xlu1 %5859, %v6264_v24   ;;  %v1449_v24 = vmul.f32 0.0, %v6516_v34 }
 0x19b   : > { %1986 = vperm.xlu2 %5857, %v6259_v23   ;;  %2022 = vperm.xlu0 %5858, %v6333_v42   ;;  %v6842_v17 = vpop.permute.xlu1 %1722  ;;  %v1450_v42 = vmul.f32 0.0, %v6568_v28  ;;  %v6870_v31 = vpop.f32.mrf.mxu1 }
 0x19c   : > { %v6844_v16 = vpop.permute.xlu2 %1762  ;;  %v6846_v44 = vpop.permute.xlu0 %1754  ;;  %v1481_v20 = vpack.c.bf16 %v1449_v24, %v1449_v24 }
 0x19d   : > { %9568 = vst [vmem:[#allocation98_spill] sm:$0xff] %v6844_v16  ;;  %v6864_v16 = vpop.f32.mrf.mxu2  ;;  %v653_v28 = vpop.f32.mrf.mxu0 }
 0x19e   : > { %9569 = vst [vmem:[#allocation99_spill] sm:$0xff] %v6846_v44  ;;  %v6867_v44 = vmax.f32 %v730_v5, 0.0 }
 0x1a0   : > { %9572 = vst [vmem:[#allocation102_spill] sm:$0xff] %v6867_v44  ;;  %v1452_v13 = vmul.f32 %v6527_v61, %v6867_v44 }
 0x1a2   : > { %1994 = vperm.xlu1 %5859, %v6288_v30   ;;  %v728_v30 = vadd.f32 %v6596_v40, %v639_v4  ;;  %v2809_v4 = vunpack.c.l.b16 %v1481_v20 }
 0x1a3   : > { %1998 = vperm.xlu2 %5857, %v6283_v29   ;;  %2030 = vperm.xlu0 %5858, %v6366_v53   ;;  %v6855_v23 = vpop.permute.xlu1 %1734  ;;  %v1482_v29 = vpack.c.bf16 %v1450_v42, %v1450_v42  ;;  %v646_v53 = vadd.f32 %v6694_v45, %v645_v6 }
 0x1a4   : > { %v6860_v26 = vpop.permute.xlu2 %1774  ;;  %v6862_v21 = vpop.permute.xlu0 %1766  ;;  %v6872_v34 = vmax.f32 %v728_v30, 0.0  ;;  %v1484_v30 = vpack.c.bf16 %v1452_v13, %v1452_v13 }
 0x1a5   : > { %9570 = vst [vmem:[#allocation100_spill] sm:$0xff] %v6860_v26  ;;  %v2810_v5 = vunpack.c.l.b16 %v1482_v29  ;;  %v6890_v42 = vpop.f32.mrf.mxu2  ;;  %v651_v29 = vadd.f32 %v6694_v45, %v650_v8  ;;  %v655_v13 = vpop.f32.mrf.mxu0 }
 0x1a6   : > { %9571 = vst [vmem:[#allocation101_spill] sm:$0xff] %v6862_v21  ;;  %v1451_v10 = vmul.f32 %v6564_v39, %v6872_v34 }
 0x1a7   : > { %9573 = vst [vmem:[#allocation103_spill] sm:$0xff] %v6872_v34 }
 0x1a8   : > { %v1483_v61 = vpack.c.bf16 %v1451_v10, %v1451_v10 }
 0x1aa   : > { %2006 = vperm.xlu1 %5859, %v6314_v37   ;;  %v735_v37 = vadd.f32 %v6633_v22, %v646_v53  ;;  %v649_v22 = vadd.f32 %v6694_v45, %v648_v38  ;;  %v6899_v53 = vpop.f32.mrf.mxu1 }
 0x1ab   : > { %2010 = vperm.xlu2 %5857, %v6309_v36   ;;  %2038 = vperm.xlu0 %5858, %v6389_v58   ;;  %v6878_v40 = vpop.permute.xlu1 %1746  ;;  %v733_v36 = vadd.f32 %v6622_v47, %v644_v41  ;;  %v2841_v58 = vpack.c.b16 %v2810_v5, %v2809_v4  ;;  %v671_v47 = vadd.f32 %v6694_v45, %v6555_v50  ;;  %v2812_v4 = vunpack.c.l.b16 %v1484_v30 }
 0x1ac   : > { %v6882_v6 = vpop.permute.xlu2 %1786  ;;  %v6884_v24 = vpop.permute.xlu0 %1778  ;;  %v6892_v20 = vmax.f32 %v735_v37, 0.0  ;;  %v740_v5 = vadd.f32 %v6659_v62, %v651_v29  ;;  %v2811_v37 = vunpack.c.l.b16 %v1483_v61  ;;  %v738_v10 = vadd.f32 %v6648_v48, %v649_v22 }
 0x1ad   : > { %9574 = vst [vmem:[#allocation104_spill] sm:$0xff] %v6882_v6  ;;  %v6896_v6 = vmax.f32 %v733_v36, 0.0  ;;  %v656_v62 = vadd.f32 %v6694_v45, %v655_v13  ;;  %v654_v48 = vadd.f32 %v6694_v45, %v653_v28 }
 0x1ae   : > { %9575 = vst [vmem:[#allocation105_spill] sm:$0xff] %v6884_v24  ;;  %v1454_v38 = vmul.f32 %v6542_v49, %v6892_v20  ;;  %v6921_v30 = vmax.f32 %v740_v5, 0.0  ;;  %v6924_v49 = vpop.f32.mrf.mxu2 }
 0x1af   : > { %9576 = vst [vmem:[#allocation106_spill] sm:$0xff] %v6896_v6  ;;  %v1453_v50 = vmul.f32 %v6575_v15, %v6896_v6 }
 0x1b0   : > { %9580 = vst [vmem:[#allocation110_spill] sm:$0xff] %v6921_v30  ;;  %v1486_v29 = vpack.c.bf16 %v1454_v38, %v1454_v38  ;;  %v1456_v28 = vmul.f32 %v6590_v63, %v6921_v30  ;;  %v9585_v63 = vld [vmem:[#allocation29_spill] sm:$0xff] }
 0x1b2   : > { %2857 = vrot.lane.b32.xlu1 %v2841_v58, %s6052_s21  ;;  %v2842_v58 = vpack.c.b16 %v2812_v4, %v2811_v37  ;;  %v745_v4 = vadd.f32 %v6685_v27, %v656_v62  ;;  %v6943_v5 = vpop.f32.mrf.mxu1  ;;  %v2814_v38 = vunpack.c.l.b16 %v1486_v29  ;;  %v9332_v62 = vmov 6  }
 0x1b3   : > { %2018 = vperm.xlu2 %5857, %v6338_v43   ;;  %2046 = vperm.xlu0 %5858, %v6379_v56   ;;  %v6903_v39 = vpop.permute.xlu1 %1758  ;;  %v669_v43 = vadd.f32 %v6694_v45, %v6544_v32  ;;  %v760_v56 = vadd.f32 %v6820_v59, %v671_v47  ;;  %v6929_v59 = vmax.f32 %v738_v10, 0.0 }
 0x1b4   : > { %9577 = vst [vmem:[#allocation107_spill] sm:$0xff] %v6903_v39  ;;  %v6907_v8 = vpop.permute.xlu2 %1798  ;;  %v6909_v41 = vpop.permute.xlu0 %1790  ;;  %v6954_v10 = vmax.f32 %v745_v4, 0.0 }
 0x1b5   : > { %9578 = vst [vmem:[#allocation108_spill] sm:$0xff] %v6907_v8  ;;  %v758_v36 = vadd.f32 %v6806_v18, %v669_v43  ;;  %v6926_v32 = vmax.f32 %v760_v56, 0.0  ;;  %v1485_v18 = vpack.c.bf16 %v1453_v50, %v1453_v50  ;;  %v1455_v13 = vmul.f32 %v6579_v19, %v6929_v59  ;;  %v9584_v56 = vld [vmem:[#allocation42_spill] sm:$0xff] }
 0x1b6   : > { %9579 = vst [vmem:[#allocation109_spill] sm:$0xff] %v6909_v41  ;;  %v1488_v50 = vpack.c.bf16 %v1456_v28, %v1456_v28 }
 0x1b7   : > { %v6936_v61 = vmax.f32 %v758_v36, 0.0  ;;  %v2813_v43 = vunpack.c.l.b16 %v1485_v18  ;;  %v1487_v29 = vpack.c.bf16 %v1455_v13, %v1455_v13 }
 0x1b8   : > { %v2816_v28 = vunpack.c.l.b16 %v1488_v50 }
 0x1b9   : > { %v1463_v37 = vmul.f32 %v9584_v56, %v6936_v61  ;;  %v2843_v27 = vpack.c.b16 %v2814_v38, %v2813_v43  ;;  %v2815_v56 = vunpack.c.l.b16 %v1487_v29 }
 0x1ba   : > { %2859 = vrot.lane.b32.xlu1 %v2842_v58, %s6052_s21  ;;  %v661_v58 = vadd.f32 %v6694_v45, %v9585_v63  ;;  %v6981_v13 = vpop.f32.mrf.mxu1 }
 0x1bb   : > { %2026 = vperm.xlu2 %5857, %v6371_v54   ;;  %2054 = vperm.xlu0 %5858, %v6401_v3   ;;  %v6934_v15 = vpop.permute.xlu1 %1770  ;;  %v1464_v54 = vmul.f32 %v6620_v60, %v6926_v32  ;;  %v743_v3 = vadd.f32 %v6674_v46, %v654_v48  ;;  %v6961_v46 = vpop.f32.mrf.mxu2  ;;  %v1495_v4 = vpack.c.bf16 %v1463_v37, %v1463_v37 }
 0x1bc   : > { %9581 = vst [vmem:[#allocation111_spill] sm:$0xff] %v6934_v15  ;;  %v6938_v22 = vpop.permute.xlu2 %1810  ;;  %v6940_v47 = vpop.permute.xlu0 %1802  ;;  %v750_v38 = vadd.f32 %v6718_v14, %v661_v58  ;;  %v9591_v14 = vld [vmem:[#allocation34_spill] sm:$0xff]  ;;  %v9592_v58 = vld [vmem:[#allocation69_spill] sm:$0xff]  ;;  %v9603_v15 = vmov 6  }
 0x1bd   : > { %9582 = vst [vmem:[#allocation112_spill] sm:$0xff] %v6938_v22  ;;  %v1496_v36 = vpack.c.bf16 %v1464_v54, %v1464_v54  ;;  %v6959_v60 = vmax.f32 %v743_v3, 0.0  ;;  %v9589_v54 = vld [vmem:[#allocation45_spill] sm:$0xff]  ;;  %v666_v50 = vadd.f32 %v6694_v45, %v9591_v14 }
 0x1be   : > { %9583 = vst [vmem:[#allocation113_spill] sm:$0xff] %v6940_v47  ;;  %v1458_v3 = vmul.f32 %v9589_v54, %v6954_v10  ;;  %v6985_v22 = vmax.f32 %v750_v38, 0.0  ;;  %v6991_v54 = vmax.f32 %v9592_v58, 0.0 }
 0x1bf   : > { %v2824_v43 = vunpack.c.l.b16 %v1496_v36 }
 0x1c0   : > { %v1490_v37 = vpack.c.bf16 %v1458_v3, %v1458_v3 }
 0x1c2   : > { %2034 = vperm.xlu1 %5859, %v6361_v52   ;;  %v6972_v52 = vld [vmem:[%s9324_s1 + $0x8] sm:$0xff]  ;;  %v777_v58 = vpop.f32.mrf.mxu1 }
 0x1c3   : > { %5861 = vset.pattern.permute.xlu0 %v9332_v62  ;;  %2861 = vrot.lane.b32.xlu2 %v2843_v27, %s6052_s21  ;;  %v6965_v19 = vpop.permute.xlu1 %1782  ;;  %v9590_v27 = vld [vmem:[#allocation39_spill] sm:$0xff]  ;;  %v688_v38 = vpop.f32.mrf.mxu2 }
 0x1c4   : > { %9586 = vst [vmem:[#allocation42_spill] sm:$0xff] %v6965_v19  ;;  %v6967_v48 = vpop.permute.xlu2 %1822  ;;  %2126 = vperm.xlu0 %5861, %v6972_v52   ;;  %v6975_v18 = vpop.permute.xlu0 %1814  ;;  %5862 = vset.pattern.permute.xlu2 %v9332_v62  ;;  %v1457_v63 = vmul.f32 %v9590_v27, %v6959_v60 }
 0x1c5   : > { %9587 = vst [vmem:[#allocation29_spill] sm:$0xff] %v6967_v48  ;;  %v2823_v48 = vunpack.c.l.b16 %v1495_v4  ;;  %v755_v4 = vadd.f32 %v6795_v55, %v666_v50  ;;  %v5933_v55 = vld [vmem:[%s9324_s1 + $0xf0] sm:$0xff]  ;;  %v7013_v50 = vmax.f32 %v6735_v33, 0.0 }
 0x1c6   : > { %9588 = vst [vmem:[#allocation114_spill] sm:$0xff] %v6975_v18  ;;  %v2844_v18 = vpack.c.b16 %v2816_v28, %v2815_v56  ;;  %v1489_v29 = vpack.c.bf16 %v1457_v63, %v1457_v63  ;;  %v9595_v28 = vld [vmem:[#allocation40_spill] sm:$0xff]  ;;  %v9596_v56 = vld [vmem:[#allocation46_spill] sm:$0xff] }
 0x1c7   : > { %v2848_v62 = vpack.c.b16 %v2824_v43, %v2823_v48  ;;  %v2818_v48 = vunpack.c.l.b16 %v1490_v37  ;;  %v1460_v3 = vmul.f32 %v9595_v28, %v6985_v22  ;;  %v1459_v14 = vmul.f32 %v9596_v56, %v6991_v54  ;;  %9597 = vst [vmem:[#allocation34_spill] sm:$0xff] %v7013_v50 }
 0x1c8   : > { %v2817_v43 = vunpack.c.l.b16 %v1489_v29  ;;  %v969_v37 = vrot.slane %v6872_v34, 1 }
 0x1c9   : > { %v1492_v47 = vpack.c.bf16 %v1460_v3, %v1460_v3 }
 0x1ca   : > { %2042 = vperm.xlu1 %5859, %v6384_v57   ;;  %v2845_v63 = vpack.c.b16 %v2818_v48, %v2817_v43  ;;  %v7021_v48 = vld [vmem:[%s9324_s1 + $0x38] sm:$0xff]  ;;  %v9599_v43 = vld [vmem:[#allocation49_spill] sm:$0xff] }
 0x1cb   : > { %2863 = vrot.lane.b32.xlu2 %v2844_v18, %s6052_s21  ;;  %v6994_v36 = vpop.permute.xlu1 %1794  ;;  %v7004_v18 = vmax.f32 %v755_v4, 0.0  ;;  %v1491_v4 = vpack.c.bf16 %v1459_v14, %v1459_v14  ;;  %v2820_v3 = vunpack.c.l.b16 %v1492_v47 }
 0x1cc   : > { %9593 = vst [vmem:[#allocation45_spill] sm:$0xff] %v6994_v36  ;;  %v6996_v27 = vpop.permute.xlu0 %1826  ;;  %2871 = vrot.lane.b32.xlu0 %v2848_v62, %s6052_s21  ;;  %v9334_v62 = vrot.slane %v6896_v6, 1  ;;  %v9602_v36 = vld [vmem:[#allocation48_spill] sm:$0xff] }
 0x1cd   : > { %9594 = vst [vmem:[#allocation39_spill] sm:$0xff] %v6996_v27  ;;  %v1931_v57 = vpop.permute.xlu2 %1930  ;;  %v970_v27 = vrot.slane %v6867_v44, 1  ;;  %v1462_v56 = vmul.f32 %v9599_v43, %v7004_v18  ;;  %v2819_v8 = vunpack.c.l.b16 %v1491_v4  ;;  %v1461_v41 = vmul.f32 %v9602_v36, %v7013_v50  ;;  %v7051_v36 = vld [vmem:[%s9324_s1] sm:$0xff] }
 0x1ce   : > { %v875_v43 = vrot.slane %v6896_v6, 7 }
 0x1cf   : > { %v7031_v33 = vsel %vm968_vm0, %v970_v27, %v9334_v62  ;;  %v7034_v14 = vsel %vm968_vm0, %v969_v37, %v970_v27  ;;  %v2846_v24 = vpack.c.b16 %v2820_v3, %v2819_v8  ;;  %v1494_v19 = vpack.c.bf16 %v1462_v56, %v1462_v56  ;;  %v5936_v3 = vld [vmem:[%s9324_s1 + $0x48] sm:$0xff] }
 0x1d0   : > { %9600 = vst [vmem:[#allocation40_spill] sm:$0xff] %v7031_v33  ;;  %v2057_v47 = vmul.f32 %v1931_v57, %v7034_v14  ;;  %v9335_v37 = vrot.slane %v6867_v44, 7  ;;  %v1493_v8 = vpack.c.bf16 %v1461_v41, %v1461_v41  ;;  %v689_v57 = vadd.f32 %v6694_v45, %v688_v38 }
 0x1d1   : > { %9601 = vst [vmem:[#allocation46_spill] sm:$0xff] %v7034_v14 }
 0x1d2   : > { %2050 = vperm.xlu1 %5859, %v5933_v55   ;;  %v690_v55 = vpop.f32.mrf.mxu2  ;;  %v778_v14 = vadd.f32 %v777_v58, %v689_v57 }
 0x1d3   : > { %2865 = vrot.lane.b32.xlu2 %v2845_v63, %s6052_s21  ;;  %v7016_v29 = vpop.permute.xlu1 %1806  ;;  %v691_v62 = vadd.f32 %v6694_v45, %v690_v55  ;;  %v2822_v55 = vunpack.c.l.b16 %v1494_v19 }
 0x1d4   : > { %9598 = vst [vmem:[#allocation69_spill] sm:$0xff] %v7016_v29  ;;  %2150 = vperm.xlu0 %5861, %v7021_v48   ;;  %v7089_v58 = vmax.f32 %v778_v14, 0.0  ;;  %v9614_v14 = vld [vmem:[#allocation57_spill] sm:$0xff] }
 0x1d5   : > { %v7024_v28 = vpop.permute.xlu2 %1942  ;;  %v1935_v63 = vpop.permute.xlu0 %1934 }
 0x1d6   : > { %v2058_v29 = vmul.f32 %v1935_v63, %v7031_v33  ;;  %v779_v63 = vpop.f32.mrf.mxu1  ;;  %9611 = vst [vmem:[#allocation117_spill] sm:$0xff] %v7089_v58 }
 0x1d7   : > { %v780_v27 = vadd.f32 %v779_v63, %v691_v62  ;;  %v9609_v62 = vld [vmem:[#allocation43_spill] sm:$0xff] }
 0x1d8   : > { %v2090_v26 = vpack.c.bf16 %v2058_v29, %v2058_v29  ;;  %v2089_v29 = vpack.c.bf16 %v2057_v47, %v2057_v47  ;;  %v9606_v47 = vrot.slane %v6892_v20, 7 }
 0x1d9   : > { %v7076_v39 = vmax.f32 %v780_v27, 0.0 }
 0x1da   : > { %5860 = vset.pattern.permute.xlu1 %v9603_v15  ;;  %v7072_v15 = vsel %vm871_vm1, %v875_v43, %v9606_v47  ;;  %v3193_v33 = vunpack.c.l.b16 %v2089_v29  ;;  %v9613_v29 = vld [vmem:[#allocation50_spill] sm:$0xff]  ;;  %v1471_v47 = vmul.f32 %v9614_v14, %v7089_v58 }
 0x1db   : > { %2867 = vrot.lane.b32.xlu2 %v2846_v24, %s6052_s21  ;;  %v7046_v4 = vpop.permute.xlu1 %1818  ;;  %2122 = vperm.xlu1 %5860, %v7051_v36   ;;  %v7061_v24 = vsel %vm871_vm1, %v9335_v37, %v875_v43  ;;  %9607 = vst [vmem:[#allocation115_spill] sm:$0xff] %v7072_v15  ;;  %v1836_v37 = vmul.f32 %v6804_v2, %v7072_v15  ;;  %v7086_v43 = vld [vmem:[%s9324_s1 + $0x10] sm:$0xff]  ;;  %v5731_v58 = vld [vmem:[%s9327_s4 + $0x28] sm:$0xff] }
 0x1dc   : > { %9604 = vst [vmem:[#allocation49_spill] sm:$0xff] %v7046_v4  ;;  %2158 = vperm.xlu0 %5861, %v5936_v3   ;;  %v1835_v41 = vmul.f32 %v6831_v12, %v7061_v24  ;;  %v3194_v4 = vunpack.c.l.b16 %v2090_v26  ;;  %v2821_v3 = vunpack.c.l.b16 %v1493_v8  ;;  %v676_v26 = vadd.f32 %v6694_v45, %v9609_v62 }
 0x1dd   : > { %9605 = vst [vmem:[#allocation48_spill] sm:$0xff] %v7061_v24  ;;  %v7063_v56 = vpop.permute.xlu2 %1950  ;;  %v7067_v38 = vpop.permute.xlu0 %1954  ;;  %v1868_v2 = vpack.c.bf16 %v1836_v37, %v1836_v37 }
 0x1de   : > { %v2847_v21 = vpack.c.b16 %v2822_v55, %v2821_v3  ;;  %v1867_v19 = vpack.c.bf16 %v1835_v41, %v1835_v41  ;;  %9608 = vst [vmem:[#allocation116_spill] sm:$0xff] %v7076_v39  ;;  %v3225_v12 = vpack.c.b16 %v3194_v4, %v3193_v33  ;;  %v9612_v33 = vld [vmem:[#allocation41_spill] sm:$0xff]  ;;  %v765_v4 = vadd.f32 %v6848_v51, %v676_v26  ;;  %v5733_v51 = vld [vmem:[%s9327_s4 + $0x38] sm:$0xff] }
 0x1df   : > { %v674_v27 = vadd.f32 %v6694_v45, %v9612_v33  ;;  %v1472_v55 = vmul.f32 %v9613_v29, %v7076_v39  ;;  %v3004_v37 = vunpack.c.l.b16 %v1868_v2  ;;  %v7118_v2 = vld [vmem:[%s9324_s1 + $0x20] sm:$0xff]  ;;  %v7127_v33 = vpop.f32.mrf.mxu1  ;;  %4142 = vmatpush.bf16.msrb.mxu2 %v5733_v51  ;;  %v9618_v29 = vld [vmem:[#allocation44_spill] sm:$0xff]  ;;  %v872_v39 = vrot.slane %v6872_v34, 7 }
 0x1e0   : > { %v3003_v8 = vunpack.c.l.b16 %v1867_v19  ;;  %v7104_v3 = vmax.f32 %v765_v4, 0.0 }
 0x1e1   : > { %v763_v41 = vadd.f32 %v6837_v11, %v674_v27  ;;  %v1504_v62 = vpack.c.bf16 %v1472_v55, %v1472_v55  ;;  %v679_v11 = vadd.f32 %v6694_v45, %v6864_v16  ;;  %v1503_v16 = vpack.c.bf16 %v1471_v47, %v1471_v47 }
 0x1e2   : > { %9615 = vst [vmem:[#allocation41_spill] sm:$0xff] %v7104_v3  ;;  %v3034_v19 = vpack.c.b16 %v3004_v37, %v3003_v8  ;;  %v1466_v55 = vmul.f32 %v9618_v29, %v7104_v3 }
 0x1e3   : > { %2869 = vrot.lane.b32.xlu2 %v2847_v21, %s6052_s21  ;;  %v7081_v63 = vpop.permute.xlu1 %1830  ;;  %2130 = vperm.xlu1 %5860, %v7086_v43   ;;  %v7111_v26 = vmax.f32 %v763_v41, 0.0  ;;  %v5732_v41 = vld [vmem:[%s9327_s4 + $0x30] sm:$0xff]  ;;  %v2832_v14 = vunpack.c.l.b16 %v1504_v62  ;;  %v2831_v51 = vunpack.c.l.b16 %v1503_v16  ;;  %v9625_v16 = vrot.slane %v6867_v44, 7 }
 0x1e4   : > { %9610 = vst [vmem:[#allocation43_spill] sm:$0xff] %v7081_v63  ;;  %3241 = vrot.lane.b32.xlu0 %v3225_v12, %s6052_s21  ;;  %v681_v12 = vadd.f32 %v6694_v45, %v6890_v42  ;;  %v7124_v42 = vld [vmem:[%s9324_s1 + $0x18] sm:$0xff]  ;;  %v9620_v63 = vld [vmem:[#allocation51_spill] sm:$0xff]  ;;  %4143 = vmatpush.bf16.msrb.mxu2 %v5732_v41  ;;  %v1498_v29 = vpack.c.bf16 %v1466_v55, %v1466_v55 }
 0x1e5   : > { %v7095_v21 = vpop.permute.xlu2 %1962  ;;  %v7097_v57 = vpop.permute.xlu0 %1966  ;;  %9616 = vst [vmem:[#allocation50_spill] sm:$0xff] %v7111_v26  ;;  %v1465_v47 = vmul.f32 %v9620_v63, %v7111_v26  ;;  %v2852_v62 = vpack.c.b16 %v2832_v14, %v2831_v51  ;;  %v7160_v63 = vld [vmem:[%s9324_s1 + $0x30] sm:$0xff] }
 0x1e6   : > { %9617 = vst [vmem:[#allocation57_spill] sm:$0xff] %v7124_v42  ;;  %v770_v4 = vadd.f32 %v6899_v53, %v681_v12  ;;  %v686_v12 = vadd.f32 %v6694_v45, %v6961_v46  ;;  %v7166_v46 = vld [vmem:[%s9324_s1 + $0x28] sm:$0xff] }
 0x1e7   : > { %9623 = vst [vmem:[#allocation119_spill] sm:$0xff] %v7160_v63 }
 0x1e8   : > { %v7145_v53 = vmax.f32 %v770_v4, 0.0  ;;  %9624 = vst [vmem:[#allocation120_spill] sm:$0xff] %v7166_v46  ;;  %v7172_v4 = vsel %vm871_vm1, %v872_v39, %v9625_v16  ;;  %4144 = vmatpush.bf16.msrb.mxu2 %v5731_v58  ;;  %v775_v41 = vadd.f32 %v6981_v13, %v686_v12  ;;  %v5730_v16 = vld [vmem:[%s9327_s4 + $0x20] sm:$0xff] }
 0x1e9   : > { %v1834_v55 = vmul.f32 %v6815_v7, %v7172_v4 }
 0x1ea   : > { %9621 = vst [vmem:[#allocation51_spill] sm:$0xff] %v7145_v53 }
 0x1eb   : > { %2138 = vperm.xlu2 %5862, %v7118_v2   ;;  %2134 = vperm.xlu1 %5860, %v7124_v42  }
 0x1ec   : > { %3051 = vrot.lane.b32.xlu0 %v3034_v19, %s6052_s21  ;;  %v7130_v27 = vpop.permute.xlu1 %1938  ;;  %v768_v19 = vadd.f32 %v6870_v31, %v679_v11  ;;  %v684_v31 = vadd.f32 %v6694_v45, %v6924_v49  ;;  %v1497_v11 = vpack.c.bf16 %v1465_v47, %v1465_v47  ;;  %v9627_v47 = vld [vmem:[#allocation54_spill] sm:$0xff]  ;;  %4145 = vmatpush.bf16.msrb.mxu2 %v5730_v16 }
 0x1ed   : > { %v7133_v8 = vpop.permute.xlu2 %1974  ;;  %v7140_v37 = vpop.permute.xlu0 %1978  ;;  %v1468_v51 = vmul.f32 %v9627_v47, %v7145_v53  ;;  %v1866_v53 = vpack.c.bf16 %v1834_v55, %v1834_v55 }
 0x1ee   : > { %9619 = vst [vmem:[#allocation44_spill] sm:$0xff] %v7140_v37  ;;  %v7153_v3 = vmax.f32 %v768_v19, 0.0  ;;  %v2826_v19 = vunpack.c.l.b16 %v1498_v29  ;;  %v773_v13 = vadd.f32 %v6943_v5, %v684_v31  ;;  %v2825_v12 = vunpack.c.l.b16 %v1497_v11  ;;  %v9629_v29 = vld [vmem:[#allocation53_spill] sm:$0xff]  ;;  %v7208_v31 = vpop.f32.mrf.mxu2 }
 0x1ef   : > { %v1500_v44 = vpack.c.bf16 %v1468_v51, %v1468_v51  ;;  %v887_v5 = vrot.slane %v6991_v54, 7  ;;  %v5942_v11 = vld [vmem:[%s9324_s1 + $0x40] sm:$0xff] }
 0x1f0   : > { %9622 = vst [vmem:[#allocation118_spill] sm:$0xff] %v7153_v3  ;;  %v1467_v47 = vmul.f32 %v9629_v29, %v7153_v3  ;;  %v5943_v51 = vld [vmem:[%s9324_s1 + $0x60] sm:$0xff] }
 0x1f1   : > { %v2828_v29 = vunpack.c.l.b16 %v1500_v44  ;;  %v9637_v44 = vld [vmem:[#allocation47_spill] sm:$0xff] }
 0x1f2   : > { %v1499_v55 = vpack.c.bf16 %v1467_v47, %v1467_v47  ;;  %v9634_v47 = vld [vmem:[#allocation56_spill] sm:$0xff] }
 0x1f3   : > { %2146 = vperm.xlu2 %5862, %v7160_v63   ;;  %2142 = vperm.xlu1 %5860, %v7166_v46   ;;  %v7190_v63 = vpop.f32.mrf.mxu1  ;;  %v7200_v46 = vmax.f32 %v775_v41, 0.0  ;;  %v9358_v41 = vrot.slane %v6954_v10, 7 }
 0x1f4   : > { %2879 = vrot.lane.b32.xlu0 %v2852_v62, %s6052_s21  ;;  %v7175_v49 = vpop.permute.xlu1 %1946  ;;  %v7188_v62 = vsel %vm871_vm1, 0.0, %v872_v39  ;;  %v2849_v39 = vpack.c.b16 %v2826_v19, %v2825_v12  ;;  %v7215_v19 = vpop.f32.mrf.mxu3 }
 0x1f5   : > { %v7180_v14 = vpop.permute.xlu2 %1986  ;;  %v7192_v58 = vpop.permute.xlu0 %1990  ;;  %v1833_v7 = vmul.f32 %v6793_v35, %v7188_v62  ;;  %9630 = vst [vmem:[#allocation53_spill] sm:$0xff] %v7200_v46  ;;  %v7205_v35 = vmax.f32 %v773_v13, 0.0 }
 0x1f6   : > { %9626 = vst [vmem:[#allocation121_spill] sm:$0xff] %v7180_v14  ;;  %v9351_v14 = vrot.slane %v6985_v22, 7 }
 0x1f7   : > { %9628 = vst [vmem:[#allocation54_spill] sm:$0xff] %v7192_v58  ;;  %v5729_v58 = vld [vmem:[%s9327_s4 + $0x18] sm:$0xff]  ;;  %v1865_v34 = vpack.c.bf16 %v1833_v7, %v1833_v7  ;;  %v3002_v7 = vunpack.c.l.b16 %v1866_v53  ;;  %v1469_v3 = vmul.f32 %v9637_v44, %v7205_v35  ;;  %v5727_v44 = vld [vmem:[%s9327_s4 + $0x8] sm:$0xff] }
 0x1f8   : > { %9631 = vst [vmem:[#allocation122_spill] sm:$0xff] %v7205_v35  ;;  %4146 = vmatpush.bf16.msrb.mxu2 %v5729_v58  ;;  %v7225_v13 = vsel %vm871_vm1, %v887_v5, %v9351_v14  ;;  %v7241_v14 = vsel %vm871_vm1, %v9358_v41, %v887_v5  ;;  %v9363_v35 = vrot.slane %v6991_v54, 1 }
 0x1f9   : > { %9632 = vst [vmem:[#allocation123_spill] sm:$0xff] %v7225_v13  ;;  %v3001_v53 = vunpack.c.l.b16 %v1865_v34  ;;  %v1841_v37 = vmul.f32 %v6824_v0, %v7241_v14  ;;  %v1501_v0 = vpack.c.bf16 %v1469_v3, %v1469_v3 }
 0x1fa   : > { %9636 = vst [vmem:[#allocation125_spill] sm:$0xff] %v7241_v14 }
 0x1fb   : > { %2154 = vperm.xlu2 %5862, %v5942_v11   ;;  %2873 = vrot.lane.b32.xlu1 %v2849_v39, %s6052_s21  ;;  %v1470_v39 = vmul.f32 %v9634_v47, %v7200_v46  ;;  %v5728_v11 = vld [vmem:[%s9327_s4 + $0x10] sm:$0xff]  ;;  %v974_v47 = vrot.slane %v6892_v20, 1  ;;  %v986_v46 = vrot.slane %v6985_v22, 1  ;;  %v3033_v34 = vpack.c.b16 %v3002_v7, %v3001_v53 }
 0x1fc   : > { %2170 = vperm.xlu0 %5861, %v5943_v51   ;;  %v7220_v16 = vpop.permute.xlu1 %1958  ;;  %v1842_v51 = vmul.f32 %v6835_v25, %v7225_v13  ;;  %v7249_v25 = vpop.f32.mrf.mxu1  ;;  %4147 = vmatpush.bf16.msrb.mxu2 %v5728_v11  ;;  %v9638_v7 = vrot.slane %v6896_v6, 1 }
 0x1fd   : > { %v7227_v12 = vpop.permute.xlu2 %1998  ;;  %v7236_v58 = vpop.permute.xlu0 %2002  ;;  %v1502_v5 = vpack.c.bf16 %v1470_v39, %v1470_v39  ;;  %v7275_v3 = vsel %vm968_vm0, %v9363_v35, %v986_v46 }
 0x1fe   : > { %9633 = vst [vmem:[#allocation124_spill] sm:$0xff] %v7227_v12  ;;  %v2827_v12 = vunpack.c.l.b16 %v1499_v55  ;;  %v976_v55 = vrot.slane %v6929_v59, 1  ;;  %v1874_v41 = vpack.c.bf16 %v1842_v51, %v1842_v51  ;;  %v7262_v11 = vsel %vm968_vm0, %v9638_v7, %v974_v47  ;;  %v5726_v51 = vld [vmem:[%s9327_s4] sm:$0xff]  ;;  %v700_v6 = vpop.f32.mrf.mxu3 }
 0x1ff   : > { %9635 = vst [vmem:[#allocation56_spill] sm:$0xff] %v7236_v58  ;;  %v9367_v58 = vrot.slane %v7013_v50, 1  ;;  %v2059_v53 = vmul.f32 %v7130_v27, %v7262_v11  ;;  %v2065_v35 = vmul.f32 %v7095_v21, %v7275_v3  ;;  %v2829_v27 = vunpack.c.l.b16 %v1501_v0 }
 0x200   : > { %v2850_v13 = vpack.c.b16 %v2828_v29, %v2827_v12  ;;  %9639 = vst [vmem:[#allocation47_spill] sm:$0xff] %v7262_v11  ;;  %v1873_v12 = vpack.c.bf16 %v1841_v37, %v1841_v37  ;;  %v5944_v29 = vld [vmem:[%s9324_s1 + $0x68] sm:$0xff]  ;;  %4148 = vmatpush.bf16.msrb.mxu2 %v5727_v44  ;;  %v2830_v44 = vunpack.c.l.b16 %v1502_v5  ;;  %v7287_v7 = vsel %vm968_vm0, %v974_v47, %v976_v55 }
 0x201   : > { %9640 = vst [vmem:[#allocation126_spill] sm:$0xff] %v7275_v3  ;;  %v7280_v37 = vsel %vm968_vm0, %v986_v46, %v9367_v58  ;;  %v2060_v46 = vmul.f32 %v7024_v28, %v7287_v7  ;;  %v978_v58 = vrot.slane %v6921_v30, 1  ;;  %v879_v5 = vrot.slane %v6929_v59, 7 }
 0x202   : > { %9641 = vst [vmem:[#allocation127_spill] sm:$0xff] %v7280_v37  ;;  %v2066_v14 = vmul.f32 %v7097_v57, %v7280_v37  ;;  %v881_v47 = vrot.slane %v6921_v30, 7  ;;  %v2091_v21 = vpack.c.bf16 %v2059_v53, %v2059_v53  ;;  %v2851_v3 = vpack.c.b16 %v2830_v44, %v2829_v27  ;;  %v7307_v30 = vld [vmem:[%s9324_s1 + $0x50] sm:$0xff] }
 0x203   : > { %3049 = vrot.lane.b32.xlu2 %v3033_v34, %s6052_s21  ;;  %2875 = vrot.lane.b32.xlu1 %v2850_v13, %s6052_s21  ;;  %v695_v13 = vpop.f32.mrf.mxu2  ;;  %9643 = vst [vmem:[#allocation129_spill] sm:$0xff] %v7287_v7  ;;  %v2097_v37 = vpack.c.bf16 %v2065_v35, %v2065_v35  ;;  %v694_v28 = vadd.f32 %v6694_v45, %v7208_v31  ;;  %v9647_v35 = vrot.slane %v6892_v20, 7 }
 0x204   : > { %2174 = vperm.xlu0 %5861, %v5944_v29   ;;  %v7267_v39 = vpop.permute.xlu1 %1970  ;;  %v3010_v29 = vunpack.c.l.b16 %v1874_v41  ;;  %v3009_v41 = vunpack.c.l.b16 %v1873_v12  ;;  %4149 = vmatpush.bf16.msrb.mxu2 %v5726_v51  ;;  %v789_v57 = vpop.f32.mrf.mxu1  ;;  %v2092_v0 = vpack.c.bf16 %v2060_v46, %v2060_v46  ;;  %v9378_v12 = vrot.slane %v6959_v60, 1 }
 0x205   : > { %v7284_v34 = vpop.permute.xlu2 %2010  ;;  %v7293_v42 = vpop.permute.xlu0 %2014  ;;  %v7312_v51 = vsel %vm968_vm0, %v976_v55, %v978_v58  ;;  %v7320_v31 = vsel %vm871_vm1, %v9647_v35, %v879_v5  ;;  %v3195_v44 = vunpack.c.l.b16 %v2091_v21  ;;  %v9376_v46 = vmov 8  }
 0x206   : > { %9642 = vst [vmem:[#allocation128_spill] sm:$0xff] %v7284_v34  ;;  %v696_v34 = vadd.f32 %v6694_v45, %v695_v13  ;;  %v3037_v11 = vpack.c.b16 %v3010_v29, %v3009_v41  ;;  %v1837_v13 = vmul.f32 %v6842_v17, %v7320_v31  ;;  %v2061_v55 = vmul.f32 %v7175_v49, %v7312_v51 }
 0x207   : > { %9644 = vst [vmem:[#allocation130_spill] sm:$0xff] %v7293_v42  ;;  %v2098_v42 = vpack.c.bf16 %v2066_v14, %v2066_v14  ;;  %v7315_v14 = vsel %vm871_vm1, %v879_v5, %v881_v47  ;;  %v3201_v17 = vunpack.c.l.b16 %v2097_v37  ;;  %v3196_v49 = vunpack.c.l.b16 %v2092_v0 }
 0x208   : > { %9645 = vst [vmem:[#allocation131_spill] sm:$0xff] %v7312_v51  ;;  %v785_v53 = vadd.f32 %v7190_v63, %v696_v34  ;;  %v1838_v27 = vmul.f32 %v6813_v1, %v7315_v14  ;;  %v783_v34 = vadd.f32 %v7127_v33, %v694_v28  ;;  %v883_v21 = vrot.slane %v6959_v60, 7 }
 0x209   : > { %9646 = vst [vmem:[#allocation132_spill] sm:$0xff] %v7315_v14  ;;  %v3202_v5 = vunpack.c.l.b16 %v2098_v42  ;;  %v701_v35 = vadd.f32 %v6694_v45, %v700_v6  ;;  %v3226_v1 = vpack.c.b16 %v3196_v49, %v3195_v44  ;;  %v2093_v37 = vpack.c.bf16 %v2061_v55, %v2061_v55  ;;  %v9659_v49 = vld [vmem:[#allocation10_spill] sm:$0xff] }
 0x20a   : > { %9648 = vst [vmem:[#allocation133_spill] sm:$0xff] %v7320_v31  ;;  %v1870_v42 = vpack.c.bf16 %v1838_v27, %v1838_v27  ;;  %v7356_v0 = vmax.f32 %v783_v34, 0.0 }
 0x20b   : > { %2877 = vrot.lane.b32.xlu2 %v2851_v3, %s6052_s21  ;;  %2162 = vperm.xlu1 %5860, %v7307_v30   ;;  %v3229_v28 = vpack.c.b16 %v3202_v5, %v3201_v17  ;;  %v790_v17 = vadd.f32 %v789_v57, %v701_v35  ;;  %v3197_v5 = vunpack.c.l.b16 %v2093_v37  ;;  %v9662_v57 = vld [vmem:[#allocation58_spill] sm:$0xff]  ;;  %v982_v37 = vrot.slane %v6954_v10, 1 }
 0x20c   : > { %3057 = vrot.lane.b32.xlu0 %v3037_v11, %s6052_s21  ;;  %v7323_v3 = vpop.permute.xlu1 %1982  ;;  %v7336_v11 = vsel %vm968_vm0, %v978_v58, %v9378_v12  ;;  %v1869_v58 = vpack.c.bf16 %v1837_v13, %v1837_v13  ;;  %v7349_v12 = vmax.f32 %v785_v53, 0.0  ;;  %v5946_v13 = vld [vmem:[%s9324_s1 + $0x58] sm:$0xff]  ;;  %v7365_v53 = vsel %vm871_vm1, %v881_v47, %v883_v21  ;;  %v7369_v55 = vpop.f32.mrf.mxu1 }
 0x20d   : > { %v7330_v29 = vpop.permute.xlu2 %2018  ;;  %5865 = vset.pattern.permute.xlu0 %v9376_v46  ;;  %9650 = vst [vmem:[#allocation135_spill] sm:$0xff] %v7336_v11  ;;  %v7340_v63 = vpop.permute.xlu0 %2022  ;;  %v2062_v41 = vmul.f32 %v7063_v56, %v7336_v11  ;;  %v699_v56 = vadd.f32 %v6694_v45, %v7215_v19  ;;  %v9379_v45 = vmov 7   ;;  %v9658_v47 = vld [vmem:[#allocation60_spill] sm:$0xff]  ;;  %v1473_v35 = vmul.f32 %v9662_v57, %v7356_v0 }
 0x20e   : > { %9649 = vst [vmem:[#allocation134_spill] sm:$0xff] %v7330_v29  ;;  %v7347_v46 = vpop.f32.mrf.mxu3  ;;  %v3005_v19 = vunpack.c.l.b16 %v1869_v58  ;;  %v1474_v34 = vmul.f32 %v9658_v47, %v7349_v12  ;;  %v7389_v29 = vmax.f32 %v790_v17, 0.0 }
 0x20f   : > { %9651 = vst [vmem:[#allocation136_spill] sm:$0xff] %v7340_v63  ;;  %v9653_v63 = vrot.slane %v6954_v10, 7  ;;  %v2094_v6 = vpack.c.bf16 %v2062_v41, %v2062_v41  ;;  %v1257_v41 = vmul.f32 0.0, %v9659_v49 }
 0x210   : > { %9652 = vst [vmem:[#allocation137_spill] sm:$0xff] %v7349_v12 }
 0x211   : > { %v7354_v33 = vsel %vm871_vm1, %v883_v21, %v9653_v63  ;;  %9655 = vst [vmem:[#allocation139_spill] sm:$0xff] %v7365_v53  ;;  %v3198_v58 = vunpack.c.l.b16 %v2094_v6  ;;  %v1289_v12 = vpack.c.bf16 %v1257_v41, %v1257_v41  ;;  %v9668_v41 = vld [vmem:[#allocation61_spill] sm:$0xff] }
 0x212   : > { %9654 = vst [vmem:[#allocation138_spill] sm:$0xff] %v7354_v33  ;;  %v1840_v44 = vmul.f32 %v6855_v23, %v7354_v33  ;;  %v9660_v23 = vld [vmem:[#allocation13_spill] sm:$0xff] }
 0x213   : > { %2166 = vperm.xlu2 %5862, %v5946_v13   ;;  %3243 = vrot.lane.b32.xlu1 %v3226_v1, %s6052_s21  ;;  %v1258_v21 = vmul.f32 0.0, %v9660_v23  ;;  %v1839_v1 = vmul.f32 %v6826_v9, %v7365_v53  ;;  %v3006_v13 = vunpack.c.l.b16 %v1870_v42  ;;  %9663 = vst [vmem:[#allocation10_spill] sm:$0xff] %v7389_v29  ;;  %v3227_v49 = vpack.c.b16 %v3198_v58, %v3197_v5  ;;  %v5749_v42 = vld [vmem:[%s9327_s4 + $0xb8] sm:$0xff] }
 0x214   : > { %3249 = vrot.lane.b32.xlu0 %v3229_v28, %s6052_s21  ;;  %v7372_v27 = vpop.permute.xlu1 %1994  ;;  %5863 = vset.pattern.permute.xlu1 %v9379_v45  ;;  %v788_v45 = vadd.f32 %v7249_v25, %v699_v56  ;;  %v1506_v23 = vpack.c.bf16 %v1474_v34, %v1474_v34  ;;  %v1505_v25 = vpack.c.bf16 %v1473_v35, %v1473_v35  ;;  %v9665_v56 = vrot.slane %v6991_v54, 1 }
 0x215   : > { %9656 = vst [vmem:[#allocation140_spill] sm:$0xff] %v7372_v27  ;;  %v7375_v63 = vpop.permute.xlu2 %2026  ;;  %v7383_v28 = vpop.permute.xlu0 %2030  ;;  %v3035_v47 = vpack.c.b16 %v3006_v13, %v3005_v19  ;;  %v1290_v27 = vpack.c.bf16 %v1258_v21, %v1258_v21  ;;  %v1871_v9 = vpack.c.bf16 %v1839_v1, %v1839_v1  ;;  %v1476_v21 = vmul.f32 %v9668_v41, %v7389_v29 }
 0x216   : > { %9657 = vst [vmem:[#allocation141_spill] sm:$0xff] %v7375_v63  ;;  %v1872_v63 = vpack.c.bf16 %v1840_v44, %v1840_v44  ;;  %v705_v11 = vpop.f32.mrf.mxu3  ;;  %v7401_v6 = vsel %vm968_vm0, %v982_v37, %v9665_v56  ;;  %v2834_v34 = vunpack.c.l.b16 %v1506_v23  ;;  %4320 = vmatpush.bf16.msrb.mxu0 %v5749_v42  ;;  %v2729_v1 = vunpack.c.l.b16 %v1289_v12  ;;  %v9672_v42 = vld [vmem:[#allocation52_spill] sm:$0xff]  ;;  %v7430_v12 = vld [vmem:[%s9326_s3] ss:$0 sm:$0xff] }
 0x217   : > { %9661 = vst [vmem:[#allocation60_spill] sm:$0xff] %v7383_v28  ;;  %v7391_v28 = vmax.f32 %v788_v45, 0.0  ;;  %v9667_v45 = vmov 7   ;;  %v2064_v17 = vmul.f32 %v7220_v16, %v7401_v6  ;;  %v2730_v13 = vunpack.c.l.b16 %v1290_v27  ;;  %v794_v16 = vpop.f32.mrf.mxu1 }
 0x218   : > { %9666 = vst [vmem:[#allocation58_spill] sm:$0xff] %v7401_v6  ;;  %v3008_v44 = vunpack.c.l.b16 %v1872_v63  ;;  %v5748_v63 = vld [vmem:[%s9327_s4 + $0xb0] sm:$0xff]  ;;  %v9669_v58 = vrot.slane %v6959_v60, 1  ;;  %v3007_v35 = vunpack.c.l.b16 %v1871_v9  ;;  %v2833_v23 = vunpack.c.l.b16 %v1505_v25 }
 0x219   : > { %9664 = vst [vmem:[#allocation13_spill] sm:$0xff] %v7391_v28  ;;  %v1475_v56 = vmul.f32 %v9672_v42, %v7391_v28  ;;  %v706_v27 = vadd.f32 %v7430_v12, %v705_v11  ;;  %v704_v25 = vadd.f32 %v7430_v12, %v7347_v46  ;;  %v5747_v11 = vld [vmem:[%s9327_s4 + $0xa8] sm:$0xff]  ;;  %v5740_v46 = vld [vmem:[%s9327_s4 + $0x70] sm:$0xff]  ;;  %v9673_v42 = vld [vmem:[#allocation12_spill] sm:$0xff] }
 0x21a   : > { %v7419_v57 = vsel %vm968_vm0, %v9669_v58, %v982_v37  ;;  %v3036_v41 = vpack.c.b16 %v3008_v44, %v3007_v35  ;;  %v2096_v37 = vpack.c.bf16 %v2064_v17, %v2064_v17  ;;  %v2853_v9 = vpack.c.b16 %v2834_v34, %v2833_v23  ;;  %4321 = vmatpush.bf16.msrb.mxu0 %v5748_v63  ;;  %v5746_v23 = vld [vmem:[%s9327_s4 + $0xa0] sm:$0xff] }
 0x21b   : > { %3245 = vrot.lane.b32.xlu2 %v3227_v49, %s6052_s21  ;;  %3053 = vrot.lane.b32.xlu1 %v3035_v47, %s6052_s21  ;;  %9670 = vst [vmem:[#allocation61_spill] sm:$0xff] %v7419_v57  ;;  %v2063_v49 = vmul.f32 %v7067_v38, %v7419_v57  ;;  %v1508_v58 = vpack.c.bf16 %v1476_v21, %v1476_v21  ;;  %v5741_v38 = vld [vmem:[%s9327_s4 + $0x78] sm:$0xff] }
 0x21c   : > { %2506 = vperm.xlu0 %5865, %v7051_v36   ;;  %v7404_v19 = vpop.permute.xlu1 %2006  ;;  %5864 = vset.pattern.permute.xlu2 %v9667_v45  ;;  %v1507_v35 = vpack.c.bf16 %v1475_v56, %v1475_v56  ;;  %v795_v21 = vadd.f32 %v794_v16, %v706_v27  ;;  %v3200_v63 = vunpack.c.l.b16 %v2096_v37  ;;  %v1260_v56 = vmul.f32 %v9673_v42, %v7172_v4 }
 0x21d   : > { %v7409_v5 = vpop.permute.xlu2 %2861  ;;  %v7421_v47 = vpop.permute.xlu0 %2038  ;;  %v2095_v44 = vpack.c.bf16 %v2063_v49, %v2063_v49  ;;  %4231 = vmatpush.bf16.msrb.mxu3 %v5741_v38  ;;  %v2836_v49 = vunpack.c.l.b16 %v1508_v58  ;;  %v891_v16 = vrot.slane %v7013_v50, 7  ;;  %v793_v27 = vadd.f32 %v7369_v55, %v704_v25  ;;  %v5739_v55 = vld [vmem:[%s9327_s4 + $0x68] sm:$0xff] }
 0x21e   : > { %9671 = vst [vmem:[#allocation142_spill] sm:$0xff] %v7421_v47  ;;  %v2761_v47 = vpack.c.b16 %v2730_v13, %v2729_v1  ;;  %v7443_v17 = vpop.f32.mrf.mxu3  ;;  %4322 = vmatpush.bf16.msrb.mxu0 %v5747_v11  ;;  %v7466_v11 = vmax.f32 %v795_v21, 0.0  ;;  %v1292_v4 = vpack.c.bf16 %v1260_v56, %v1260_v56  ;;  %v9677_v25 = vrot.slane %v6985_v22, 7  ;;  %v5744_v56 = vld [vmem:[%s9327_s4 + $0x90] sm:$0xff] }
 0x21f   : > { %v3199_v37 = vunpack.c.l.b16 %v2095_v44  ;;  %v7464_v38 = vpop.f32.mrf.mxu1 }
 0x220   : > { %9676 = vst [vmem:[#allocation12_spill] sm:$0xff] %v7466_v11  ;;  %v7475_v44 = vsel %vm871_vm1, %v9677_v25, %v891_v16 }
 0x221   : > { %4232 = vmatpush.bf16.msrb.mxu3 %v5740_v46  ;;  %v1843_v21 = vmul.f32 %v6878_v40, %v7475_v44 }
 0x222   : > { %4323 = vmatpush.bf16.msrb.mxu0 %v5746_v23 }
 0x223   : > { %3055 = vrot.lane.b32.xlu2 %v3036_v41, %s6052_s21  ;;  %2881 = vrot.lane.b32.xlu1 %v2853_v9, %s6052_s21  ;;  %v2835_v9 = vunpack.c.l.b16 %v1507_v35  ;;  %v5745_v35 = vld [vmem:[%s9327_s4 + $0x98] sm:$0xff] }
 0x224   : > { %5866 = vset.pattern.permute.xlu0 %v9667_v45  ;;  %v2858_v34 = vpop.permute.xlu1 %2857 }
 0x225   : > { %v7449_v1 = vpop.permute.xlu2 %2863  ;;  %2322 = vperm.xlu0 %5866, %v7086_v43   ;;  %v3548_v13 = vsel %vm3545_vm2, %v2761_v47, %v2858_v34  ;;  %v7458_v41 = vpop.permute.xlu0 %2046  ;;  %v9675_v47 = vld [vmem:[#allocation9_spill] sm:$0xff]  ;;  %v3228_v34 = vpack.c.b16 %v3200_v63, %v3199_v37  ;;  %v2854_v28 = vpack.c.b16 %v2836_v49, %v2835_v9  ;;  %4233 = vmatpush.bf16.msrb.mxu3 %v5739_v55  ;;  %v990_v55 = vrot.slane %v7004_v18, 1 }
 0x226   : > { %9674 = vst [vmem:[#allocation52_spill] sm:$0xff] %v7458_v41  ;;  %4150 = vmatmul.bf16.vlgmr.msrb.gmra.mxu2 %v3548_v13  ;;  %v1259_v58 = vmul.f32 %v9675_v47, %v7188_v62  ;;  %v9387_v13 = vrot.slane %v7004_v18, 7  ;;  %v7477_v62 = vmax.f32 %v793_v27, 0.0  ;;  %v5738_v49 = vld [vmem:[%s9327_s4 + $0x60] sm:$0xff]  ;;  %4324 = vmatpush.bf16.msrb.mxu0 %v5745_v35  ;;  %v2732_v27 = vunpack.c.l.b16 %v1292_v4  ;;  %v710_v37 = vpop.f32.mrf.mxu3 }
 0x227   : > { %9678 = vst [vmem:[#allocation9_spill] sm:$0xff] %v7475_v44  ;;  %v9683_v47 = vld [vmem:[#allocation97_spill] sm:$0xff]  ;;  %v1875_v35 = vpack.c.bf16 %v1843_v21, %v1843_v21  ;;  %v711_v4 = vadd.f32 %v7430_v12, %v710_v37  ;;  %v5743_v21 = vld [vmem:[%s9327_s4 + $0x88] sm:$0xff] }
 0x228   : > { %9679 = vst [vmem:[#allocation143_spill] sm:$0xff] %v7477_v62  ;;  %v1291_v46 = vpack.c.bf16 %v1259_v58, %v1259_v58  ;;  %v7500_v40 = vsel %vm871_vm1, %v891_v16, %v9387_v13  ;;  %v9684_v58 = vld [vmem:[#allocation63_spill] sm:$0xff]  ;;  %v9388_v16 = vrot.slane %v6936_v61, 1  ;;  %v799_v13 = vpop.f32.mrf.mxu1 }
 0x229   : > { %4234 = vmatpush.bf16.msrb.mxu3 %v5738_v49  ;;  %v3011_v49 = vunpack.c.l.b16 %v1875_v35 }
 0x22a   : > { %v2731_v25 = vunpack.c.l.b16 %v1291_v46  ;;  %4325 = vmatpush.bf16.msrb.mxu0 %v5744_v56 }
 0x22b   : > { %2883 = vrot.lane.b32.xlu2 %v2854_v28, %s6052_s21  ;;  %3247 = vrot.lane.b32.xlu1 %v3228_v34, %s6052_s21  ;;  %v9680_v28 = vld [vmem:[#allocation55_spill] sm:$0xff]  ;;  %v1477_v34 = vmul.f32 %v9684_v58, %v7477_v62  ;;  %v709_v58 = vadd.f32 %v7430_v12, %v7443_v17  ;;  %v800_v12 = vadd.f32 %v799_v13, %v711_v4  ;;  %v9689_v13 = vld [vmem:[#allocation6_spill] sm:$0xff] }
 0x22c   : > { %v2860_v63 = vpop.permute.xlu1 %2859  ;;  %v1478_v42 = vmul.f32 %v9680_v28, %v7466_v11  ;;  %9681 = vst [vmem:[#allocation55_spill] sm:$0xff] %v7500_v40  ;;  %v2762_v41 = vpack.c.b16 %v2732_v27, %v2731_v25  ;;  %v7543_v25 = vsel %vm968_vm0, %v990_v55, %v9388_v16 }
 0x22d   : > { %v7489_v23 = vpop.permute.xlu2 %2865  ;;  %2330 = vperm.xlu0 %5866, %v7118_v2   ;;  %v7502_v9 = vpop.permute.xlu0 %2054  ;;  %v1844_v2 = vmul.f32 %v9683_v47, %v7500_v40  ;;  %v5737_v47 = vld [vmem:[%s9327_s4 + $0x58] sm:$0xff]  ;;  %v1509_v46 = vpack.c.bf16 %v1477_v34, %v1477_v34  ;;  %v5742_v34 = vld [vmem:[%s9327_s4 + $0x80] sm:$0xff]  ;;  %9688 = vst [vmem:[#allocation145_spill] sm:$0xff] %v7543_v25 }
 0x22e   : > { %9682 = vst [vmem:[#allocation144_spill] sm:$0xff] %v7502_v9  ;;  %v1510_v28 = vpack.c.bf16 %v1478_v42, %v1478_v42  ;;  %v9685_v42 = vrot.slane %v7013_v50, 1  ;;  %4235 = vmatpush.bf16.msrb.mxu3 %v5737_v47  ;;  %v3552_v37 = vsel %vm3545_vm2, %v2762_v41, %v2860_v63  ;;  %4326 = vmatpush.bf16.msrb.mxu0 %v5743_v21  ;;  %v9389_v21 = vrot.slane %v6926_v32, 7 }
 0x22f   : > { %v1876_v9 = vpack.c.bf16 %v1844_v2, %v1844_v2  ;;  %v798_v41 = vadd.f32 %v7464_v38, %v709_v58  ;;  %v2068_v63 = vmul.f32 %v7133_v8, %v7543_v25  ;;  %v2837_v4 = vunpack.c.l.b16 %v1509_v46  ;;  %v5735_v38 = vld [vmem:[%s9327_s4 + $0x48] sm:$0xff] }
 0x230   : > { %v7524_v56 = vsel %vm968_vm0, %v9685_v42, %v990_v55  ;;  %v2838_v2 = vunpack.c.l.b16 %v1510_v28  ;;  %v9691_v28 = vld [vmem:[#allocation5_spill] sm:$0xff]  ;;  %v7555_v42 = vmax.f32 %v800_v12, 0.0 }
 0x231   : > { %9686 = vst [vmem:[#allocation97_spill] sm:$0xff] %v7524_v56  ;;  %v1261_v47 = vmul.f32 %v9691_v28, %v7061_v24  ;;  %v7561_v58 = vmax.f32 %v798_v41, 0.0  ;;  %v2100_v46 = vpack.c.bf16 %v2068_v63, %v2068_v63  ;;  %v5734_v12 = vld [vmem:[%s9327_s4 + $0x40] sm:$0xff]  ;;  %v9698_v41 = vrot.slane %v7004_v18, 7  ;;  %v9700_v28 = vld [vmem:[#allocation99_spill] sm:$0xff] }
 0x232   : > { %9692 = vst [vmem:[#allocation5_spill] sm:$0xff] %v7555_v42  ;;  %v2855_v16 = vpack.c.b16 %v2838_v2, %v2837_v4  ;;  %4327 = vmatpush.bf16.msrb.mxu0 %v5742_v34 }
 0x233   : > { %2318 = vperm.xlu2 %5864, %v6972_v52   ;;  %2314 = vperm.xlu1 %5863, %v7051_v36   ;;  %v5736_v52 = vld [vmem:[%s9327_s4 + $0x50] sm:$0xff]  ;;  %v2067_v36 = vmul.f32 %v7267_v39, %v7524_v56  ;;  %v1262_v39 = vmul.f32 %v9689_v13, %v7072_v15  ;;  %9693 = vst [vmem:[#allocation146_spill] sm:$0xff] %v7561_v58  ;;  %v9702_v15 = vld [vmem:[#allocation57_spill] sm:$0xff] }
 0x234   : > { %v7526_v27 = vpop.permute.xlu1 %2034  ;;  %4236 = vmatpush.bf16.msrb.mxu3 %v5736_v52 }
 0x235   : > { %9687 = vst [vmem:[#allocation63_spill] sm:$0xff] %v7526_v27  ;;  %v7533_v17 = vpop.permute.xlu2 %2867  ;;  %2342 = vperm.xlu0 %5866, %v7021_v48   ;;  %v3012_v48 = vunpack.c.l.b16 %v1876_v9  ;;  %v2099_v13 = vpack.c.bf16 %v2067_v36, %v2067_v36  ;;  %v895_v9 = vrot.slane %v6936_v61, 7  ;;  %v1294_v8 = vpack.c.bf16 %v1262_v39, %v1262_v39 }
 0x236   : > { %v7547_v35 = vpop.permute.xlu0 %2126  ;;  %4155 = vmatmul.bf16.gmra.mxu2 %v3552_v37  ;;  %v1293_v36 = vpack.c.bf16 %v1261_v47, %v1261_v47  ;;  %v9696_v37 = vld [vmem:[#allocation107_spill] sm:$0xff]  ;;  %v3204_v47 = vunpack.c.l.b16 %v2100_v46 }
 0x237   : > { %9690 = vst [vmem:[#allocation6_spill] sm:$0xff] %v7547_v35  ;;  %v3038_v55 = vpack.c.b16 %v3012_v48, %v3011_v49  ;;  %v7568_v49 = vsel %vm871_vm1, %v895_v9, %v9389_v21  ;;  %v3203_v34 = vunpack.c.l.b16 %v2099_v13  ;;  %v7584_v63 = vsel %vm871_vm1, %v9698_v41, %v895_v9 }
 0x238   : > { %9694 = vst [vmem:[#allocation147_spill] sm:$0xff] %v7568_v49  ;;  %4237 = vmatpush.bf16.msrb.mxu3 %v5735_v38  ;;  %v1846_v2 = vmul.f32 %v9696_v37, %v7568_v49  ;;  %v2734_v38 = vunpack.c.l.b16 %v1294_v8  ;;  %v9701_v37 = vld [vmem:[#allocation64_spill] sm:$0xff]  ;;  %v9391_v21 = vrot.slane %v7111_v26, 1  ;;  %v2733_v27 = vunpack.c.l.b16 %v1293_v36 }
 0x239   : > { %9699 = vst [vmem:[#allocation107_spill] sm:$0xff] %v7584_v63  ;;  %v1479_v13 = vmul.f32 %v9701_v37, %v7561_v58  ;;  %v994_v9 = vrot.slane %v6926_v32, 1 }
 0x23b   : > { %3059 = vrot.lane.b32.xlu2 %v3038_v55, %s6052_s21  ;;  %2885 = vrot.lane.b32.xlu1 %v2855_v16, %s6052_s21  ;;  %v9697_v16 = vld [vmem:[#allocation66_spill] sm:$0xff]  ;;  %v1845_v55 = vmul.f32 %v9700_v28, %v7584_v63  ;;  %v2763_v28 = vpack.c.b16 %v2734_v38, %v2733_v27  ;;  %v1511_v46 = vpack.c.bf16 %v1479_v13, %v1479_v13 }
 0x23c   : > { %v7570_v52 = vpop.permute.xlu1 %2042  ;;  %v1480_v48 = vmul.f32 %v9697_v16, %v7555_v42  ;;  %4238 = vmatpush.bf16.msrb.mxu3 %v5734_v12  ;;  %v3230_v16 = vpack.c.b16 %v3204_v47, %v3203_v34  ;;  %v7599_v8 = vsel %vm968_vm0, %v994_v9, %v9391_v21  ;;  %v9709_v47 = vld [vmem:[#allocation15_spill] sm:$0xff]  ;;  %v9711_v21 = vld [vmem:[#allocation16_spill] sm:$0xff] }
 0x23d   : > { %9695 = vst [vmem:[#allocation148_spill] sm:$0xff] %v7570_v52  ;;  %v7577_v39 = vpop.permute.xlu2 %2869  ;;  %v1878_v52 = vpack.c.bf16 %v1846_v2, %v1846_v2  ;;  %v1877_v41 = vpack.c.bf16 %v1845_v55, %v1845_v55  ;;  %v2070_v36 = vmul.f32 %v7323_v3, %v7599_v8  ;;  %v3556_v34 = vsel %vm3545_vm2, %v2763_v28, %v7409_v5  ;;  %v9710_v3 = vld [vmem:[#allocation44_spill] sm:$0xff] }
 0x23e   : > { %v7586_v4 = vpop.permute.xlu0 %2871  ;;  %v1512_v35 = vpack.c.bf16 %v1480_v48, %v1480_v48  ;;  %9703 = vst [vmem:[#allocation66_spill] sm:$0xff] %v7599_v8  ;;  %v1263_v5 = vmul.f32 %v9711_v21, %v7320_v31  ;;  %v9713_v21 = vld [vmem:[#allocation101_spill] sm:$0xff] }
 0x23f   : > { %v3014_v12 = vunpack.c.l.b16 %v1878_v52  ;;  %v1264_v52 = vmul.f32 %v9709_v47, %v7315_v14  ;;  %v3013_v38 = vunpack.c.l.b16 %v1877_v41  ;;  %v9722_v14 = vld [vmem:[#allocation68_spill] sm:$0xff] }
 0x240   : > { %v2840_v48 = vunpack.c.l.b16 %v1512_v35  ;;  %v9712_v35 = vld [vmem:[#allocation41_spill] sm:$0xff]  ;;  %v1295_v41 = vpack.c.bf16 %v1263_v5, %v1263_v5 }
 0x241   : > { %v9392_v28 = vrot.slane %v9712_v35, 7 }
 0x243   : > { %3251 = vrot.lane.b32.xlu2 %v3230_v16, %s6052_s21  ;;  %2326 = vperm.xlu1 %5863, %v9702_v15   ;;  %v9706_v15 = vrot.slane %v6936_v61, 1  ;;  %v2839_v16 = vunpack.c.l.b16 %v1511_v46 }
 0x244   : > { %v7601_v37 = vpop.permute.xlu1 %2050 }
 0x245   : > { %9704 = vst [vmem:[#allocation99_spill] sm:$0xff] %v7601_v37  ;;  %v7605_v2 = vpop.permute.xlu2 %2138  ;;  %v7612_v27 = vsel %vm968_vm0, %v9706_v15, %v994_v9  ;;  %v3039_v37 = vpack.c.b16 %v3014_v12, %v3013_v38  ;;  %v2856_v9 = vpack.c.b16 %v2840_v48, %v2839_v16  ;;  %v899_v15 = vrot.slane %v7111_v26, 7 }
 0x246   : > { %9705 = vst [vmem:[#allocation64_spill] sm:$0xff] %v7605_v2  ;;  %v7614_v55 = vpop.permute.xlu0 %2150  ;;  %4160 = vmatmul.bf16.gmra.mxu2 %v3556_v34  ;;  %v2069_v13 = vmul.f32 %v9710_v3, %v7612_v27  ;;  %v2102_v2 = vpack.c.bf16 %v2070_v36, %v2070_v36 }
 0x247   : > { %9707 = vst [vmem:[#allocation57_spill] sm:$0xff] %v7612_v27  ;;  %v7629_v46 = vsel %vm871_vm1, %v899_v15, %v9392_v28 }
 0x248   : > { %9708 = vst [vmem:[#allocation149_spill] sm:$0xff] %v7614_v55  ;;  %v1296_v55 = vpack.c.bf16 %v1264_v52, %v1264_v52  ;;  %v2101_v34 = vpack.c.bf16 %v2069_v13, %v2069_v13  ;;  %v1848_v47 = vmul.f32 %v9713_v21, %v7629_v46  ;;  %v3206_v12 = vunpack.c.l.b16 %v2102_v2  ;;  %v9716_v52 = vld [vmem:[#allocation103_spill] sm:$0xff] }
 0x249   : > { %v1897_v38 = vpack.c.bf16 %v9716_v52, %v9716_v52  ;;  %v9718_v13 = vrot.slane %v6926_v32, 7  ;;  %v2735_v52 = vunpack.c.l.b16 %v1295_v41 }
 0x24a   : > { %v3205_v21 = vunpack.c.l.b16 %v2101_v34  ;;  %v2736_v28 = vunpack.c.l.b16 %v1296_v55  ;;  %v1880_v24 = vpack.c.bf16 %v1848_v47, %v1848_v47 }
 0x24b   : > { %3061 = vrot.lane.b32.xlu2 %v3039_v37, %s6052_s21  ;;  %2887 = vrot.lane.b32.xlu1 %v2856_v9, %s6052_s21  ;;  %v9717_v37 = vld [vmem:[#allocation102_spill] sm:$0xff]  ;;  %v7644_v16 = vsel %vm871_vm1, %v9718_v13, %v899_v15  ;;  %v9723_v15 = vld [vmem:[#allocation120_spill] sm:$0xff] }
 0x24c   : > { %v1898_v3 = vpack.c.bf16 %v9717_v37, %v9717_v37  ;;  %v9720_v9 = vld [vmem:[#allocation98_spill] sm:$0xff]  ;;  %v3231_v58 = vpack.c.b16 %v3206_v12, %v3205_v21  ;;  %v3113_v37 = vunpack.c.l.b16 %v1897_v38  ;;  %v2764_v13 = vpack.c.b16 %v2736_v28, %v2735_v52 }
 0x24d   : > { %v7633_v36 = vpop.permute.xlu2 %2146  ;;  %v7635_v48 = vpop.permute.xlu1 %2122  ;;  %v1847_v2 = vmul.f32 %v9720_v9, %v7644_v16  ;;  %v3016_v9 = vunpack.c.l.b16 %v1880_v24  ;;  %v9727_v24 = vld [vmem:[#allocation7_spill] sm:$0xff] }
 0x24e   : > { %9714 = vst [vmem:[#allocation15_spill] sm:$0xff] %v7633_v36  ;;  %v7646_v5 = vpop.permute.xlu0 %2158  ;;  %v9721_v36 = vld [vmem:[#allocation59_spill] sm:$0xff]  ;;  %v3114_v42 = vunpack.c.l.b16 %v1898_v3 }
 0x24f   : > { %9715 = vst [vmem:[#allocation44_spill] sm:$0xff] %v7635_v48  ;;  %v1641_v31 = vmul.f32 0.0, %v9721_v36  ;;  %v1642_v48 = vmul.f32 0.0, %v9722_v14  ;;  %v1879_v62 = vpack.c.bf16 %v1847_v2, %v1847_v2  ;;  %v3560_v14 = vsel %vm3545_vm2, %v2764_v13, %v7449_v1  ;;  %v9726_v36 = vld [vmem:[#allocation19_spill] sm:$0xff] }
 0x250   : > { %9719 = vst [vmem:[#allocation16_spill] sm:$0xff] %v7646_v5  ;;  %v3145_v41 = vpack.c.b16 %v3114_v42, %v3113_v37  ;;  %v9728_v1 = vmov 8  }
 0x251   : > { %v1673_v5 = vpack.c.bf16 %v1641_v31, %v1641_v31  ;;  %v1674_v11 = vpack.c.bf16 %v1642_v48, %v1642_v48  ;;  %v3015_v12 = vunpack.c.l.b16 %v1879_v62  ;;  %v1265_v48 = vmul.f32 %v9727_v24, %v7365_v53  ;;  %v5948_v62 = vld [vmem:[%s9324_s1 + $0x8] sm:$0xff] }
 0x253   : > { %3253 = vrot.lane.b32.xlu2 %v3231_v58, %s6052_s21  ;;  %2334 = vperm.xlu1 %5863, %v9723_v15   ;;  %v1266_v58 = vmul.f32 %v9726_v36, %v7354_v33  ;;  %v2921_v28 = vunpack.c.l.b16 %v1673_v5  ;;  %v2922_v31 = vunpack.c.l.b16 %v1674_v11  ;;  %v3040_v3 = vpack.c.b16 %v3016_v9, %v3015_v12  ;;  %v9730_v9 = vld [vmem:[#allocation40_spill] sm:$0xff]  ;;  %v9733_v12 = vld [vmem:[#allocation70_spill] sm:$0xff] }
 0x254   : > { %v1297_v21 = vpack.c.bf16 %v1265_v48, %v1265_v48  ;;  %v9736_v48 = vld [vmem:[#allocation119_spill] sm:$0xff] }
 0x255   : > { %v7654_v34 = vpop.permute.xlu2 %2154  ;;  %v7656_v55 = vpop.permute.xlu1 %2130  ;;  %v1298_v2 = vpack.c.bf16 %v1266_v58, %v1266_v58  ;;  %v2953_v42 = vpack.c.b16 %v2922_v31, %v2921_v28  ;;  %v9734_v58 = vld [vmem:[#allocation118_spill] sm:$0xff]  ;;  %v9735_v31 = vld [vmem:[#allocation51_spill] sm:$0xff] }
 0x256   : > { %9724 = vst [vmem:[#allocation41_spill] sm:$0xff] %v7654_v34  ;;  %v3242_v47 = vpop.permute.xlu0 %3241  ;;  %4165 = vmatmul.bf16.gmra.mxu2 %v3560_v14  ;;  %v9731_v14 = vld [vmem:[#allocation62_spill] sm:$0xff]  ;;  %v2737_v28 = vunpack.c.l.b16 %v1297_v21  ;;  %v9406_v24 = vrot.slane %v9735_v31, 7  ;;  %v9740_v21 = vld [vmem:[#allocation111_spill] sm:$0xff] }
 0x257   : > { %9725 = vst [vmem:[#allocation101_spill] sm:$0xff] %v7656_v55  ;;  %v3676_v38 = vsel %vm3545_vm2, %v3145_v41, %v3242_v47  ;;  %v2738_v13 = vunpack.c.l.b16 %v1298_v2  ;;  %v1644_v41 = vmul.f32 %v9731_v14, %v9730_v9  ;;  %v9732_v47 = vld [vmem:[#allocation46_spill] sm:$0xff] }
 0x258   : > { %4328 = vmatmul.bf16.vlgmr.msrb.gmra.mxu0 %v3676_v38  ;;  %v1643_v36 = vmul.f32 %v9733_v12, %v9732_v47  ;;  %v903_v38 = vrot.slane %v9734_v58, 7 }
 0x25a   : > { %v1675_v34 = vpack.c.bf16 %v1643_v36, %v1643_v36  ;;  %v7700_v36 = vsel %vm871_vm1, %v903_v38, %v9406_v24 }
 0x25b   : > { %3063 = vrot.lane.b32.xlu2 %v3040_v3, %s6052_s21  ;;  %5867 = vset.pattern.permute.xlu1 %v9728_v1  ;;  %v2765_v3 = vpack.c.b16 %v2738_v13, %v2737_v28  ;;  %v9741_v13 = vld [vmem:[#allocation123_spill] sm:$0xff]  ;;  %9743 = vst [vmem:[#allocation59_spill] sm:$0xff] %v7700_v36 }
 0x25c   : > { %2510 = vperm.xlu1 %5867, %v5948_v62   ;;  %v1676_v62 = vpack.c.bf16 %v1644_v41, %v1644_v41  ;;  %v9742_v41 = vld [vmem:[#allocation8_spill] sm:$0xff] }
 0x25d   : > { %v3050_v52 = vpop.permute.xlu2 %3049  ;;  %v7670_v5 = vpop.permute.xlu1 %2134  ;;  %v3564_v9 = vsel %vm3545_vm2, %v2765_v3, %v7489_v23  ;;  %v1268_v12 = vmul.f32 %v9742_v41, %v9741_v13  ;;  %v9745_v23 = vld [vmem:[#allocation125_spill] sm:$0xff]  ;;  %v9746_v3 = vld [vmem:[#allocation18_spill] sm:$0xff] }
 0x25e   : > { %9729 = vst [vmem:[#allocation103_spill] sm:$0xff] %v7670_v5  ;;  %v3052_v11 = vpop.permute.xlu0 %3051  ;;  %v3612_v37 = vsel %vm3545_vm2, %v2953_v42, %v3050_v52  ;;  %v9737_v42 = vrot.slane %v9712_v35, 7  ;;  %v2924_v28 = vunpack.c.l.b16 %v1676_v62 }
 0x25f   : > { %4239 = vmatmul.bf16.vlgmr.msrb.gmra.mxu3 %v3612_v37  ;;  %v1300_v33 = vpack.c.bf16 %v1268_v12, %v1268_v12 }
 0x260   : > { %v7683_v2 = vsel %vm871_vm1, %v9737_v42, %v903_v38  ;;  %v9744_v42 = vld [vmem:[#allocation100_spill] sm:$0xff] }
 0x261   : > { %9738 = vst [vmem:[#allocation102_spill] sm:$0xff] %v7683_v2  ;;  %v1849_v14 = vmul.f32 %v9740_v21, %v7683_v2  ;;  %v1850_v53 = vmul.f32 %v9744_v42, %v7700_v36  ;;  %v2740_v24 = vunpack.c.l.b16 %v1300_v33  ;;  %v9748_v33 = vld [vmem:[#allocation21_spill] sm:$0xff] }
 0x263   : > { %2338 = vperm.xlu2 %5864, %v9736_v48   ;;  %v2923_v48 = vunpack.c.l.b16 %v1675_v34  ;;  %v1881_v21 = vpack.c.bf16 %v1849_v14, %v1849_v14  ;;  %v1882_v55 = vpack.c.bf16 %v1850_v53, %v1850_v53 }
 0x265   : > { %v7685_v52 = vpop.permute.xlu2 %2877  ;;  %v7687_v37 = vpop.permute.xlu1 %2142  ;;  %v3017_v34 = vunpack.c.l.b16 %v1881_v21 }
 0x266   : > { %9739 = vst [vmem:[#allocation98_spill] sm:$0xff] %v7687_v37  ;;  %v7693_v47 = vpop.permute.xlu0 %2879  ;;  %4170 = vmatmul.bf16.gmra.mxu2 %v3564_v9  ;;  %v1267_v37 = vmul.f32 %v9746_v3, %v9745_v23  ;;  %v2954_v9 = vpack.c.b16 %v2924_v28, %v2923_v48  ;;  %v3018_v3 = vunpack.c.l.b16 %v1882_v55  ;;  %v1270_v55 = vmul.f32 %v9748_v33, %v7500_v40 }
 0x268   : > { %v1299_v41 = vpack.c.bf16 %v1267_v37, %v1267_v37  ;;  %v3616_v42 = vsel %vm3545_vm2, %v2954_v9, %v3052_v11  ;;  %v3041_v12 = vpack.c.b16 %v3018_v3, %v3017_v34  ;;  %v1302_v34 = vpack.c.bf16 %v1270_v55, %v1270_v55  ;;  %v9753_v3 = vld [vmem:[#allocation106_spill] sm:$0xff]  ;;  %v9755_v55 = vld [vmem:[#allocation65_spill] sm:$0xff] }
 0x26a   : > { %v2739_v14 = vunpack.c.l.b16 %v1299_v41  ;;  %v2742_v33 = vunpack.c.l.b16 %v1302_v34 }
 0x26b   : > { %5868 = vset.pattern.permute.xlu2 %v9728_v1 }
 0x26c   : > { %2514 = vperm.xlu2 %5868, %v7086_v43   ;;  %v2766_v28 = vpack.c.b16 %v2740_v24, %v2739_v14  ;;  %v9749_v24 = vld [vmem:[#allocation22_spill] sm:$0xff]  ;;  %v1900_v14 = vpack.c.bf16 %v6892_v20, %v6892_v20 }
 0x26d   : > { %v7708_v13 = vpop.permute.xlu2 %2166  ;;  %v7710_v38 = vpop.permute.xlu1 %2873  ;;  %v1269_v9 = vmul.f32 %v9749_v24, %v7475_v44  ;;  %v9757_v24 = vld [vmem:[#allocation73_spill] sm:$0xff] }
 0x26e   : > { %9747 = vst [vmem:[#allocation68_spill] sm:$0xff] %v7708_v13  ;;  %v2171_v62 = vpop.permute.xlu0 %2170  ;;  %v3568_v37 = vsel %vm3545_vm2, %v2766_v28, %v7533_v17  ;;  %v7734_v17 = vld [vmem:[%s9324_s1 + $0x48] sm:$0xff]  ;;  %v3116_v40 = vunpack.c.l.b16 %v1900_v14 }
 0x26f   : > { %4244 = vmatmul.bf16.gmra.mxu3 %v3616_v42  ;;  %v2261_v23 = vmul.f32 %v2171_v62, %v7644_v16  ;;  %9752 = vst [vmem:[#allocation7_spill] sm:$0xff] %v7734_v17 }
 0x271   : > { %v2293_v48 = vpack.c.bf16 %v2261_v23, %v2261_v23  ;;  %v1899_v23 = vpack.c.bf16 %v9753_v3, %v9753_v3 }
 0x273   : > { %v7727_v62 = vunpack.c.l.b16 %v2293_v48  ;;  %v1646_v48 = vmul.f32 %v9755_v55, %v7287_v7  ;;  %v3115_v13 = vunpack.c.l.b16 %v1899_v23 }
 0x274   : > { %3065 = vrot.lane.b32.xlu2 %v3041_v12, %s6052_s21  ;;  %v1301_v12 = vpack.c.bf16 %v1269_v9, %v1269_v9 }
 0x275   : > { %v7715_v43 = vpop.permute.xlu2 %3245  ;;  %v7717_v53 = vpop.permute.xlu1 %2875  ;;  %5870 = vset.pattern.permute.xlu2 %v9667_v45  ;;  %9750 = vst [vmem:[#allocation120_spill] sm:$0xff] %v7727_v62  ;;  %v1678_v29 = vpack.c.bf16 %v1646_v48, %v1646_v48  ;;  %v3146_v28 = vpack.c.b16 %v3116_v40, %v3115_v13  ;;  %v9759_v48 = vld [vmem:[#allocation11_spill] sm:$0xff] }
 0x276   : > { %v2175_v11 = vpop.permute.xlu0 %2174  ;;  %4175 = vmatmul.bf16.gmra.mxu2 %v3568_v37  ;;  %v2741_v44 = vunpack.c.l.b16 %v1301_v12  ;;  %v1271_v40 = vmul.f32 %v9759_v48, %v7584_v63 }
 0x277   : > { %v2262_v21 = vmul.f32 %v2175_v11, %v7629_v46  ;;  %v2926_v12 = vunpack.c.l.b16 %v1678_v29 }
 0x278   : > { %v2767_v5 = vpack.c.b16 %v2742_v33, %v2741_v44  ;;  %v9758_v44 = vld [vmem:[#allocation25_spill] sm:$0xff] }
 0x279   : > { %v2294_v41 = vpack.c.bf16 %v2262_v21, %v2262_v21  ;;  %v9756_v21 = vld [vmem:[#allocation47_spill] sm:$0xff]  ;;  %v1272_v14 = vmul.f32 %v9758_v44, %v7568_v49 }
 0x27a   : > { %v3572_v55 = vsel %vm3545_vm2, %v2767_v5, %v7577_v39  ;;  %v1303_v5 = vpack.c.bf16 %v1271_v40, %v1271_v40 }
 0x27b   : > { %v7729_v42 = vunpack.c.l.b16 %v2294_v41  ;;  %v1645_v41 = vmul.f32 %v9757_v24, %v9756_v21  ;;  %v1304_v13 = vpack.c.bf16 %v1272_v14, %v1272_v14  ;;  %v1901_v24 = vpack.c.bf16 %v6929_v59, %v6929_v59  ;;  %v9762_v14 = vld [vmem:[#allocation135_spill] sm:$0xff] }
 0x27c   : > { %2350 = vperm.xlu2 %5870, %v7734_v17  }
 0x27d   : > { %9751 = vst [vmem:[#allocation19_spill] sm:$0xff] %v7729_v42  ;;  %v7743_v37 = vpop.permute.xlu2 %3055  ;;  %v7745_v11 = vpop.permute.xlu1 %2162  ;;  %v1677_v9 = vpack.c.bf16 %v1645_v41, %v1645_v41  ;;  %v9760_v41 = vld [vmem:[#allocation110_spill] sm:$0xff]  ;;  %v3117_v48 = vunpack.c.l.b16 %v1901_v24  ;;  %v2743_v42 = vunpack.c.l.b16 %v1303_v5 }
 0x27e   : > { %9754 = vst [vmem:[#allocation40_spill] sm:$0xff] %v7745_v11  ;;  %v7751_v17 = vpop.permute.xlu0 %3057  ;;  %v1902_v39 = vpack.c.bf16 %v9760_v41, %v9760_v41  ;;  %v9764_v24 = vld [vmem:[#allocation14_spill] sm:$0xff] }
 0x27f   : > { %v2925_v33 = vunpack.c.l.b16 %v1677_v9  ;;  %v2744_v9 = vunpack.c.l.b16 %v1304_v13 }
 0x280   : > { %v3118_v40 = vunpack.c.l.b16 %v1902_v39  ;;  %v1274_v39 = vmul.f32 %v9764_v24, %v7629_v46  ;;  %v1904_v46 = vpack.c.bf16 %v6954_v10, %v6954_v10 }
 0x281   : > { %v2768_v49 = vpack.c.b16 %v2744_v9, %v2743_v42  ;;  %v5950_v42 = vld [vmem:[%s9324_s1 + $0x30] sm:$0xff] }
 0x282   : > { %v3147_v21 = vpack.c.b16 %v3118_v40, %v3117_v48  ;;  %v1306_v9 = vpack.c.bf16 %v1274_v39, %v1274_v39 }
 0x283   : > { %v3576_v13 = vsel %vm3545_vm2, %v2768_v49, %v7586_v4  ;;  %v9765_v49 = vld [vmem:[#allocation24_spill] sm:$0xff] }
 0x284   : > { %5872 = vset.pattern.permute.xlu2 %v9728_v1  ;;  %v1273_v4 = vmul.f32 %v9765_v49, %v7644_v16  ;;  %v2746_v48 = vunpack.c.l.b16 %v1306_v9  ;;  %v9767_v16 = vld [vmem:[#allocation75_spill] sm:$0xff] }
 0x285   : > { %2526 = vperm.xlu2 %5872, %v9723_v15   ;;  %v7755_v34 = vpop.permute.xlu2 %2883  ;;  %v3244_v62 = vpop.permute.xlu1 %3243  ;;  %v2955_v15 = vpack.c.b16 %v2926_v12, %v2925_v33  ;;  %v9763_v12 = vld [vmem:[#allocation76_spill] sm:$0xff]  ;;  %v1650_v40 = vmul.f32 %v9767_v16, %v7401_v6  ;;  %v9780_v6 = vld [vmem:[#allocation71_spill] sm:$0xff] }
 0x286   : > { %4180 = vmatmul.bf16.gmra.mxu2 %v3572_v55  ;;  %v3680_v23 = vsel %vm3545_vm2, %v3146_v28, %v3244_v62  ;;  %v7769_v55 = vpop.permute.xlu0 %3249  ;;  %v1648_v33 = vmul.f32 %v9763_v12, %v9762_v14 }
 0x287   : > { %4333 = vmatmul.bf16.gmra.mxu0 %v3680_v23  ;;  %v9761_v23 = vld [vmem:[#allocation72_spill] sm:$0xff] }
 0x288   : > { %v1647_v44 = vmul.f32 %v9761_v23, %v7312_v51  ;;  %v1680_v63 = vpack.c.bf16 %v1648_v33, %v1648_v33 }
 0x28a   : > { %v1679_v11 = vpack.c.bf16 %v1647_v44, %v1647_v44 }
 0x28c   : > { %v2927_v5 = vunpack.c.l.b16 %v1679_v11  ;;  %v9766_v11 = vld [vmem:[#allocation67_spill] sm:$0xff] }
 0x28d   : > { %5873 = vset.pattern.permute.xlu2 %v9667_v45  ;;  %v2319_v62 = vpop.permute.xlu2 %2318  ;;  %v3054_v28 = vpop.permute.xlu1 %3053  ;;  %v1649_v33 = vmul.f32 %v9766_v11, %v7419_v57 }
 0x28e   : > { %2354 = vperm.xlu2 %5873, %v7307_v30   ;;  %v3620_v29 = vsel %vm3545_vm2, %v2955_v15, %v3054_v28  ;;  %v3684_v15 = vsel %vm3545_vm2, %v3147_v21, %v7715_v43  ;;  %v2928_v28 = vunpack.c.l.b16 %v1680_v63  ;;  %v1903_v43 = vpack.c.bf16 %v6959_v60, %v6959_v60 }
 0x28f   : > { %4249 = vmatmul.bf16.gmra.mxu3 %v3620_v29  ;;  %v7791_v29 = vpop.permute.xlu0 %2506  ;;  %v1305_v21 = vpack.c.bf16 %v1273_v4, %v1273_v4  ;;  %v2442_v39 = vmul.f32 %v2319_v62, %v6892_v20  ;;  %v1682_v4 = vpack.c.bf16 %v1650_v40, %v1650_v40 }
 0x290   : > { %v2956_v23 = vpack.c.b16 %v2928_v28, %v2927_v5  ;;  %v1681_v5 = vpack.c.bf16 %v1649_v33, %v1649_v33  ;;  %v998_v28 = vrot.slane %v9712_v35, 1 }
 0x291   : > { %v2745_v24 = vunpack.c.l.b16 %v1305_v21  ;;  %v9768_v21 = vld [vmem:[#allocation27_spill] sm:$0xff] }
 0x292   : > { %v3624_v63 = vsel %vm3545_vm2, %v2956_v23, %v7743_v37  ;;  %v9417_v37 = vrot.slane %v9734_v58, 1  ;;  %v2929_v62 = vunpack.c.l.b16 %v1681_v5  ;;  %v1276_v33 = vmul.f32 %v9768_v21, %v7700_v36  ;;  %v9778_v36 = vld [vmem:[#allocation122_spill] sm:$0xff] }
 0x293   : > { %v2769_v49 = vpack.c.b16 %v2746_v48, %v2745_v24  ;;  %v9769_v48 = vrot.slane %v7111_v26, 1 }
 0x294   : > { %v7827_v40 = vsel %vm968_vm0, %v998_v28, %v9417_v37 }
 0x295   : > { %v7777_v7 = vpop.permute.xlu2 %3059  ;;  %v7779_v30 = vpop.permute.xlu1 %2881  ;;  %v3580_v11 = vsel %vm3545_vm2, %v2769_v49, %v7710_v38  ;;  %v7822_v16 = vsel %vm968_vm0, %v9769_v48, %v998_v28  ;;  %9771 = vst [vmem:[#allocation46_spill] sm:$0xff] %v7827_v40  ;;  %v2930_v38 = vunpack.c.l.b16 %v1682_v4  ;;  %v1906_v28 = vpack.c.bf16 %v6985_v22, %v6985_v22 }
 0x296   : > { %5874 = vset.pattern.permute.xlu2 %v9728_v1  ;;  %4185 = vmatmul.bf16.gmra.mxu2 %v3576_v13  ;;  %v3119_v13 = vunpack.c.l.b16 %v1903_v43  ;;  %v2474_v43 = vpack.c.bf16 %v2442_v39, %v2442_v39  ;;  %9770 = vst [vmem:[#allocation62_spill] sm:$0xff] %v7822_v16  ;;  %v9774_v39 = vld [vmem:[#allocation28_spill] sm:$0xff] }
 0x297   : > { %2530 = vperm.xlu2 %5874, %v5950_v42   ;;  %4338 = vmatmul.bf16.gmra.mxu0 %v3684_v15  ;;  %v3120_v15 = vunpack.c.l.b16 %v1904_v46  ;;  %v2323_v42 = vpop.permute.xlu0 %2322  ;;  %v1275_v5 = vmul.f32 %v9774_v39, %v7683_v2  ;;  %v907_v2 = vrot.slane %v9778_v36, 7 }
 0x299   : > { %v3148_v9 = vpack.c.b16 %v3120_v15, %v3119_v13  ;;  %v1307_v37 = vpack.c.bf16 %v1275_v5, %v1275_v5  ;;  %v3122_v5 = vunpack.c.l.b16 %v1906_v28  ;;  %v9426_v28 = vrot.slane %v9778_v36, 1 }
 0x29b   : > { %v2747_v57 = vunpack.c.l.b16 %v1307_v37 }
 0x29d   : > { %v7799_v44 = vpop.permute.xlu2 %3251  ;;  %v3248_v12 = vpop.permute.xlu1 %3247 }
 0x29e   : > { %v3688_v20 = vsel %vm3545_vm2, %v3148_v9, %v3248_v12  ;;  %v9773_v12 = vld [vmem:[#allocation54_spill] sm:$0xff]  ;;  %v3386_v9 = vunpack.c.l.b16 %v2474_v43 }
 0x29f   : > { %4254 = vmatmul.bf16.gmra.mxu3 %v3624_v63  ;;  %5877 = vset.pattern.permute.xlu2 %v9667_v45  ;;  %v2072_v15 = vmul.f32 %v9773_v12, %v7827_v40  ;;  %v7839_v48 = vpop.permute.xlu0 %2330 }
 0x2a1   : > { %v2104_v21 = vpack.c.bf16 %v2072_v15, %v2072_v15 }
 0x2a3   : > { %v3208_v39 = vunpack.c.l.b16 %v2104_v21 }
 0x2a5   : > { %v7811_v23 = vpop.permute.xlu2 %3061  ;;  %v2315_v63 = vpop.permute.xlu1 %2314 }
 0x2a6   : > { %v2441_v46 = vmul.f32 %v2315_v63, %v9753_v3  ;;  %4190 = vmatmul.bf16.gmra.mxu2 %v3580_v11  ;;  %v9772_v3 = vld [vmem:[#allocation121_spill] sm:$0xff]  ;;  %v1308_v11 = vpack.c.bf16 %v1276_v33, %v1276_v33  ;;  %v1905_v33 = vpack.c.bf16 %v6991_v54, %v6991_v54 }
 0x2a7   : > { %4343 = vmatmul.bf16.gmra.mxu0 %v3688_v20  ;;  %v2071_v13 = vmul.f32 %v9772_v3, %v7822_v16  ;;  %v2957_v20 = vpack.c.b16 %v2930_v38, %v2929_v62  ;;  %v9776_v62 = vld [vmem:[#allocation79_spill] sm:$0xff] }
 0x2a8   : > { %v2473_v24 = vpack.c.bf16 %v2441_v46, %v2441_v46  ;;  %v3121_v51 = vunpack.c.l.b16 %v1905_v33 }
 0x2a9   : > { %v7835_v49 = vpop.f32.mrf.mxu2  ;;  %v2103_v4 = vpack.c.bf16 %v2071_v13, %v2071_v13  ;;  %v3628_v43 = vsel %vm3545_vm2, %v2957_v20, %v7751_v17  ;;  %v2748_v13 = vunpack.c.l.b16 %v1308_v11  ;;  %v2443_v20 = vmul.f32 %v2323_v42, %v6929_v59 }
 0x2aa   : > { %v3385_v63 = vunpack.c.l.b16 %v2473_v24  ;;  %v9775_v24 = vld [vmem:[#allocation126_spill] sm:$0xff]  ;;  %v1002_v11 = vrot.slane %v9735_v31, 1  ;;  %v3149_v21 = vpack.c.b16 %v3122_v5, %v3121_v51  ;;  %v9787_v5 = vld [vmem:[#allocation31_spill] sm:$0xff] }
 0x2ab   : > { %v1651_v38 = vmul.f32 %v9776_v62, %v9775_v24  ;;  %v3207_v15 = vunpack.c.l.b16 %v2103_v4  ;;  %v9782_v62 = vrot.slane %v9735_v31, 7 }
 0x2ac   : > { %v3417_v3 = vpack.c.b16 %v3386_v9, %v3385_v63  ;;  %v9777_v9 = vld [vmem:[#allocation53_spill] sm:$0xff] }
 0x2ad   : > { %v7841_v12 = vpop.permute.xlu2 %3253  ;;  %v7843_v46 = vpop.permute.xlu1 %2885  ;;  %v9425_v63 = vrot.slane %v9777_v9, 7  ;;  %v1683_v26 = vpack.c.bf16 %v1651_v38, %v1651_v38  ;;  %v3232_v4 = vpack.c.b16 %v3208_v39, %v3207_v15  ;;  %v7864_v37 = vsel %vm871_vm1, %v9782_v62, %v907_v2 }
 0x2ae   : > { %3433 = vrot.lane.b32.xlu1 %v3417_v3, %s6052_s21  ;;  %v9779_v3 = vld [vmem:[#allocation127_spill] sm:$0xff]  ;;  %9783 = vst [vmem:[#allocation119_spill] sm:$0xff] %v7864_v37  ;;  %v2475_v38 = vpack.c.bf16 %v2443_v20, %v2443_v20  ;;  %v2343_v39 = vpop.permute.xlu0 %2342  ;;  %v9789_v20 = vld [vmem:[#allocation140_spill] sm:$0xff] }
 0x2af   : > { %4259 = vmatmul.bf16.gmra.mxu3 %v3628_v43  ;;  %v1652_v14 = vmul.f32 %v9780_v6, %v9779_v3  ;;  %v2770_v43 = vpack.c.b16 %v2748_v13, %v2747_v57  ;;  %v7869_v6 = vsel %vm871_vm1, %v907_v2, %v9425_v63  ;;  %v3692_v13 = vsel %vm3545_vm2, %v3149_v21, %v7769_v55  ;;  %v9791_v21 = vld [vmem:[#allocation124_spill] sm:$0xff] }
 0x2b0   : > { %9784 = vst [vmem:[#allocation111_spill] sm:$0xff] %v7869_v6  ;;  %v2931_v15 = vunpack.c.l.b16 %v1683_v26  ;;  %v9785_v2 = vrot.slane %v9734_v58, 1  ;;  %v9790_v26 = vld [vmem:[#allocation17_spill] sm:$0xff] }
 0x2b1   : > { %v7856_v17 = vpop.f32.mrf.mxu2  ;;  %v1684_v59 = vpack.c.bf16 %v1652_v14, %v1652_v14  ;;  %v3584_v57 = vsel %vm3545_vm2, %v2770_v43, %v7717_v53  ;;  %v1278_v53 = vmul.f32 %v9787_v5, %v7869_v6 }
 0x2b2   : > { %9781 = vst [vmem:[#allocation70_spill] sm:$0xff] %v7856_v17  ;;  %v7882_v14 = vsel %vm968_vm0, %v9785_v2, %v1002_v11 }
 0x2b3   : > { %9786 = vst [vmem:[#allocation8_spill] sm:$0xff] %v7882_v14  ;;  %v2073_v43 = vmul.f32 %v9789_v20, %v7882_v14  ;;  %v2932_v5 = vunpack.c.l.b16 %v1684_v59  ;;  %v1310_v63 = vpack.c.bf16 %v1278_v53, %v1278_v53 }
 0x2b5   : > { %v7871_v42 = vpop.permute.xlu2 %3063  ;;  %v2327_v33 = vpop.permute.xlu1 %2326  ;;  %v2958_v17 = vpack.c.b16 %v2932_v5, %v2931_v15  ;;  %v9797_v5 = vld [vmem:[#allocation105_spill] sm:$0xff] }
 0x2b6   : > { %v2444_v51 = vmul.f32 %v2327_v33, %v9760_v41  ;;  %3255 = vrot.lane.b32.xlu1 %v3232_v4, %s6052_s21  ;;  %4195 = vmatmul.bf16.gmra.mxu2 %v3584_v57  ;;  %v7889_v41 = vsel %vm968_vm0, %v1002_v11, %v9426_v28  ;;  %v1277_v4 = vmul.f32 %v9790_v26, %v7864_v37  ;;  %v3387_v57 = vunpack.c.l.b16 %v2475_v38  ;;  %v9792_v38 = vld [vmem:[#allocation82_spill] sm:$0xff] }
 0x2b7   : > { %4348 = vmatmul.bf16.gmra.mxu0 %v3692_v13  ;;  %9788 = vst [vmem:[#allocation100_spill] sm:$0xff] %v7889_v41  ;;  %v2074_v62 = vmul.f32 %v9791_v21, %v7889_v41  ;;  %v2448_v13 = vmul.f32 %v2343_v39, %v6985_v22  ;;  %v2105_v11 = vpack.c.bf16 %v2073_v43, %v2073_v43  ;;  %v5951_v22 = vld [vmem:[%s9324_s1 + $0x18] sm:$0xff]  ;;  %v2750_v43 = vunpack.c.l.b16 %v1310_v63 }
 0x2b8   : > { %v2476_v55 = vpack.c.bf16 %v2444_v51, %v2444_v51  ;;  %v1309_v3 = vpack.c.bf16 %v1277_v4, %v1277_v4  ;;  %v1908_v26 = vpack.c.bf16 %v7004_v18, %v7004_v18  ;;  %v3632_v59 = vsel %vm3545_vm2, %v2958_v17, %v7777_v7 }
 0x2b9   : > { %v7897_v33 = vpop.f32.mrf.mxu2  ;;  %v2106_v20 = vpack.c.bf16 %v2074_v62, %v2074_v62  ;;  %v2480_v24 = vpack.c.bf16 %v2448_v13, %v2448_v13  ;;  %v1654_v15 = vmul.f32 %v9792_v38, %v7543_v25  ;;  %v1907_v39 = vpack.c.bf16 %v7013_v50, %v7013_v50  ;;  %v9794_v62 = vld [vmem:[#allocation116_spill] sm:$0xff]  ;;  %v9795_v13 = vld [vmem:[#allocation78_spill] sm:$0xff] }
 0x2ba   : > { %v3388_v2 = vunpack.c.l.b16 %v2476_v55  ;;  %v2749_v4 = vunpack.c.l.b16 %v1309_v3  ;;  %v3124_v17 = vunpack.c.l.b16 %v1908_v26  ;;  %v9799_v50 = vrot.slane %v9794_v62, 7 }
 0x2bb   : > { %v1686_v25 = vpack.c.bf16 %v1654_v15, %v1654_v15 }
 0x2bc   : > { %v3418_v28 = vpack.c.b16 %v3388_v2, %v3387_v57  ;;  %v1653_v2 = vmul.f32 %v9795_v13, %v7524_v56  ;;  %v2771_v57 = vpack.c.b16 %v2750_v43, %v2749_v4  ;;  %v9804_v4 = vld [vmem:[#allocation30_spill] sm:$0xff] }
 0x2bd   : > { %v2339_v51 = vpop.permute.xlu2 %2338  ;;  %v7903_v14 = vpop.permute.xlu1 %2887 }
 0x2be   : > { %v2447_v21 = vmul.f32 %v2339_v51, %v6991_v54  ;;  %3435 = vrot.lane.b32.xlu0 %v3418_v28, %s6052_s21  ;;  %2518 = vperm.xlu1 %5867, %v5951_v22   ;;  %v9793_v54 = vld [vmem:[#allocation42_spill] sm:$0xff]  ;;  %v3209_v28 = vunpack.c.l.b16 %v2105_v11  ;;  %v1851_v51 = vmul.f32 %v9797_v5, %v7864_v37  ;;  %v3210_v22 = vunpack.c.l.b16 %v2106_v20 }
 0x2bf   : > { %4264 = vmatmul.bf16.gmra.mxu3 %v3632_v59  ;;  %v1852_v53 = vmul.f32 %v9793_v54, %v7869_v6  ;;  %v3392_v59 = vunpack.c.l.b16 %v2480_v24  ;;  %v9798_v54 = vld [vmem:[#allocation117_spill] sm:$0xff]  ;;  %v3123_v11 = vunpack.c.l.b16 %v1907_v39  ;;  %v1685_v56 = vpack.c.bf16 %v1653_v2, %v1653_v2 }
 0x2c0   : > { %v2479_v55 = vpack.c.bf16 %v2447_v21, %v2447_v21  ;;  %v911_v63 = vrot.slane %v9798_v54, 7  ;;  %v3233_v3 = vpack.c.b16 %v3210_v22, %v3209_v28  ;;  %v3588_v24 = vsel %vm3545_vm2, %v2771_v57, %v7685_v52  ;;  %v7947_v52 = vld [vmem:[%s9324_s1 + $0x40] sm:$0xff] }
 0x2c1   : > { %v7920_v7 = vpop.f32.mrf.mxu2  ;;  %v1884_v21 = vpack.c.bf16 %v1852_v53, %v1852_v53  ;;  %v3150_v26 = vpack.c.b16 %v3124_v17, %v3123_v11  ;;  %v9801_v20 = vrot.slane %v9777_v9, 7  ;;  %v2934_v39 = vunpack.c.l.b16 %v1686_v25  ;;  %v9803_v53 = vld [vmem:[#allocation20_spill] sm:$0xff] }
 0x2c2   : > { %9796 = vst [vmem:[#allocation18_spill] sm:$0xff] %v7920_v7  ;;  %v3391_v38 = vunpack.c.l.b16 %v2479_v55  ;;  %v7928_v13 = vsel %vm871_vm1, %v911_v63, %v9799_v50  ;;  %v1883_v7 = vpack.c.bf16 %v1851_v51, %v1851_v51  ;;  %v2933_v25 = vunpack.c.l.b16 %v1685_v56  ;;  %v7965_v56 = vld [vmem:[%s9324_s1 + $0x68] sm:$0xff] }
 0x2c3   : > { %9800 = vst [vmem:[#allocation21_spill] sm:$0xff] %v7928_v13  ;;  %v7937_v15 = vsel %vm871_vm1, %v9801_v20, %v911_v63  ;;  %v3696_v50 = vsel %vm3545_vm2, %v3150_v26, %v7799_v44  ;;  %v3020_v43 = vunpack.c.l.b16 %v1884_v21  ;;  %v1910_v17 = vpack.c.bf16 %v6926_v32, %v6926_v32  ;;  %v7971_v21 = vpop.f32.mrf.mxu3  ;;  %v9806_v26 = vld [vmem:[#allocation137_spill] sm:$0xff] }
 0x2c4   : > { %v3420_v6 = vpack.c.b16 %v3392_v59, %v3391_v38  ;;  %9802 = vst [vmem:[#allocation22_spill] sm:$0xff] %v7937_v15  ;;  %v1279_v57 = vmul.f32 %v9804_v4, %v7937_v15  ;;  %v3019_v44 = vunpack.c.l.b16 %v1883_v7  ;;  %v2959_v22 = vpack.c.b16 %v2934_v39, %v2933_v25  ;;  %v9807_v20 = vld [vmem:[#allocation81_spill] sm:$0xff]  ;;  %v9809_v4 = vld [vmem:[#allocation74_spill] sm:$0xff] }
 0x2c5   : > { %v2335_v28 = vpop.permute.xlu1 %2334  ;;  %v2445_v59 = vmul.f32 %v7839_v48, %v6959_v60  ;;  %v1909_v38 = vpack.c.bf16 %v6936_v61, %v6936_v61  ;;  %v1008_v11 = vrot.slane %v9798_v54, 1  ;;  %v3126_v60 = vunpack.c.l.b16 %v1910_v17  ;;  %9805 = vst [vmem:[#allocation106_spill] sm:$0xff] %v7971_v21 }
 0x2c6   : > { %3439 = vrot.lane.b32.xlu2 %v3420_v6, %s6052_s21  ;;  %3257 = vrot.lane.b32.xlu0 %v3233_v3, %s6052_s21  ;;  %v1280_v6 = vmul.f32 %v9803_v53, %v7928_v13  ;;  %v2446_v2 = vmul.f32 %v2335_v28, %v6954_v10  ;;  %v3042_v51 = vpack.c.b16 %v3020_v43, %v3019_v44  ;;  %v1006_v3 = vrot.slane %v9777_v9, 1 }
 0x2c7   : > { %5869 = vset.pattern.permute.xlu1 %v9667_v45  ;;  %4200 = vmatmul.bf16.gmra.mxu2 %v3588_v24  ;;  %v1311_v63 = vpack.c.bf16 %v1279_v57, %v1279_v57  ;;  %v3636_v10 = vsel %vm3545_vm2, %v2959_v22, %v7811_v23  ;;  %v9434_v24 = vrot.slane %v9806_v26, 7  ;;  %v2477_v39 = vpack.c.bf16 %v2445_v59, %v2445_v59  ;;  %v5954_v23 = vld [vmem:[%s9324_s1 + $0x20] sm:$0xff] }
 0x2c8   : > { %2346 = vperm.xlu1 %5869, %v7947_v52   ;;  %4353 = vmatmul.bf16.gmra.mxu0 %v3696_v50  ;;  %v1312_v5 = vpack.c.bf16 %v1280_v6, %v1280_v6  ;;  %v2478_v7 = vpack.c.bf16 %v2446_v2, %v2446_v2  ;;  %v1656_v50 = vmul.f32 %v9807_v20, %v7599_v8  ;;  %v3125_v6 = vunpack.c.l.b16 %v1909_v38 }
 0x2c9   : > { %v7950_v55 = vpop.f32.mrf.mxu2  ;;  %v2751_v43 = vunpack.c.l.b16 %v1311_v63  ;;  %v915_v28 = vrot.slane %v7356_v0, 7  ;;  %v1655_v57 = vmul.f32 %v9809_v4, %v7612_v27  ;;  %v7987_v44 = vsel %vm968_vm0, %v1006_v3, %v1008_v11  ;;  %v9817_v4 = vld [vmem:[#allocation32_spill] sm:$0xff] }
 0x2ca   : > { %v2752_v48 = vunpack.c.l.b16 %v1312_v5  ;;  %9810 = vst [vmem:[#allocation73_spill] sm:$0xff] %v7987_v44  ;;  %v2076_v25 = vmul.f32 %v7404_v19, %v7987_v44  ;;  %v3390_v2 = vunpack.c.l.b16 %v2478_v7  ;;  %v3151_v17 = vpack.c.b16 %v3126_v60, %v3125_v6 }
 0x2cb   : > { %v9811_v5 = vrot.slane %v9778_v36, 1  ;;  %v1010_v22 = vrot.slane %v9794_v62, 1  ;;  %v9433_v59 = vrot.slane %v7356_v0, 1  ;;  %v8001_v63 = vsel %vm871_vm1, %v915_v28, %v9434_v24 }
 0x2cc   : > { %v2772_v38 = vpack.c.b16 %v2752_v48, %v2751_v43  ;;  %9812 = vst [vmem:[#allocation25_spill] sm:$0xff] %v8001_v63  ;;  %v1688_v7 = vpack.c.bf16 %v1656_v50, %v1656_v50  ;;  %v3389_v60 = vunpack.c.l.b16 %v2477_v39  ;;  %v9814_v20 = vrot.slane %v9794_v62, 7  ;;  %v8014_v48 = vld [vmem:[%s9324_s1 + $0x58] sm:$0xff]  ;;  %v9816_v43 = vld [vmem:[#allocation7_spill] sm:$0xff] }
 0x2cd   : > { %v2108_v50 = vpack.c.bf16 %v2076_v25, %v2076_v25  ;;  %v9820_v25 = vld [vmem:[#allocation128_spill] sm:$0xff] }
 0x2ce   : > { %2366 = vperm.xlu2 %5877, %v7965_v56   ;;  %3067 = vrot.lane.b32.xlu0 %v3042_v51, %s6052_s21  ;;  %v7994_v51 = vsel %vm968_vm0, %v9811_v5, %v1006_v3  ;;  %v8008_v3 = vsel %vm871_vm1, %v9814_v20, %v915_v28  ;;  %v3592_v6 = vsel %vm3545_vm2, %v2772_v38, %v7693_v47  ;;  %v9821_v38 = vld [vmem:[#allocation130_spill] sm:$0xff] }
 0x2cf   : > { %4269 = vmatmul.bf16.gmra.mxu3 %v3636_v10  ;;  %v9813_v10 = vld [vmem:[#allocation56_spill] sm:$0xff]  ;;  %9815 = vst [vmem:[#allocation11_spill] sm:$0xff] %v8008_v3  ;;  %v3419_v39 = vpack.c.b16 %v3390_v2, %v3389_v60  ;;  %v3700_v28 = vsel %vm3545_vm2, %v3151_v17, %v7841_v12  ;;  %v8025_v5 = vsel %vm968_vm0, %v1008_v11, %v1010_v22  ;;  %v2936_v17 = vunpack.c.l.b16 %v1688_v7  ;;  %v9822_v11 = vld [vmem:[#allocation33_spill] sm:$0xff] }
 0x2d0   : > { %5871 = vset.pattern.permute.xlu1 %v9728_v1  ;;  %v2075_v19 = vmul.f32 %v9813_v10, %v7994_v51  ;;  %9818 = vst [vmem:[#allocation110_spill] sm:$0xff] %v8025_v5  ;;  %v8030_v10 = vsel %vm968_vm0, %v1010_v22, %v9433_v59  ;;  %v2077_v2 = vmul.f32 %v9820_v25, %v8025_v5  ;;  %v9824_v22 = vld [vmem:[#allocation109_spill] sm:$0xff] }
 0x2d1   : > { %2522 = vperm.xlu1 %5871, %v5954_v23   ;;  %v7981_v53 = vpop.f32.mrf.mxu2  ;;  %v1687_v23 = vpack.c.bf16 %v1655_v57, %v1655_v57  ;;  %v1282_v57 = vmul.f32 %v9817_v4, %v8001_v63  ;;  %9819 = vst [vmem:[#allocation72_spill] sm:$0xff] %v8030_v10  ;;  %v2078_v60 = vmul.f32 %v9821_v38, %v8030_v10  ;;  %v9825_v4 = vld [vmem:[#allocation104_spill] sm:$0xff]  ;;  %v8051_v7 = vld [vmem:[%s9328_s5] ss:$0 sm:$0xff] }
 0x2d2   : > { %9808 = vst [vmem:[#allocation65_spill] sm:$0xff] %v7981_v53  ;;  %v2107_v47 = vpack.c.bf16 %v2075_v19, %v2075_v19  ;;  %v1281_v20 = vmul.f32 %v9822_v11, %v8008_v3  ;;  %v1854_v19 = vmul.f32 %v9824_v22, %v7928_v13  ;;  %v1853_v25 = vmul.f32 %v9825_v4, %v7937_v15  ;;  %v9826_v53 = vld [vmem:[#allocation10_spill] sm:$0xff]  ;;  %v9828_v22 = vld [vmem:[#allocation77_spill] sm:$0xff]  ;;  %v8084_v15 = vpop.permute.xlu2 %2514 }
 0x2d3   : > { %v1314_v38 = vpack.c.bf16 %v1282_v57, %v1282_v57  ;;  %v2109_v59 = vpack.c.bf16 %v2077_v2, %v2077_v2  ;;  %v2110_v24 = vpack.c.bf16 %v2078_v60, %v2078_v60  ;;  %v9440_v8 = vrot.slane %v9826_v53, 7  ;;  %v5956_v57 = vld [vmem:[%s9324_s1 + $0x38] sm:$0xff] }
 0x2d4   : > { %v1313_v37 = vpack.c.bf16 %v1281_v20, %v1281_v20  ;;  %v1885_v2 = vpack.c.bf16 %v1853_v25, %v1853_v25  ;;  %v4152_v25 = vadd.f32 %v8051_v7, %v7835_v49  ;;  %v5757_v49 = vld [vmem:[%s9327_s4 + $0xf8] sm:$0xff] }
 0x2d5   : > { %v2754_v60 = vunpack.c.l.b16 %v1314_v38  ;;  %4409 = vmatpush.bf16.msra.mxu1 %v5757_v49 }
 0x2d6   : > { %5879 = vset.pattern.permute.xlu2 %v9728_v1  ;;  %2358 = vperm.xlu0 %5866, %v8014_v48  }
 0x2d7   : > { %2542 = vperm.xlu2 %5879, %v9816_v43   ;;  %4205 = vmatmul.bf16.gmra.mxu2 %v3592_v6  ;;  %v8041_v6 = vpop.f32.mrf.mxu3  ;;  %v2935_v43 = vunpack.c.l.b16 %v1687_v23  ;;  %v1886_v23 = vpack.c.bf16 %v1854_v19, %v1854_v19  ;;  %v8067_v19 = vld [vmem:[%s9324_s1 + $0x70] sm:$0xff] }
 0x2d8   : > { %4358 = vmatmul.bf16.gmra.mxu0 %v3700_v28  ;;  %9823 = vst [vmem:[#allocation76_spill] sm:$0xff] %v8041_v6  ;;  %v3212_v28 = vunpack.c.l.b16 %v2108_v50  ;;  %v9837_v6 = vld [vmem:[#allocation113_spill] sm:$0xff] }
 0x2d9   : > { %3437 = vrot.lane.b32.xlu1 %v3419_v39, %s6052_s21  ;;  %v8037_v12 = vpop.f32.mrf.mxu2  ;;  %v3211_v39 = vunpack.c.l.b16 %v2107_v47  ;;  %v2960_v11 = vpack.c.b16 %v2936_v17, %v2935_v43  ;;  %v9827_v17 = vld [vmem:[#allocation13_spill] sm:$0xff]  ;;  %v1658_v43 = vmul.f32 %v9828_v22, %v7827_v40  ;;  %v4329_v40 = vpop.f32.mrf.mxu0 }
 0x2da   : > { %5876 = vset.pattern.permute.xlu1 %v9667_v45  ;;  %v919_v20 = vrot.slane %v9827_v17, 7 }
 0x2db   : > { %v3234_v50 = vpack.c.b16 %v3212_v28, %v3211_v39  ;;  %v3640_v47 = vsel %vm3545_vm2, %v2960_v11, %v7871_v42  ;;  %v9829_v28 = vld [vmem:[#allocation45_spill] sm:$0xff]  ;;  %v3213_v39 = vunpack.c.l.b16 %v2109_v59  ;;  %v3214_v42 = vunpack.c.l.b16 %v2110_v24  ;;  %v9833_v24 = vld [vmem:[#allocation108_spill] sm:$0xff] }
 0x2dc   : > { %v1855_v4 = vmul.f32 %v9829_v28, %v8008_v3  ;;  %v2753_v11 = vunpack.c.l.b16 %v1313_v37  ;;  %v3022_v28 = vunpack.c.l.b16 %v1886_v23  ;;  %v9834_v37 = vld [vmem:[#allocation69_spill] sm:$0xff] }
 0x2de   : > { %5875 = vset.pattern.permute.xlu0 %v9728_v1  ;;  %v2773_v27 = vpack.c.b16 %v2754_v60, %v2753_v11  ;;  %v1887_v5 = vpack.c.bf16 %v1855_v4, %v1855_v4  ;;  %v5756_v60 = vld [vmem:[%s9327_s4 + $0xf0] sm:$0xff] }
 0x2df   : > { %5880 = vset.pattern.permute.xlu2 %v9667_v45  ;;  %2534 = vperm.xlu0 %5875, %v5956_v57   ;;  %v8080_v57 = vsel %vm871_vm1, %v919_v20, %v9440_v8  ;;  %v3021_v8 = vunpack.c.l.b16 %v1885_v2 }
 0x2e0   : > { %4274 = vmatmul.bf16.gmra.mxu3 %v3640_v47  ;;  %2370 = vperm.xlu2 %5880, %v8067_v19   ;;  %9831 = vst [vmem:[#allocation24_spill] sm:$0xff] %v8080_v57  ;;  %v9832_v47 = vld [vmem:[#allocation85_spill] sm:$0xff]  ;;  %v1858_v3 = vmul.f32 %v9834_v37, %v8080_v57  ;;  %v3596_v2 = vsel %vm3545_vm2, %v2773_v27, %v7779_v30  ;;  %v9840_v30 = vld [vmem:[#allocation23_spill] sm:$0xff] }
 0x2e1   : > { %3259 = vrot.lane.b32.xlu1 %v3234_v50, %s6052_s21  ;;  %v8075_v38 = vpop.f32.mrf.mxu2  ;;  %v1657_v22 = vmul.f32 %v9832_v47, %v7822_v16  ;;  %v1856_v50 = vmul.f32 %v9833_v24, %v8001_v63  ;;  %v1690_v16 = vpack.c.bf16 %v1658_v43, %v1658_v43  ;;  %v3235_v24 = vpack.c.b16 %v3214_v42, %v3213_v39 }
 0x2e2   : > { %9830 = vst [vmem:[#allocation14_spill] sm:$0xff] %v8075_v38  ;;  %v4240_v59 = vpop.f32.mrf.mxu3  ;;  %v9835_v38 = vrot.slane %v9806_v26, 7  ;;  %v1890_v37 = vpack.c.bf16 %v1858_v3, %v1858_v3  ;;  %4410 = vmatpush.bf16.msra.mxu1 %v5756_v60  ;;  %v8135_v60 = vld [vmem:[%s9324_s1 + $0x60] sm:$0xff] }
 0x2e3   : > { %v4241_v13 = vadd.f32 %v4240_v59, %v4152_v25  ;;  %v1689_v63 = vpack.c.bf16 %v1657_v22, %v1657_v22  ;;  %v1888_v25 = vpack.c.bf16 %v1856_v50, %v1856_v50  ;;  %v3043_v59 = vpack.c.b16 %v3022_v28, %v3021_v8  ;;  %v5958_v8 = vld [vmem:[%s9324_s1 + $0x50] sm:$0xff]  ;;  %v5754_v28 = vld [vmem:[%s9327_s4 + $0xe0] sm:$0xff] }
 0x2e4   : > { %v8096_v47 = vsel %vm871_vm1, %v9835_v38, %v919_v20  ;;  %v2938_v43 = vunpack.c.l.b16 %v1690_v16  ;;  %v3026_v42 = vunpack.c.l.b16 %v1890_v37  ;;  %v5755_v16 = vld [vmem:[%s9327_s4 + $0xe8] sm:$0xff]  ;;  %v3066_v38 = vpop.permute.xlu2 %3065  ;;  %v4157_v37 = vadd.f32 %v8051_v7, %v7897_v33  ;;  %v5753_v33 = vld [vmem:[%s9327_s4 + $0xd8] sm:$0xff] }
 0x2e5   : > { %9836 = vst [vmem:[#allocation67_spill] sm:$0xff] %v8096_v47  ;;  %v1857_v21 = vmul.f32 %v9837_v6, %v8096_v47  ;;  %v8100_v23 = vadd.f32 %v4329_v40, %v4241_v13  ;;  %v9839_v6 = vld [vmem:[#allocation36_spill] sm:$0xff]  ;;  %v3023_v13 = vunpack.c.l.b16 %v1887_v5  ;;  %v1283_v3 = vmul.f32 %v9840_v30, %v8096_v47 }
 0x2e6   : > { %v1284_v20 = vmul.f32 %v9839_v6, %v8080_v57  ;;  %v3024_v39 = vunpack.c.l.b16 %v1888_v25  ;;  %4411 = vmatpush.bf16.msra.mxu1 %v5755_v16  ;;  %v9842_v25 = vld [vmem:[#allocation12_spill] sm:$0xff]  ;;  %v5752_v16 = vld [vmem:[%s9327_s4 + $0xd0] sm:$0xff] }
 0x2e7   : > { %9838 = vst [vmem:[#allocation75_spill] sm:$0xff] %v8100_v23  ;;  %4210 = vmatmul.bf16.gmra.mxu2 %v3596_v2  ;;  %3261 = vrot.lane.b32.xlu0 %v3235_v24, %s6052_s21  ;;  %v1889_v40 = vpack.c.bf16 %v1857_v21, %v1857_v21  ;;  %v2937_v21 = vunpack.c.l.b16 %v1689_v63  ;;  %v1315_v50 = vpack.c.bf16 %v1283_v3, %v1283_v3 }
 0x2e8   : > { %5881 = vset.pattern.permute.xlu2 %v9728_v1  ;;  %v1316_v5 = vpack.c.bf16 %v1284_v20, %v1284_v20  ;;  %v3044_v22 = vpack.c.b16 %v3024_v39, %v3023_v13  ;;  %v9844_v13 = vld [vmem:[#allocation143_spill] sm:$0xff] }
 0x2e9   : > { %3069 = vrot.lane.b32.xlu1 %v3043_v59, %s6052_s21  ;;  %2546 = vperm.xlu2 %5881, %v5958_v8   ;;  %v8115_v27 = vpop.f32.mrf.mxu2  ;;  %v3025_v11 = vunpack.c.l.b16 %v1889_v40  ;;  %v2961_v49 = vpack.c.b16 %v2938_v43, %v2937_v21  ;;  %v925_v59 = vrot.slane %v9842_v25, 7  ;;  %v2755_v20 = vunpack.c.l.b16 %v1315_v50 }
 0x2ea   : > { %v8119_v4 = vpop.f32.mrf.mxu3  ;;  %v2756_v2 = vunpack.c.l.b16 %v1316_v5  ;;  %4412 = vmatpush.bf16.msra.mxu1 %v5754_v28  ;;  %v923_v43 = vrot.slane %v9844_v13, 7  ;;  %v5761_v5 = vld [vmem:[%s9327_s4 + $0x118] sm:$0xff]  ;;  %v5751_v28 = vld [vmem:[%s9327_s4 + $0xc8] sm:$0xff] }
 0x2eb   : > { %9841 = vst [vmem:[#allocation27_spill] sm:$0xff] %v8119_v4  ;;  %v3045_v24 = vpack.c.b16 %v3026_v42, %v3025_v11  ;;  %v3644_v63 = vsel %vm3545_vm2, %v2961_v49, %v3066_v38  ;;  %v9846_v42 = vrot.slane %v9826_v53, 7  ;;  %v9848_v38 = vld [vmem:[#allocation26_spill] sm:$0xff]  ;;  %v9849_v49 = vld [vmem:[#allocation35_spill] sm:$0xff]  ;;  %4502 = vmatpush.bf16.msra.mxu2 %v5761_v5 }
 0x2ec   : > { %v2774_v30 = vpack.c.b16 %v2756_v2, %v2755_v20  ;;  %v8147_v3 = vsel %vm871_vm1, %v923_v43, %v925_v59  ;;  %v5759_v20 = vld [vmem:[%s9327_s4 + $0x108] sm:$0xff] }
 0x2ed   : > { %9845 = vst [vmem:[#allocation54_spill] sm:$0xff] %v8147_v3  ;;  %v8154_v21 = vsel %vm871_vm1, %v9846_v42, %v923_v43  ;;  %v1286_v11 = vmul.f32 %v9848_v38, %v8147_v3  ;;  %v9851_v43 = vld [vmem:[#allocation5_spill] sm:$0xff]  ;;  %v9853_v42 = vld [vmem:[#allocation146_spill] sm:$0xff] }
 0x2ee   : > { %v3600_v39 = vsel %vm3545_vm2, %v2774_v30, %v7755_v34  ;;  %4413 = vmatpush.bf16.msra.mxu1 %v5753_v33  ;;  %9847 = vst [vmem:[#allocation28_spill] sm:$0xff] %v8154_v21  ;;  %v8168_v34 = vld [vmem:[%s9324_s1 + $0x88] sm:$0xff]  ;;  %v1285_v50 = vmul.f32 %v9849_v49, %v8154_v21  ;;  %v9447_v33 = vrot.slane %v9851_v43, 7 }
 0x2ef   : > { %3071 = vrot.lane.b32.xlu0 %v3044_v22, %s6052_s21  ;;  %v1318_v2 = vpack.c.bf16 %v1286_v11, %v1286_v11  ;;  %v5758_v11 = vld [vmem:[%s9327_s4 + $0x100] sm:$0xff] }
 0x2f0   : > { %4279 = vmatmul.bf16.gmra.mxu3 %v3644_v63  ;;  %v8182_v63 = vpop.f32.mrf.mxu0 }
 0x2f1   : > { %2362 = vperm.xlu1 %5876, %v8135_v60   ;;  %3073 = vrot.lane.b32.xlu2 %v3045_v24, %s6052_s21  ;;  %v8139_v6 = vpop.f32.mrf.mxu2  ;;  %v5760_v24 = vld [vmem:[%s9327_s4 + $0x110] sm:$0xff]  ;;  %9850 = vst [vmem:[#allocation79_spill] sm:$0xff] %v8182_v63 }
 0x2f2   : > { %9843 = vst [vmem:[#allocation121_spill] sm:$0xff] %v8139_v6  ;;  %v4245_v40 = vpop.f32.mrf.mxu3  ;;  %5883 = vset.pattern.permute.xlu2 %v9667_v45  ;;  %4414 = vmatpush.bf16.msra.mxu1 %v5752_v16  ;;  %v927_v16 = vrot.slane %v9853_v42, 7 }
 0x2f3   : > { %v4246_v8 = vadd.f32 %v4245_v40, %v4157_v37  ;;  %v1317_v37 = vpack.c.bf16 %v1285_v50, %v1285_v50  ;;  %4503 = vmatpush.bf16.msra.mxu2 %v5760_v24  ;;  %v2758_v40 = vunpack.c.l.b16 %v1318_v2  ;;  %v9857_v24 = vld [vmem:[#allocation37_spill] sm:$0xff] }
 0x2f4   : > { %v8204_v50 = vsel %vm871_vm1, %v927_v16, %v9447_v33 }
 0x2f5   : > { %9855 = vst [vmem:[#allocation71_spill] sm:$0xff] %v8204_v50  ;;  %v1288_v2 = vmul.f32 %v9857_v24, %v8204_v50  ;;  %v9862_v24 = vld [vmem:[#allocation48_spill] sm:$0xff] }
 0x2f6   : > { %4415 = vmatpush.bf16.msra.mxu1 %v5751_v28  ;;  %v8209_v28 = vsel %vm871_vm1, %v925_v59, %v927_v16 }
 0x2f7   : > { %4215 = vmatmul.bf16.gmra.mxu2 %v3600_v39  ;;  %v2757_v39 = vunpack.c.l.b16 %v1317_v37  ;;  %9856 = vst [vmem:[#allocation31_spill] sm:$0xff] %v8209_v28 }
 0x2f8   : > { %4504 = vmatpush.bf16.msra.mxu2 %v5759_v20 }
 0x2f9   : > { %5878 = vset.pattern.permute.xlu1 %v9728_v1  ;;  %2382 = vperm.xlu2 %5883, %v8168_v34   ;;  %v8171_v22 = vpop.f32.mrf.mxu2  ;;  %v2775_v38 = vpack.c.b16 %v2758_v40, %v2757_v39  ;;  %v1320_v40 = vpack.c.bf16 %v1288_v2, %v1288_v2  ;;  %v9864_v2 = vld [vmem:[#allocation115_spill] sm:$0xff] }
 0x2fa   : > { %2538 = vperm.xlu1 %5878, %v7947_v52   ;;  %v5750_v52 = vld [vmem:[%s9327_s4 + $0xc0] sm:$0xff]  ;;  %v8217_v20 = vpop.f32.mrf.mxu3 }
 0x2fb   : > { %4416 = vmatpush.bf16.msra.mxu1 %v5750_v52  ;;  %9859 = vst [vmem:[#allocation140_spill] sm:$0xff] %v8217_v20  ;;  %v2760_v16 = vunpack.c.l.b16 %v1320_v40  ;;  %v9877_v20 = vld [vmem:[#allocation101_spill] sm:$0xff] }
 0x2fc   : > { %4505 = vmatpush.bf16.msra.mxu2 %v5758_v11 }
 0x301   : > { %5885 = vset.pattern.permute.xlu2 %v9728_v1  ;;  %v8192_v30 = vpop.f32.mrf.mxu2 }
 0x302   : > { %9852 = vst [vmem:[#allocation53_spill] sm:$0xff] %v8192_v30  ;;  %2558 = vperm.xlu2 %5885, %v7965_v56   ;;  %v3604_v56 = vsel %vm3545_vm2, %v2775_v38, %v7843_v46  ;;  %v5961_v46 = vld [vmem:[%s9324_s1 + $0x90] sm:$0xff] }
 0x304   : > { %v4334_v5 = vpop.f32.mrf.mxu0 }
 0x305   : > { %v8199_v49 = vadd.f32 %v4334_v5, %v4246_v8  ;;  %v9858_v8 = vld [vmem:[#allocation38_spill] sm:$0xff]  ;;  %v4162_v5 = vadd.f32 %v8051_v7, %v7950_v55  ;;  %v2511_v55 = vpop.permute.xlu1 %2510 }
 0x306   : > { %v1287_v52 = vmul.f32 %v9858_v8, %v8209_v28  ;;  %v9863_v8 = vld [vmem:[#allocation44_spill] sm:$0xff] }
 0x307   : > { %9854 = vst [vmem:[#allocation122_spill] sm:$0xff] %v8199_v49  ;;  %4220 = vmatmul.bf16.gmra.mxu2 %v3604_v56  ;;  %v2249_v33 = vmul.f32 %v9863_v8, %v9862_v24  ;;  %v9867_v24 = vld [vmem:[#allocation129_spill] sm:$0xff] }
 0x308   : > { %v1319_v39 = vpack.c.bf16 %v1287_v52, %v1287_v52  ;;  %v9865_v52 = vld [vmem:[#allocation6_spill] sm:$0xff] }
 0x309   : > { %v8213_v37 = vpop.f32.mrf.mxu2  ;;  %v2250_v40 = vmul.f32 %v9865_v52, %v9864_v2  ;;  %v9870_v2 = vmov 6  }
 0x30a   : > { %5886 = vset.pattern.permute.xlu2 %v9667_v45  ;;  %v2759_v11 = vunpack.c.l.b16 %v1319_v39 }
 0x30b   : > { %2386 = vperm.xlu2 %5886, %v5961_v46   ;;  %v2282_v6 = vpack.c.bf16 %v2250_v40, %v2250_v40  ;;  %v2351_v40 = vpop.permute.xlu2 %2350 }
 0x30c   : > { %v8223_v59 = vpop.f32.mrf.mxu0  ;;  %v2776_v57 = vpack.c.b16 %v2760_v16, %v2759_v11  ;;  %v9869_v16 = vld [vmem:[#allocation47_spill] sm:$0xff] }
 0x30d   : > { %9860 = vst [vmem:[#allocation17_spill] sm:$0xff] %v8223_v59  ;;  %v2633_v11 = vmul.f32 %v7791_v29, %v9869_v16 }
 0x30e   : > { %v3608_v39 = vsel %vm3545_vm2, %v2776_v57, %v7903_v14  ;;  %v8252_v14 = vld [vmem:[%s9324_s1 + $0x78] sm:$0xff] }
 0x311   : > { %v8227_v38 = vpop.f32.mrf.mxu2 }
 0x312   : > { %9861 = vst [vmem:[#allocation124_spill] sm:$0xff] %v8227_v38  ;;  %v4250_v56 = vpop.f32.mrf.mxu3  ;;  %v2281_v38 = vpack.c.bf16 %v2249_v33, %v2249_v33  ;;  %v2665_v33 = vpack.c.bf16 %v2633_v11, %v2633_v11  ;;  %v9875_v11 = vld [vmem:[#allocation103_spill] sm:$0xff] }
 0x313   : > { %v4251_v47 = vadd.f32 %v4250_v56, %v4162_v5  ;;  %5887 = vset.pattern.permute.xlu2 %v9728_v1  ;;  %v2634_v5 = vmul.f32 %v2511_v55, %v9867_v24 }
 0x314   : > { %2562 = vperm.xlu2 %5887, %v8067_v19   ;;  %v4339_v46 = vpop.f32.mrf.mxu0  ;;  %v3305_v43 = vunpack.c.l.b16 %v2281_v38  ;;  %v1912_v38 = vpack.c.bf16 %v9712_v35, %v9712_v35 }
 0x315   : > { %v8235_v30 = vadd.f32 %v4339_v46, %v4251_v47  ;;  %v3306_v46 = vunpack.c.l.b16 %v2282_v6  ;;  %v2666_v52 = vpack.c.bf16 %v2634_v5, %v2634_v5  ;;  %v9873_v5 = vld [vmem:[#allocation50_spill] sm:$0xff] }
 0x316   : > { %v1911_v16 = vpack.c.bf16 %v9873_v5, %v9873_v5  ;;  %v3128_v49 = vunpack.c.l.b16 %v1912_v38 }
 0x317   : > { %9866 = vst [vmem:[#allocation82_spill] sm:$0xff] %v8235_v30  ;;  %4225 = vmatmul.bf16.gmra.mxu2 %v3608_v39  ;;  %v3337_v57 = vpack.c.b16 %v3306_v46, %v3305_v43  ;;  %v3498_v55 = vunpack.c.l.b16 %v2666_v52  ;;  %v4167_v39 = vadd.f32 %v8051_v7, %v8037_v12  ;;  %v9874_v43 = vld [vmem:[#allocation132_spill] sm:$0xff]  ;;  %v9876_v52 = vld [vmem:[#allocation133_spill] sm:$0xff] }
 0x318   : > { %v2252_v46 = vmul.f32 %v9875_v11, %v9874_v43  ;;  %v2251_v63 = vmul.f32 %v9877_v20, %v9876_v52  ;;  %v9882_v52 = vld [vmem:[#allocation135_spill] sm:$0xff] }
 0x319   : > { %v8240_v56 = vpop.f32.mrf.mxu2 }
 0x31a   : > { %v8242_v8 = vpop.f32.mrf.mxu3  ;;  %v2283_v4 = vpack.c.bf16 %v2251_v63, %v2251_v63  ;;  %v1914_v63 = vpack.c.bf16 %v9735_v31, %v9735_v31 }
 0x31b   : > { %9868 = vst [vmem:[#allocation42_spill] sm:$0xff] %v8242_v8 }
 0x31c   : > { %5890 = vset.pattern.permute.xlu2 %v9870_v2  ;;  %v8247_v47 = vpop.f32.mrf.mxu0 }
 0x31d   : > { %9871 = vst [vmem:[#allocation116_spill] sm:$0xff] %v8247_v47  ;;  %2182 = vperm.xlu2 %5890, %v8252_v14   ;;  %v3497_v47 = vunpack.c.l.b16 %v2665_v33  ;;  %v2527_v33 = vpop.permute.xlu2 %2526 }
 0x31f   : > { %v3529_v12 = vpack.c.b16 %v3498_v55, %v3497_v47  ;;  %v9881_v47 = vld [vmem:[#allocation131_spill] sm:$0xff] }
 0x320   : > { %v3434_v29 = vpop.permute.xlu1 %3433  ;;  %v2635_v55 = vmul.f32 %v8084_v15, %v9881_v47  ;;  %v9884_v15 = vld [vmem:[#allocation88_spill] sm:$0xff]  ;;  %v3130_v47 = vunpack.c.l.b16 %v1914_v63 }
 0x321   : > { %v3740_v6 = vsel %vm3545_vm2, %v3337_v57, %v3434_v29  ;;  %v8260_v24 = vpop.f32.mrf.mxu2  ;;  %v3127_v57 = vunpack.c.l.b16 %v1911_v16  ;;  %v2284_v29 = vpack.c.bf16 %v2252_v46, %v2252_v46  ;;  %v4172_v46 = vadd.f32 %v8051_v7, %v8115_v27 }
 0x322   : > { %9872 = vst [vmem:[#allocation78_spill] sm:$0xff] %v8260_v24  ;;  %v4255_v30 = vpop.f32.mrf.mxu3  ;;  %4417 = vmatmul.bf16.vlgmr.msra.gmra.mxu1 %v3740_v6  ;;  %v2667_v11 = vpack.c.bf16 %v2635_v55, %v2635_v55 }
 0x323   : > { %v4256_v8 = vadd.f32 %v4255_v30, %v4167_v39  ;;  %v3152_v6 = vpack.c.b16 %v3128_v49, %v3127_v57  ;;  %v3308_v20 = vunpack.c.l.b16 %v2284_v29  ;;  %v1913_v49 = vpack.c.bf16 %v9734_v58, %v9734_v58 }
 0x324   : > { %v4344_v59 = vpop.f32.mrf.mxu0  ;;  %v1660_v29 = vmul.f32 %v9884_v15, %v7889_v41  ;;  %v3499_v58 = vunpack.c.l.b16 %v2667_v11  ;;  %v9901_v41 = vld [vmem:[#allocation58_spill] sm:$0xff] }
 0x325   : > { %v8268_v23 = vadd.f32 %v4344_v59, %v4256_v8  ;;  %5893 = vset.pattern.permute.xlu2 %v9728_v1  ;;  %v3307_v8 = vunpack.c.l.b16 %v2283_v4  ;;  %v2355_v31 = vpop.permute.xlu2 %2354 }
 0x327   : > { %9878 = vst [vmem:[#allocation105_spill] sm:$0xff] %v8268_v23  ;;  %5592 = vmatmul.msk.bf16.vlgmr.msra.gmra.mxu2 %vm3545_vm2, %v3529_v12  ;;  %v3338_v39 = vpack.c.b16 %v3308_v20, %v3307_v8  ;;  %v3129_v8 = vunpack.c.l.b16 %v1913_v49  ;;  %v9885_v23 = vld [vmem:[#allocation8_spill] sm:$0xff] }
 0x328   : > { %v3256_v24 = vpop.permute.xlu1 %3255 }
 0x329   : > { %v8272_v43 = vpop.f32.mrf.mxu2  ;;  %v3704_v30 = vsel %vm3545_vm2, %v3152_v6, %v3256_v24  ;;  %v3153_v15 = vpack.c.b16 %v3130_v47, %v3129_v8 }
 0x32a   : > { %v8275_v38 = vpop.f32.mrf.mxu3  ;;  %4363 = vmatmul.bf16.gmra.mxu0 %v3704_v30 }
 0x32b   : > { %9879 = vst [vmem:[#allocation117_spill] sm:$0xff] %v8275_v38 }
 0x32c   : > { %v8277_v59 = vpop.f32.mrf.mxu0 }
 0x32d   : > { %9880 = vst [vmem:[#allocation20_spill] sm:$0xff] %v8277_v59  ;;  %v9886_v59 = vld [vmem:[#allocation84_spill] sm:$0xff] }
 0x32e   : > { %v1659_v27 = vmul.f32 %v9886_v59, %v9885_v23 }
 0x330   : > { %v3436_v16 = vpop.permute.xlu0 %3435  ;;  %v2519_v24 = vpop.permute.xlu1 %2518  ;;  %v1691_v63 = vpack.c.bf16 %v1659_v27, %v1659_v27 }
 0x331   : > { %v2636_v12 = vmul.f32 %v2519_v24, %v9882_v52  ;;  %v8288_v57 = vpop.f32.mrf.mxu2  ;;  %v3744_v4 = vsel %vm3545_vm2, %v3338_v39, %v3436_v16  ;;  %v2450_v39 = vmul.f32 %v2351_v40, %v7004_v18  ;;  %v9891_v40 = vrot.slane %v7356_v0, 1 }
 0x332   : > { %9883 = vst [vmem:[#allocation30_spill] sm:$0xff] %v8288_v57  ;;  %v4260_v6 = vpop.f32.mrf.mxu3  ;;  %4422 = vmatmul.bf16.gmra.mxu1 %v3744_v4  ;;  %v1692_v57 = vpack.c.bf16 %v1660_v29, %v1660_v29  ;;  %v1014_v4 = vrot.slane %v9806_v26, 1 }
 0x333   : > { %v2668_v30 = vpack.c.bf16 %v2636_v12, %v2636_v12  ;;  %v4261_v20 = vadd.f32 %v4260_v6, %v4172_v46  ;;  %v1016_v46 = vrot.slane %v9827_v17, 1  ;;  %v2482_v29 = vpack.c.bf16 %v2450_v39, %v2450_v39 }
 0x334   : > { %v4349_v55 = vpop.f32.mrf.mxu0  ;;  %v2940_v6 = vunpack.c.l.b16 %v1692_v57  ;;  %v9896_v57 = vld [vmem:[#allocation136_spill] sm:$0xff]  ;;  %v2939_v39 = vunpack.c.l.b16 %v1691_v63 }
 0x335   : > { %v3500_v24 = vunpack.c.l.b16 %v2668_v30  ;;  %v8295_v52 = vadd.f32 %v4349_v55, %v4261_v20  ;;  %v9889_v30 = vld [vmem:[#allocation34_spill] sm:$0xff]  ;;  %v8310_v20 = vsel %vm968_vm0, %v9891_v40, %v1014_v4  ;;  %v8313_v8 = vsel %vm968_vm0, %v1014_v4, %v1016_v46  ;;  %v9900_v4 = vld [vmem:[#allocation64_spill] sm:$0xff] }
 0x336   : > { %9892 = vst [vmem:[#allocation7_spill] sm:$0xff] %v8310_v20  ;;  %v9895_v55 = vld [vmem:[#allocation134_spill] sm:$0xff] }
 0x337   : > { %9887 = vst [vmem:[#allocation81_spill] sm:$0xff] %v8295_v52  ;;  %v3530_v16 = vpack.c.b16 %v3500_v24, %v3499_v58  ;;  %v2079_v27 = vmul.f32 %v9895_v55, %v8310_v20  ;;  %v2080_v24 = vmul.f32 %v9896_v57, %v8313_v8  ;;  %v2962_v52 = vpack.c.b16 %v2940_v6, %v2939_v39 }
 0x338   : > { %v3258_v49 = vpop.permute.xlu0 %3257  ;;  %9893 = vst [vmem:[#allocation32_spill] sm:$0xff] %v8313_v8  ;;  %v4177_v57 = vadd.f32 %v8051_v7, %v8171_v22 }
 0x339   : > { %v8300_v12 = vpop.f32.mrf.mxu2  ;;  %5593 = vmatmul.msk.bf16.gmra.mxu2 %vm3545_vm2, %v3530_v16  ;;  %v3708_v59 = vsel %vm3545_vm2, %v3153_v15, %v3258_v49  ;;  %v9897_v15 = vld [vmem:[#allocation138_spill] sm:$0xff]  ;;  %v2112_v55 = vpack.c.bf16 %v2080_v24, %v2080_v24 }
 0x33a   : > { %9888 = vst [vmem:[#allocation74_spill] sm:$0xff] %v8300_v12  ;;  %v2347_v11 = vpop.permute.xlu1 %2346  ;;  %4368 = vmatmul.bf16.gmra.mxu0 %v3708_v59  ;;  %v8305_v58 = vpop.f32.mrf.mxu3  ;;  %v9898_v49 = vld [vmem:[#allocation98_spill] sm:$0xff]  ;;  %v2111_v12 = vpack.c.bf16 %v2079_v27, %v2079_v27 }
 0x33b   : > { %v2449_v18 = vmul.f32 %v2347_v11, %v9889_v30  ;;  %9890 = vst [vmem:[#allocation56_spill] sm:$0xff] %v8305_v58  ;;  %v2254_v59 = vmul.f32 %v9898_v49, %v9897_v15  ;;  %v2531_v11 = vpop.permute.xlu2 %2530  ;;  %v3394_v30 = vunpack.c.l.b16 %v2482_v29  ;;  %v9899_v58 = vld [vmem:[#allocation139_spill] sm:$0xff]  ;;  %v1018_v15 = vrot.slane %v9826_v53, 1 }
 0x33c   : > { %v8315_v47 = vpop.f32.mrf.mxu0  ;;  %v2253_v23 = vmul.f32 %v9900_v4, %v9899_v58  ;;  %v3215_v24 = vunpack.c.l.b16 %v2111_v12  ;;  %v9456_v49 = vrot.slane %v9844_v13, 1  ;;  %v1915_v12 = vpack.c.bf16 %v9778_v36, %v9778_v36 }
 0x33d   : > { %9894 = vst [vmem:[#allocation128_spill] sm:$0xff] %v8315_v47  ;;  %v2481_v16 = vpack.c.bf16 %v2449_v18, %v2449_v18  ;;  %v2638_v47 = vmul.f32 %v2527_v33, %v9901_v41  ;;  %v2286_v18 = vpack.c.bf16 %v2254_v59, %v2254_v59  ;;  %v9903_v41 = vld [vmem:[#allocation61_spill] sm:$0xff] }
 0x33e   : > { %v2285_v58 = vpack.c.bf16 %v2253_v23, %v2253_v23 }
 0x33f   : > { %v3393_v40 = vunpack.c.l.b16 %v2481_v16  ;;  %v2670_v39 = vpack.c.bf16 %v2638_v47, %v2638_v47  ;;  %v3216_v16 = vunpack.c.l.b16 %v2112_v55  ;;  %v3310_v22 = vunpack.c.l.b16 %v2286_v18 }
 0x340   : > { %v3068_v38 = vpop.permute.xlu0 %3067  ;;  %v8346_v18 = vsel %vm968_vm0, %v1016_v46, %v1018_v15  ;;  %v9908_v46 = vld [vmem:[#allocation87_spill] sm:$0xff] }
 0x341   : > { %v3421_v17 = vpack.c.b16 %v3394_v30, %v3393_v40  ;;  %v8326_v26 = vpop.f32.mrf.mxu2  ;;  %v3648_v63 = vsel %vm3545_vm2, %v2962_v52, %v3068_v38  ;;  %v2451_v38 = vmul.f32 %v2355_v31, %v6936_v61  ;;  %v3502_v23 = vunpack.c.l.b16 %v2670_v39  ;;  %v9906_v39 = vld [vmem:[#allocation141_spill] sm:$0xff] }
 0x342   : > { %9902 = vst [vmem:[#allocation130_spill] sm:$0xff] %v8326_v26  ;;  %4284 = vmatmul.bf16.gmra.mxu3 %v3648_v63  ;;  %v4265_v6 = vpop.f32.mrf.mxu3  ;;  %v3236_v55 = vpack.c.b16 %v3216_v16, %v3215_v24  ;;  %v1916_v31 = vpack.c.bf16 %v9777_v9, %v9777_v9 }
 0x343   : > { %v2523_v29 = vpop.permute.xlu1 %2522  ;;  %3441 = vrot.lane.b32.xlu1 %v3421_v17, %s6052_s21  ;;  %v4266_v27 = vadd.f32 %v4265_v6, %v4177_v57  ;;  %v8336_v59 = vpop.permute.xlu2 %3439  ;;  %v3309_v17 = vunpack.c.l.b16 %v2285_v58  ;;  %v2483_v63 = vpack.c.bf16 %v2451_v38, %v2451_v38  ;;  %v8351_v57 = vsel %vm968_vm0, %v1018_v15, %v9456_v49 }
 0x344   : > { %v2637_v33 = vmul.f32 %v2523_v29, %v9903_v41  ;;  %9905 = vst [vmem:[#allocation109_spill] sm:$0xff] %v8351_v57  ;;  %v2081_v41 = vmul.f32 %v9906_v39, %v8346_v18  ;;  %v1662_v15 = vmul.f32 %v9908_v46, %v7987_v44  ;;  %v9912_v39 = vld [vmem:[#allocation126_spill] sm:$0xff]  ;;  %v9914_v44 = vld [vmem:[#allocation123_spill] sm:$0xff] }
 0x345   : > { %v4354_v52 = vpop.f32.mrf.mxu0  ;;  %v3339_v29 = vpack.c.b16 %v3310_v22, %v3309_v17  ;;  %v3131_v17 = vunpack.c.l.b16 %v1915_v12 }
 0x346   : > { %v2669_v30 = vpack.c.bf16 %v2637_v33, %v2637_v33  ;;  %v8338_v40 = vadd.f32 %v4354_v52, %v4266_v27  ;;  %v3395_v52 = vunpack.c.l.b16 %v2483_v63  ;;  %v2113_v46 = vpack.c.bf16 %v2081_v41, %v2081_v41 }
 0x348   : > { %9904 = vst [vmem:[#allocation33_spill] sm:$0xff] %v8338_v40  ;;  %v3501_v47 = vunpack.c.l.b16 %v2669_v30  ;;  %v2359_v4 = vpop.permute.xlu0 %2358 }
 0x349   : > { %v2452_v61 = vmul.f32 %v2359_v4, %v6926_v32  ;;  %v9907_v32 = vld [vmem:[#allocation60_spill] sm:$0xff]  ;;  %v9911_v4 = vld [vmem:[#allocation15_spill] sm:$0xff] }
 0x34a   : > { %v3531_v6 = vpack.c.b16 %v3502_v23, %v3501_v47  ;;  %v8353_v58 = vpop.f32.mrf.mxu2  ;;  %v2082_v33 = vmul.f32 %v9907_v32, %v8351_v57  ;;  %v8359_v16 = vpop.f32.mrf.mxu3  ;;  %v3132_v23 = vunpack.c.l.b16 %v1916_v31  ;;  %v9910_v47 = vld [vmem:[#allocation125_spill] sm:$0xff]  ;;  %v2639_v32 = vmul.f32 %v2531_v11, %v9912_v39 }
 0x34b   : > { %v2484_v27 = vpack.c.bf16 %v2452_v61, %v2452_v61  ;;  %v3438_v24 = vpop.permute.xlu1 %3437  ;;  %3263 = vrot.lane.b32.xlu1 %v3236_v55, %s6052_s21  ;;  %v2255_v61 = vmul.f32 %v9911_v4, %v9910_v47  ;;  %v9913_v55 = vld [vmem:[#allocation80_spill] sm:$0xff]  ;;  %v4182_v11 = vadd.f32 %v8051_v7, %v8213_v37  ;;  %v9916_v47 = vld [vmem:[#allocation127_spill] sm:$0xff] }
 0x34c   : > { %5594 = vmatmul.msk.bf16.gmra.mxu2 %vm3545_vm2, %v3531_v6  ;;  %v3748_v38 = vsel %vm3545_vm2, %v3339_v29, %v3438_v24  ;;  %v1661_v49 = vmul.f32 %v9913_v55, %v7994_v51  ;;  %v2114_v26 = vpack.c.bf16 %v2082_v33, %v2082_v33  ;;  %v9915_v29 = vld [vmem:[#allocation149_spill] sm:$0xff]  ;;  %v1694_v24 = vpack.c.bf16 %v1662_v15, %v1662_v15  ;;  %v9918_v15 = vld [vmem:[#allocation114_spill] sm:$0xff] }
 0x34d   : > { %v3396_v22 = vunpack.c.l.b16 %v2484_v27  ;;  %v8366_v30 = vpop.f32.mrf.mxu0  ;;  %4427 = vmatmul.bf16.gmra.mxu1 %v3748_v38  ;;  %v2256_v63 = vmul.f32 %v9915_v29, %v9914_v44  ;;  %v2367_v27 = vpop.permute.xlu2 %2366  ;;  %v3154_v12 = vpack.c.b16 %v3132_v23, %v3131_v17  ;;  %v2287_v31 = vpack.c.bf16 %v2255_v61, %v2255_v61 }
 0x34e   : > { %9909 = vst [vmem:[#allocation104_spill] sm:$0xff] %v8366_v30  ;;  %v2671_v38 = vpack.c.bf16 %v2639_v32, %v2639_v32  ;;  %v1693_v41 = vpack.c.bf16 %v1661_v49, %v1661_v49  ;;  %v3217_v33 = vunpack.c.l.b16 %v2113_v46  ;;  %v1860_v55 = vmul.f32 %v9918_v15, %v8147_v3 }
 0x34f   : > { %v3422_v6 = vpack.c.b16 %v3396_v22, %v3395_v52  ;;  %v3218_v52 = vunpack.c.l.b16 %v2114_v26  ;;  %v2288_v17 = vpack.c.bf16 %v2256_v63, %v2256_v63  ;;  %v2942_v37 = vunpack.c.l.b16 %v1694_v24 }
 0x350   : > { %v3311_v46 = vunpack.c.l.b16 %v2287_v31  ;;  %v3503_v26 = vunpack.c.l.b16 %v2671_v38  ;;  %v2941_v30 = vunpack.c.l.b16 %v1693_v41  ;;  %v1917_v31 = vpack.c.bf16 %v9798_v54, %v9798_v54 }
 0x351   : > { %v2535_v40 = vpop.permute.xlu0 %2534  ;;  %3443 = vrot.lane.b32.xlu0 %v3422_v6, %s6052_s21  ;;  %v3312_v15 = vunpack.c.l.b16 %v2288_v17  ;;  %v1918_v38 = vpack.c.bf16 %v9794_v62, %v9794_v62  ;;  %v1919_v3 = vpack.c.bf16 %v7356_v0, %v7356_v0 }
 0x352   : > { %v2640_v4 = vmul.f32 %v2535_v40, %v9916_v47  ;;  %v8379_v39 = vpop.f32.mrf.mxu2  ;;  %v4270_v44 = vpop.f32.mrf.mxu3  ;;  %v9919_v40 = vld [vmem:[#allocation112_spill] sm:$0xff] }
 0x353   : > { %9917 = vst [vmem:[#allocation10_spill] sm:$0xff] %v8379_v39  ;;  %v3260_v22 = vpop.permute.xlu1 %3259  ;;  %2550 = vperm.xlu1 %5878, %v8014_v48   ;;  %v4271_v61 = vadd.f32 %v4270_v44, %v4182_v11  ;;  %v1859_v49 = vmul.f32 %v9919_v40, %v8154_v21  ;;  %v3237_v48 = vpack.c.b16 %v3218_v52, %v3217_v33  ;;  %v8402_v52 = vld [vmem:[%s9324_s1 + $0x80] sm:$0xff] }
 0x354   : > { %v2672_v23 = vpack.c.bf16 %v2640_v4, %v2640_v4  ;;  %v3712_v32 = vsel %vm3545_vm2, %v3154_v12, %v3260_v22  ;;  %v1892_v39 = vpack.c.bf16 %v1860_v55, %v1860_v55  ;;  %v3340_v12 = vpack.c.b16 %v3312_v15, %v3311_v46  ;;  %v9950_v21 = vld [vmem:[#allocation137_spill] sm:$0xff] }
 0x355   : > { %v4359_v6 = vpop.f32.mrf.mxu0  ;;  %4373 = vmatmul.bf16.gmra.mxu0 %v3712_v32  ;;  %v1891_v11 = vpack.c.bf16 %v1859_v49, %v1859_v49  ;;  %v2543_v24 = vpop.permute.xlu2 %2542  ;;  %v2963_v22 = vpack.c.b16 %v2942_v37, %v2941_v30  ;;  %v3134_v32 = vunpack.c.l.b16 %v1918_v38  ;;  %v9921_v37 = vld [vmem:[#allocation110_spill] sm:$0xff] }
 0x356   : > { %v3504_v29 = vunpack.c.l.b16 %v2672_v23  ;;  %v8387_v47 = vadd.f32 %v4359_v6, %v4271_v61  ;;  %v3028_v41 = vunpack.c.l.b16 %v1892_v39  ;;  %v3752_v55 = vsel %vm3545_vm2, %v3340_v12, %v8336_v59  ;;  %v9920_v23 = vld [vmem:[#allocation83_spill] sm:$0xff] }
 0x357   : > { %v3027_v17 = vunpack.c.l.b16 %v1891_v11  ;;  %v1664_v39 = vmul.f32 %v9920_v23, %v8030_v10  ;;  %v3133_v61 = vunpack.c.l.b16 %v1917_v31  ;;  %v9922_v6 = vld [vmem:[#allocation91_spill] sm:$0xff]  ;;  %v1022_v59 = vrot.slane %v9842_v25, 1 }
 0x358   : > { %v3532_v63 = vpack.c.b16 %v3504_v29, %v3503_v26  ;;  %v1663_v40 = vmul.f32 %v9922_v6, %v9921_v37  ;;  %v2454_v26 = vmul.f32 %v2367_v27, %v9712_v35  ;;  %v9458_v12 = vrot.slane %v9853_v42, 1 }
 0x359   : > { %3265 = vrot.lane.b32.xlu0 %v3237_v48, %s6052_s21  ;;  %v3262_v49 = vpop.permute.xlu0 %3261  ;;  %v3046_v46 = vpack.c.b16 %v3028_v41, %v3027_v17  ;;  %v1696_v29 = vpack.c.bf16 %v1664_v39, %v1664_v39  ;;  %v4187_v48 = vadd.f32 %v8051_v7, %v8240_v56 }
 0x35a   : > { %v8390_v4 = vpop.f32.mrf.mxu2  ;;  %v8396_v33 = vpop.f32.mrf.mxu3  ;;  %v1695_v11 = vpack.c.bf16 %v1663_v40, %v1663_v40  ;;  %v2486_v38 = vpack.c.bf16 %v2454_v26, %v2454_v26 }
 0x35b   : > { %v3070_v44 = vpop.permute.xlu1 %3069  ;;  %5882 = vset.pattern.permute.xlu1 %v9667_v45  ;;  %v2944_v56 = vunpack.c.l.b16 %v1696_v29 }
 0x35c   : > { %2378 = vperm.xlu1 %5882, %v8402_v52   ;;  %5595 = vmatmul.msk.bf16.gmra.mxu2 %vm3545_vm2, %v3532_v63  ;;  %v3652_v30 = vsel %vm3545_vm2, %v2963_v22, %v3070_v44  ;;  %v3155_v63 = vpack.c.b16 %v3134_v32, %v3133_v61  ;;  %v2943_v39 = vunpack.c.l.b16 %v1695_v11  ;;  %v8439_v61 = vsel %vm968_vm0, %v1022_v59, %v9458_v12 }
 0x35d   : > { %4289 = vmatmul.bf16.gmra.mxu3 %v3652_v30  ;;  %4432 = vmatmul.bf16.gmra.mxu1 %v3752_v55  ;;  %v8426_v41 = vpop.permute.xlu2 %2370  ;;  %v9924_v30 = vrot.slane %v9844_v13, 1  ;;  %v3398_v32 = vunpack.c.l.b16 %v2486_v38 }
 0x35e   : > { %v3716_v27 = vsel %vm3545_vm2, %v3155_v63, %v3262_v49  ;;  %v9927_v49 = vld [vmem:[#allocation145_spill] sm:$0xff]  ;;  %v2964_v63 = vpack.c.b16 %v2944_v56, %v2943_v39  ;;  %v9931_v39 = vld [vmem:[#allocation90_spill] sm:$0xff] }
 0x35f   : > { %v8432_v55 = vsel %vm968_vm0, %v9924_v30, %v1022_v59 }
 0x361   : > { %3075 = vrot.lane.b32.xlu0 %v3046_v46, %s6052_s21  ;;  %v2642_v46 = vmul.f32 %v2543_v24, %v9927_v49  ;;  %v3072_v26 = vpop.permute.xlu0 %3071  ;;  %v9930_v24 = vld [vmem:[#allocation93_spill] sm:$0xff] }
 0x362   : > { %v8418_v15 = vpop.f32.mrf.mxu2  ;;  %v3656_v59 = vsel %vm3545_vm2, %v2964_v63, %v3072_v26 }
 0x363   : > { %9923 = vst [vmem:[#allocation77_spill] sm:$0xff] %v8418_v15  ;;  %v2363_v22 = vpop.permute.xlu1 %2362  ;;  %v4275_v31 = vpop.f32.mrf.mxu3 }
 0x364   : > { %v2453_v44 = vmul.f32 %v2363_v22, %v9873_v5  ;;  %v8422_v35 = vadd.f32 %v4275_v31, %v4187_v48  ;;  %5884 = vset.pattern.permute.xlu1 %v9728_v1  ;;  %v9925_v5 = vld [vmem:[#allocation63_spill] sm:$0xff] }
 0x365   : > { %4378 = vmatmul.bf16.gmra.mxu0 %v3716_v27  ;;  %2554 = vperm.xlu1 %5884, %v8135_v60   ;;  %v2083_v23 = vmul.f32 %v9925_v5, %v8432_v55  ;;  %v9926_v60 = vld [vmem:[#allocation142_spill] sm:$0xff]  ;;  %v9929_v27 = vld [vmem:[#allocation97_spill] sm:$0xff]  ;;  %v8455_v56 = vpop.permute.xlu2 %2546 }
 0x366   : > { %v2485_v17 = vpack.c.bf16 %v2453_v44, %v2453_v44  ;;  %v2084_v40 = vmul.f32 %v9926_v60, %v8439_v61  ;;  %v2674_v44 = vpack.c.bf16 %v2642_v46, %v2642_v46  ;;  %v4192_v46 = vadd.f32 %v8051_v7, %v8272_v43  ;;  %v9934_v43 = vld [vmem:[#allocation49_spill] sm:$0xff] }
 0x367   : > { %v2115_v11 = vpack.c.bf16 %v2083_v23, %v2083_v23 }
 0x368   : > { %v3397_v6 = vunpack.c.l.b16 %v2485_v17  ;;  %v2116_v38 = vpack.c.bf16 %v2084_v40, %v2084_v40  ;;  %v1666_v17 = vmul.f32 %v9930_v24, %v8313_v8  ;;  %v3506_v60 = vunpack.c.l.b16 %v2674_v44  ;;  %v9933_v44 = vld [vmem:[#allocation29_spill] sm:$0xff] }
 0x369   : > { %2566 = vperm.xlu0 %5875, %v8252_v14   ;;  %v3219_v5 = vunpack.c.l.b16 %v2115_v11  ;;  %v1861_v24 = vmul.f32 %v9934_v43, %v8209_v28 }
 0x36a   : > { %v3423_v29 = vpack.c.b16 %v3398_v32, %v3397_v6  ;;  %v8445_v48 = vpop.f32.mrf.mxu2  ;;  %v1665_v32 = vmul.f32 %v9931_v39, %v8310_v20  ;;  %v3220_v6 = vunpack.c.l.b16 %v2116_v38  ;;  %v1698_v49 = vpack.c.bf16 %v1666_v17, %v1666_v17 }
 0x36b   : > { %v8447_v22 = vpop.f32.mrf.mxu3  ;;  %v1922_v20 = vpack.c.bf16 %v9826_v53, %v9826_v53 }
 0x36c   : > { %9928 = vst [vmem:[#allocation45_spill] sm:$0xff] %v8447_v22  ;;  %v2539_v31 = vpop.permute.xlu1 %2538  ;;  %v2946_v38 = vunpack.c.l.b16 %v1698_v49 }
 0x36d   : > { %v2641_v30 = vmul.f32 %v2539_v31, %v9929_v27  ;;  %4294 = vmatmul.bf16.gmra.mxu3 %v3656_v59  ;;  %3445 = vrot.lane.b32.xlu1 %v3423_v29, %s6052_s21  ;;  %v3238_v29 = vpack.c.b16 %v3220_v6, %v3219_v5  ;;  %v1697_v31 = vpack.c.bf16 %v1665_v32, %v1665_v32  ;;  %v3074_v17 = vpop.permute.xlu2 %3073  ;;  %v8478_v5 = vld [vmem:[%s9324_s1 + $0x98] sm:$0xff] }
 0x36e   : > { %5889 = vset.pattern.permute.xlu1 %v9870_v2  ;;  %v1862_v27 = vmul.f32 %v9933_v44, %v8204_v50  ;;  %v1893_v6 = vpack.c.bf16 %v1861_v24, %v1861_v24 }
 0x36f   : > { %v2673_v23 = vpack.c.bf16 %v2641_v30, %v2641_v30  ;;  %v2945_v30 = vunpack.c.l.b16 %v1697_v31  ;;  %v8507_v31 = vpop.f32.mrf.mxu1 }
 0x370   : > { %v1894_v39 = vpack.c.bf16 %v1862_v27, %v1862_v27 }
 0x371   : > { %v3505_v40 = vunpack.c.l.b16 %v2673_v23  ;;  %5888 = vset.pattern.permute.xlu0 %v9667_v45  ;;  %v2965_v23 = vpack.c.b16 %v2946_v38, %v2945_v30  ;;  %v8521_v30 = vpop.f32.mrf.mxu0 }
 0x372   : > { %v8462_v26 = vpop.f32.mrf.mxu2  ;;  %2374 = vperm.xlu0 %5888, %v8252_v14  }
 0x373   : > { %9932 = vst [vmem:[#allocation85_spill] sm:$0xff] %v8462_v26  ;;  %v3533_v63 = vpack.c.b16 %v3506_v60, %v3505_v40  ;;  %v4280_v11 = vpop.f32.mrf.mxu3  ;;  %v3660_v32 = vsel %vm3545_vm2, %v2965_v23, %v3074_v17  ;;  %v3030_v60 = vunpack.c.l.b16 %v1894_v39  ;;  %v3029_v40 = vunpack.c.l.b16 %v1893_v6  ;;  %v9940_v17 = vld [vmem:[#allocation9_spill] sm:$0xff]  ;;  %v9943_v6 = vld [vmem:[#allocation70_spill] sm:$0xff] }
 0x374   : > { %v8465_v59 = vadd.f32 %v4280_v11, %v4192_v46  ;;  %v8488_v46 = vld [vmem:[%s9324_s1 + $0xa0] sm:$0xff]  ;;  %v8504_v11 = vld [vmem:[%s9324_s1 + $0xa8] sm:$0xff] }
 0x375   : > { %3267 = vrot.lane.b32.xlu1 %v3238_v29, %s6052_s21  ;;  %5596 = vmatmul.msk.bf16.gmra.mxu2 %vm3545_vm2, %v3533_v63  ;;  %v3047_v29 = vpack.c.b16 %v3030_v60, %v3029_v40  ;;  %v9941_v23 = vld [vmem:[#allocation41_spill] sm:$0xff]  ;;  %v4154_v60 = vadd.f32 %v8051_v7, %v9943_v6  ;;  %v9945_v40 = vld [vmem:[#allocation16_spill] sm:$0xff] }
 0x376   : > { %v2257_v39 = vmul.f32 %v9941_v23, %v9940_v17  ;;  %v8543_v17 = vld [vmem:[%s9324_s1 + $0xd8] sm:$0xff]  ;;  %v9948_v23 = vld [vmem:[#allocation79_spill] sm:$0xff] }
 0x377   : > { %v8515_v44 = vpop.f32.mrf.mxu1 }
 0x37a   : > { %v8473_v14 = vpop.f32.mrf.mxu2  ;;  %2390 = vperm.xlu0 %5888, %v8478_v5  }
 0x37d   : > { %2178 = vperm.xlu1 %5889, %v8067_v19   ;;  %4299 = vmatmul.bf16.gmra.mxu3 %v3660_v32  ;;  %v8498_v19 = vld [vmem:[%s9324_s1 + $0xb8] sm:$0xff] }
 0x382   : > { %v8483_v49 = vpop.f32.mrf.mxu2  ;;  %2394 = vperm.xlu0 %5888, %v8488_v46  }
 0x383   : > { %9935 = vst [vmem:[#allocation108_spill] sm:$0xff] %v8483_v49  ;;  %v2289_v49 = vpack.c.bf16 %v2257_v39, %v2257_v39 }
 0x385   : > { %3077 = vrot.lane.b32.xlu1 %v3047_v29, %s6052_s21 }
 0x386   : > { %5891 = vset.pattern.permute.xlu1 %v9667_v45 }
 0x38a   : > { %v8493_v63 = vpop.f32.mrf.mxu2  ;;  %2406 = vperm.xlu0 %5888, %v8498_v19  }
 0x38b   : > { %9936 = vst [vmem:[#allocation69_spill] sm:$0xff] %v8493_v63 }
 0x38d   : > { %2398 = vperm.xlu1 %5891, %v8504_v11  }
 0x392   : > { %v8509_v38 = vpop.f32.mrf.mxu2  ;;  %5896 = vset.pattern.permute.xlu0 %v9870_v2 }
 0x393   : > { %9937 = vst [vmem:[#allocation113_spill] sm:$0xff] %v8509_v38  ;;  %2186 = vperm.xlu0 %5896, %v8402_v52  }
 0x395   : > { %5892 = vset.pattern.permute.xlu1 %v9728_v1 }
 0x396   : > { %2570 = vperm.xlu1 %5892, %v8402_v52  }
 0x39a   : > { %v8517_v27 = vpop.f32.mrf.mxu2 }
 0x39b   : > { %9938 = vst [vmem:[#allocation36_spill] sm:$0xff] %v8517_v27  ;;  %2198 = vperm.xlu0 %5896, %v8478_v5   ;;  %v1920_v27 = vpack.c.bf16 %v9950_v21, %v9950_v21 }
 0x39e   : > { %5894 = vset.pattern.permute.xlu1 %v9870_v2 }
 0x39f   : > { %2190 = vperm.xlu1 %5894, %v8168_v34   ;;  %v4418_v43 = vpop.f32.mrf.mxu1  ;;  %v9944_v34 = vld [vmem:[#allocation55_spill] sm:$0xff] }
 0x3a0   : > { %v2258_v29 = vmul.f32 %v9945_v40, %v9944_v34  ;;  %v3313_v40 = vunpack.c.l.b16 %v2289_v49 }
 0x3a2   : > { %v8524_v24 = vpop.f32.mrf.mxu2 }
 0x3a3   : > { %9939 = vst [vmem:[#allocation23_spill] sm:$0xff] %v8524_v24  ;;  %5903 = vset.pattern.permute.xlu0 %v9728_v1  ;;  %v9946_v24 = vld [vmem:[#allocation27_spill] sm:$0xff] }
 0x3a4   : > { %2590 = vperm.xlu0 %5903, %v8504_v11   ;;  %v4243_v38 = vadd.f32 %v9946_v24, %v4154_v60 }
 0x3a6   : > { %v4332_v6 = vadd.f32 %v9948_v23, %v4243_v38  ;;  %v9951_v38 = vld [vmem:[#allocation107_spill] sm:$0xff]  ;;  %v9955_v23 = vld [vmem:[#allocation68_spill] sm:$0xff] }
 0x3a7   : > { %v4364_v52 = vpop.f32.mrf.mxu0  ;;  %5898 = vset.pattern.permute.xlu1 %v9728_v1  ;;  %v4420_v26 = vpop.f32.mrf.mxu1 }
 0x3a8   : > { %v8532_v32 = vadd.f32 %v4364_v52, %v8422_v35  ;;  %v2290_v35 = vpack.c.bf16 %v2258_v29, %v2258_v29  ;;  %v9947_v52 = vld [vmem:[#allocation75_spill] sm:$0xff]  ;;  %v4421_v24 = vadd.f32 %v4420_v26, %v4332_v6 }
 0x3a9   : > { %v4419_v7 = vadd.f32 %v4418_v43, %v9947_v52  ;;  %v9952_v52 = vld [vmem:[#allocation40_spill] sm:$0xff] }
 0x3aa   : > { %9942 = vst [vmem:[#allocation12_spill] sm:$0xff] %v8532_v32  ;;  %v4507_v12 = vpop.f32.mrf.mxu2  ;;  %v3314_v60 = vunpack.c.l.b16 %v2290_v35  ;;  %v2259_v49 = vmul.f32 %v9952_v52, %v9951_v38 }
 0x3ab   : > { %v4508_v39 = vadd.f32 %v4507_v12, %v4419_v7  ;;  %v9954_v7 = vld [vmem:[#allocation147_spill] sm:$0xff] }
 0x3ac   : > { %5907 = vset.pattern.permute.xlu0 %v9667_v45  ;;  %v3341_v50 = vpack.c.b16 %v3314_v60, %v3313_v40  ;;  %v2260_v6 = vmul.f32 %v9955_v23, %v9954_v7 }
 0x3ad   : > { %2422 = vperm.xlu0 %5907, %v8543_v17   ;;  %v4587_v29 = vmax.f32 %v4508_v39, 0.0  ;;  %v2291_v39 = vpack.c.bf16 %v2259_v49, %v2259_v49  ;;  %v5970_v49 = vld [vmem:[%s9326_s3] ss:$0 sm:$0xff] }
 0x3ae   : > { %v2292_v60 = vpack.c.bf16 %v2260_v6, %v2260_v6  ;;  %v9961_v6 = vld [vmem:[#allocation76_spill] sm:$0xff] }
 0x3af   : > { %v8548_v34 = vpop.f32.mrf.mxu0  ;;  %v4423_v26 = vpop.f32.mrf.mxu1  ;;  %v3315_v52 = vunpack.c.l.b16 %v2291_v39  ;;  %v9964_v39 = vld [vmem:[#allocation13_spill] sm:$0xff] }
 0x3b0   : > { %9949 = vst [vmem:[#allocation143_spill] sm:$0xff] %v8548_v34  ;;  %v3316_v7 = vunpack.c.l.b16 %v2292_v60 }
 0x3b2   : > { %v4509_v15 = vpop.f32.mrf.mxu2 }
 0x3b3   : > { %v4510_v28 = vadd.f32 %v4509_v15, %v4421_v24  ;;  %v3136_v24 = vunpack.c.l.b16 %v1920_v27 }
 0x3b5   : > { %v4588_v32 = vmax.f32 %v4510_v28, 0.0  ;;  %v3442_v43 = vpop.permute.xlu1 %3441  ;;  %5914 = vset.pattern.permute.xlu0 %v9728_v1  ;;  %v3135_v28 = vunpack.c.l.b16 %v1919_v3  ;;  %v9959_v3 = vld [vmem:[#allocation140_spill] sm:$0xff] }
 0x3b6   : > { %v3756_v12 = vsel %vm3545_vm2, %v3341_v50, %v3442_v43  ;;  %v8568_v50 = vld [vmem:[%s9328_s5] ss:$0 sm:$0xff]  ;;  %v8572_v43 = vpop.f32.mrf.mxu3 }
 0x3b7   : > { %v8558_v35 = vpack.c.bf16 %v4588_v32, %v4587_v29  ;;  %4437 = vmatmul.bf16.gmra.mxu1 %v3756_v12  ;;  %v4369_v15 = vpop.f32.mrf.mxu0  ;;  %v3156_v22 = vpack.c.b16 %v3136_v24, %v3135_v28  ;;  %v9957_v32 = vld [vmem:[#allocation18_spill] sm:$0xff]  ;;  %9958 = vst [vmem:[#allocation146_spill] sm:$0xff] %v8572_v43  ;;  %v4425_v23 = vpop.f32.mrf.mxu1  ;;  %v716_v28 = vadd.f32 %v5970_v49, %v9961_v6  ;;  %v9962_v24 = vld [vmem:[#allocation17_spill] sm:$0xff] }
 0x3b8   : > { %v8563_v40 = vadd.f32 %v4369_v15, %v8465_v59  ;;  %v4159_v29 = vadd.f32 %v8568_v50, %v9957_v32  ;;  %v9960_v12 = vld [vmem:[#allocation106_spill] sm:$0xff] }
 0x3b9   : > { %9953 = vst [vmem:[#allocation26_spill] sm:$0xff] %v8558_v35  ;;  %v714_v15 = vadd.f32 %v5970_v49, %v9960_v12  ;;  %v9966_v6 = vld [vmem:[#allocation74_spill] sm:$0xff] }
 0x3ba   : > { %9956 = vst [vmem:[#allocation35_spill] sm:$0xff] %v8563_v40  ;;  %v4248_v27 = vadd.f32 %v9959_v3, %v4159_v29  ;;  %v9963_v40 = vld [vmem:[#allocation122_spill] sm:$0xff]  ;;  %v9965_v29 = vld [vmem:[#allocation57_spill] sm:$0xff]  ;;  %v2383_v3 = vpop.permute.xlu2 %2382 }
 0x3bb   : > { %v4424_v43 = vadd.f32 %v4423_v26, %v9963_v40  ;;  %v803_v49 = vadd.f32 %v8507_v31, %v714_v15  ;;  %v3138_v31 = vunpack.c.l.b16 %v1922_v20  ;;  %v9969_v15 = vld [vmem:[#allocation86_spill] sm:$0xff] }
 0x3bc   : > { %v4512_v34 = vpop.f32.mrf.mxu2  ;;  %v4337_v32 = vadd.f32 %v9962_v24, %v4248_v27  ;;  %v4197_v27 = vadd.f32 %v8568_v50, %v9966_v6  ;;  %v1667_v6 = vmul.f32 %v9969_v15, %v8346_v18  ;;  %v9974_v15 = vld [vmem:[#allocation42_spill] sm:$0xff] }
 0x3bd   : > { %v3264_v38 = vpop.permute.xlu1 %3263  ;;  %v4513_v60 = vadd.f32 %v4512_v34, %v4424_v43  ;;  %v9968_v34 = vld [vmem:[#allocation66_spill] sm:$0xff] }
 0x3be   : > { %v3720_v59 = vsel %vm3545_vm2, %v3156_v22, %v3264_v38  ;;  %v1921_v22 = vpack.c.bf16 %v9964_v39, %v9964_v39  ;;  %v3342_v38 = vpack.c.b16 %v3316_v7, %v3315_v52  ;;  %v4426_v12 = vadd.f32 %v4425_v23, %v4337_v32  ;;  %v9967_v7 = vld [vmem:[#allocation92_spill] sm:$0xff] }
 0x3bf   : > { %4383 = vmatmul.bf16.gmra.mxu0 %v3720_v59  ;;  %v2643_v59 = vmul.f32 %v8455_v56, %v9965_v29  ;;  %v805_v52 = vadd.f32 %v8515_v44, %v716_v28  ;;  %v1668_v56 = vmul.f32 %v9967_v7, %v8351_v57  ;;  %v4589_v37 = vmax.f32 %v4513_v60, 0.0 }
 0x3c0   : > { %v3137_v35 = vunpack.c.l.b16 %v1921_v22  ;;  %v2458_v7 = vmul.f32 %v2383_v3, %v9777_v9 }
 0x3c1   : > { %v2675_v23 = vpack.c.bf16 %v2643_v59, %v2643_v59  ;;  %v1700_v28 = vpack.c.bf16 %v1668_v56, %v1668_v56  ;;  %v8605_v59 = vpop.f32.mrf.mxu0 }
 0x3c2   : > { %9970 = vst [vmem:[#allocation37_spill] sm:$0xff] %v8605_v59  ;;  %v3157_v20 = vpack.c.b16 %v3138_v31, %v3137_v35  ;;  %v2490_v9 = vpack.c.bf16 %v2458_v7, %v2458_v7 }
 0x3c3   : > { %v3444_v8 = vpop.permute.xlu0 %3443  ;;  %v3507_v22 = vunpack.c.l.b16 %v2675_v23 }
 0x3c4   : > { %v4514_v26 = vpop.f32.mrf.mxu2  ;;  %v3760_v40 = vsel %vm3545_vm2, %v3342_v38, %v3444_v8  ;;  %v8599_v8 = vmax.f32 %v803_v49, 0.0 }
 0x3c5   : > { %v2551_v24 = vpop.permute.xlu1 %2550  ;;  %v4515_v29 = vadd.f32 %v4514_v26, %v4426_v12  ;;  %v4285_v63 = vpop.f32.mrf.mxu3  ;;  %v8603_v12 = vmax.f32 %v805_v52, 0.0 }
 0x3c6   : > { %v2644_v43 = vmul.f32 %v2551_v24, %v9968_v34  ;;  %v4286_v32 = vadd.f32 %v4285_v63, %v4197_v27  ;;  %v1699_v27 = vpack.c.bf16 %v1667_v6, %v1667_v6  ;;  %v2559_v24 = vpop.permute.xlu2 %2558 }
 0x3c7   : > { %v4590_v10 = vmax.f32 %v4515_v29, 0.0  ;;  %4442 = vmatmul.bf16.gmra.mxu1 %v3760_v40  ;;  %v9467_v40 = vrot.slane %v8599_v8, 1  ;;  %v1030_v49 = vrot.slane %v8603_v12, 1  ;;  %v9972_v29 = vld [vmem:[#allocation65_spill] sm:$0xff] }
 0x3c8   : > { %v2676_v44 = vpack.c.bf16 %v2644_v43, %v2644_v43  ;;  %v4164_v35 = vadd.f32 %v8568_v50, %v9972_v29  ;;  %v2947_v43 = vunpack.c.l.b16 %v1699_v27  ;;  %v3402_v29 = vunpack.c.l.b16 %v2490_v9 }
 0x3c9   : > { %v8601_v38 = vpack.c.bf16 %v4590_v10, %v4589_v37  ;;  %v2948_v37 = vunpack.c.l.b16 %v1700_v28  ;;  %v8614_v52 = vsel %vm968_vm0, %v9467_v40, %v1030_v49  ;;  %v8621_v31 = vsel %vm968_vm0, %v1030_v49, 0.0  ;;  %v9979_v40 = vld [vmem:[#allocation46_spill] sm:$0xff] }
 0x3ca   : > { %v3508_v26 = vunpack.c.l.b16 %v2676_v44  ;;  %v4428_v63 = vpop.f32.mrf.mxu1  ;;  %9971 = vst [vmem:[#allocation38_spill] sm:$0xff] %v8614_v52  ;;  %v4253_v6 = vadd.f32 %v9974_v15, %v4164_v35  ;;  %v9975_v44 = vld [vmem:[#allocation99_spill] sm:$0xff]  ;;  %v2646_v59 = vmul.f32 %v2559_v24, %v9979_v40  ;;  %v9980_v35 = vld [vmem:[#allocation82_spill] sm:$0xff] }
 0x3cb   : > { %v3266_v60 = vpop.permute.xlu0 %3265  ;;  %9973 = vst [vmem:[#allocation48_spill] sm:$0xff] %v8621_v31  ;;  %v2087_v28 = vmul.f32 %v9975_v44, %v8614_v52  ;;  %v4429_v15 = vadd.f32 %v4428_v63, %v9980_v35  ;;  %v9982_v40 = vld [vmem:[#allocation62_spill] sm:$0xff] }
 0x3cc   : > { %v3534_v56 = vpack.c.b16 %v3508_v26, %v3507_v22  ;;  %v3724_v10 = vsel %vm3545_vm2, %v3157_v20, %v3266_v60  ;;  %v2966_v60 = vpack.c.b16 %v2948_v37, %v2947_v43 }
 0x3ce   : > { %v2379_v23 = vpop.permute.xlu1 %2378  ;;  %5597 = vmatmul.msk.bf16.gmra.mxu2 %vm3545_vm2, %v3534_v56  ;;  %v9976_v56 = vld [vmem:[#allocation144_spill] sm:$0xff]  ;;  %v8634_v37 = vpop.permute.xlu2 %2386 }
 0x3cf   : > { %v2457_v3 = vmul.f32 %v2379_v23, %v9778_v36  ;;  %4388 = vmatmul.bf16.gmra.mxu0 %v3724_v10  ;;  %v4517_v34 = vpop.f32.mrf.mxu2  ;;  %v2088_v7 = vmul.f32 %v9976_v56, %v8621_v31  ;;  %v9978_v23 = vld [vmem:[#allocation116_spill] sm:$0xff] }
 0x3d0   : > { %v4342_v49 = vadd.f32 %v9978_v23, %v4253_v6  ;;  %v4518_v43 = vadd.f32 %v4517_v34, %v4429_v15  ;;  %v8637_v6 = vpop.f32.mrf.mxu3 }
 0x3d1   : > { %v2489_v22 = vpack.c.bf16 %v2457_v3, %v2457_v3  ;;  %v2119_v3 = vpack.c.bf16 %v2087_v28, %v2087_v28  ;;  %v2120_v9 = vpack.c.bf16 %v2088_v7, %v2088_v7  ;;  %9981 = vst [vmem:[#allocation115_spill] sm:$0xff] %v8637_v6 }
 0x3d2   : > { %v4374_v26 = vpop.f32.mrf.mxu0  ;;  %v4430_v20 = vpop.f32.mrf.mxu1 }
 0x3d3   : > { %v3401_v36 = vunpack.c.l.b16 %v2489_v22  ;;  %v8628_v10 = vadd.f32 %v4374_v26, %v4286_v32  ;;  %v3076_v27 = vpop.permute.xlu0 %3075  ;;  %v4431_v56 = vadd.f32 %v4430_v20, %v4342_v49  ;;  %v2678_v26 = vpack.c.bf16 %v2646_v59, %v2646_v59  ;;  %v9984_v59 = vld [vmem:[#allocation14_spill] sm:$0xff] }
 0x3d4   : > { %v3664_v44 = vsel %vm3545_vm2, %v2966_v60, %v3076_v27  ;;  %v3223_v23 = vunpack.c.l.b16 %v2119_v3  ;;  %v4591_v60 = vmax.f32 %v4518_v43, 0.0  ;;  %v3224_v34 = vunpack.c.l.b16 %v2120_v9 }
 0x3d5   : > { %9977 = vst [vmem:[#allocation44_spill] sm:$0xff] %v8628_v10  ;;  %v3425_v52 = vpack.c.b16 %v3402_v29, %v3401_v36  ;;  %4304 = vmatmul.bf16.gmra.mxu3 %v3664_v44  ;;  %v3510_v7 = vunpack.c.l.b16 %v2678_v26  ;;  %v4169_v15 = vadd.f32 %v8568_v50, %v9984_v59  ;;  %v1923_v3 = vpack.c.bf16 %v9844_v13, %v9844_v13  ;;  %v9992_v10 = vld [vmem:[#allocation20_spill] sm:$0xff] }
 0x3d6   : > { %v1924_v43 = vpack.c.bf16 %v9842_v25, %v9842_v25 }
 0x3d7   : > { %v2555_v22 = vpop.permute.xlu1 %2554  ;;  %3449 = vrot.lane.b32.xlu1 %v3425_v52, %s6052_s21  ;;  %v4519_v32 = vpop.f32.mrf.mxu2  ;;  %v3240_v52 = vpack.c.b16 %v3224_v34, %v3223_v23  ;;  %v9990_v34 = vld [vmem:[#allocation118_spill] sm:$0xff] }
 0x3d8   : > { %v2645_v24 = vmul.f32 %v2555_v22, %v9982_v40  ;;  %v4520_v63 = vadd.f32 %v4519_v32, %v4431_v56  ;;  %v4202_v56 = vadd.f32 %v8568_v50, %v8353_v58  ;;  %v9985_v32 = vld [vmem:[#allocation117_spill] sm:$0xff]  ;;  %v2563_v58 = vpop.permute.xlu2 %2562 }
 0x3d9   : > { %v4258_v26 = vadd.f32 %v9985_v32, %v4169_v15  ;;  %v3139_v15 = vunpack.c.l.b16 %v1923_v3  ;;  %v3140_v32 = vunpack.c.l.b16 %v1924_v43 }
 0x3da   : > { %v2677_v28 = vpack.c.bf16 %v2645_v24, %v2645_v24  ;;  %v4592_v29 = vmax.f32 %v4520_v63, 0.0  ;;  %v8640_v36 = vpop.f32.mrf.mxu0  ;;  %v4433_v27 = vpop.f32.mrf.mxu1  ;;  %v9986_v24 = vld [vmem:[#allocation19_spill] sm:$0xff]  ;;  %v9987_v63 = vld [vmem:[#allocation120_spill] sm:$0xff] }
 0x3db   : > { %9983 = vst [vmem:[#allocation6_spill] sm:$0xff] %v8640_v36  ;;  %v2567_v20 = vpop.permute.xlu0 %2566  ;;  %v9988_v23 = vpack.c.b16 %v9986_v24, %v9987_v63  ;;  %v4347_v24 = vadd.f32 %v9992_v10, %v4258_v26  ;;  %v9993_v63 = vld [vmem:[#allocation8_spill] sm:$0xff] }
 0x3dc   : > { %v3509_v49 = vunpack.c.l.b16 %v2677_v28  ;;  %v8642_v35 = vpack.c.bf16 %v4592_v29, %v4591_v60  ;;  %v9989_v28 = vld [vmem:[#allocation5_spill] sm:$0xff] }
 0x3dd   : > { %v1026_v29 = vrot.slane %v9989_v28, 1 }
 0x3de   : > { %v3535_v44 = vpack.c.b16 %v3510_v7, %v3509_v49  ;;  %v2455_v7 = vmul.f32 %v8426_v41, %v9990_v34  ;;  %v9995_v41 = vrot.slane %v9853_v42, 1  ;;  %v3158_v34 = vpack.c.b16 %v3140_v32, %v3139_v15 }
 0x3df   : > { %v3446_v9 = vpop.permute.xlu1 %3445  ;;  %3271 = vrot.lane.b32.xlu1 %v3240_v52, %s6052_s21  ;;  %v4522_v22 = vpop.f32.mrf.mxu2  ;;  %v9991_v52 = vld [vmem:[#allocation100_spill] sm:$0xff]  ;;  %v2459_v32 = vmul.f32 %v8634_v37, %v9798_v54 }
 0x3e0   : > { %v4290_v40 = vpop.f32.mrf.mxu3  ;;  %5598 = vmatmul.msk.bf16.gmra.mxu2 %vm3545_vm2, %v3535_v44  ;;  %v3764_v60 = vsel %vm3545_vm2, %v9988_v23, %v3446_v9  ;;  %v2648_v59 = vmul.f32 %v2567_v20, %v9991_v52  ;;  %v2647_v9 = vmul.f32 %v2563_v58, %v9993_v63  ;;  %v9994_v23 = vld [vmem:[#allocation105_spill] sm:$0xff]  ;;  %v9996_v20 = vld [vmem:[#allocation51_spill] sm:$0xff]  ;;  %v9998_v52 = vrot.slane %v8599_v8, 1 }
 0x3e1   : > { %v4291_v49 = vadd.f32 %v4290_v40, %v4202_v56  ;;  %4447 = vmatmul.bf16.gmra.mxu1 %v3764_v60  ;;  %v4434_v6 = vadd.f32 %v4433_v27, %v9994_v23  ;;  %v8671_v56 = vsel %vm968_vm0, %v9995_v41, %v1026_v29  ;;  %v2487_v40 = vpack.c.bf16 %v2455_v7, %v2455_v7 }
 0x3e2   : > { %v4379_v31 = vpop.f32.mrf.mxu0  ;;  %v4435_v44 = vpop.f32.mrf.mxu1  ;;  %v2680_v3 = vpack.c.bf16 %v2648_v59, %v2648_v59  ;;  %v8680_v63 = vsel %vm968_vm0, %v1026_v29, %v9998_v52  ;;  %v2679_v7 = vpack.c.bf16 %v2647_v9, %v2647_v9  ;;  %v2491_v52 = vpack.c.bf16 %v2459_v32, %v2459_v32 }
 0x3e3   : > { %v8663_v36 = vadd.f32 %v4379_v31, %v4291_v49  ;;  %v4523_v43 = vadd.f32 %v4522_v22, %v4434_v6  ;;  %v4436_v31 = vadd.f32 %v4435_v44, %v4347_v24  ;;  %v9997_v49 = vld [vmem:[#allocation148_spill] sm:$0xff]  ;;  %v3399_v15 = vunpack.c.l.b16 %v2487_v40  ;;  %v10000_v44 = vld [vmem:[#allocation89_spill] sm:$0xff] }
 0x3e4   : > { %v2375_v57 = vpop.permute.xlu0 %2374  ;;  %v2085_v10 = vmul.f32 %v9997_v49, %v8671_v56  ;;  %v9999_v22 = vld [vmem:[#allocation52_spill] sm:$0xff]  ;;  %v1670_v24 = vmul.f32 %v10000_v44, %v8439_v61  ;;  %v3512_v29 = vunpack.c.l.b16 %v2680_v3  ;;  %v3511_v49 = vunpack.c.l.b16 %v2679_v7 }
 0x3e5   : > { %v2456_v60 = vmul.f32 %v2375_v57, %v9996_v20  ;;  %v2086_v59 = vmul.f32 %v9999_v22, %v8680_v63  ;;  %v4593_v41 = vmax.f32 %v4523_v43, 0.0  ;;  %v4207_v43 = vadd.f32 %v8568_v50, %v8390_v4  ;;  %v5634_v4 = vld [vmem:[%s9329_s6 + $0x30] sm:$0xf] }
 0x3e6   : > { %v2117_v20 = vpack.c.bf16 %v2085_v10, %v2085_v10  ;;  %v1702_v37 = vpack.c.bf16 %v1670_v24, %v1670_v24  ;;  %v933_v7 = vrot.slane %v8603_v12, 7  ;;  %v5769_v24 = vld [vmem:[%s9329_s6 + $0x34] sm:$0xf0] }
 0x3e7   : > { %v2488_v26 = vpack.c.bf16 %v2456_v60, %v2456_v60  ;;  %v3268_v58 = vpop.permute.xlu1 %3267  ;;  %2582 = vperm.xlu1 %5898, %v8478_v5   ;;  %v4524_v27 = vpop.f32.mrf.mxu2 }
 0x3e8   : > { %v4525_v23 = vadd.f32 %v4524_v27, %v4436_v31  ;;  %v8682_v57 = vpop.f32.mrf.mxu3  ;;  %v3728_v6 = vsel %vm3545_vm2, %v3158_v34, %v3268_v58  ;;  %v10001_v31 = vld [vmem:[#allocation95_spill] sm:$0xff]  ;;  %v2118_v27 = vpack.c.bf16 %v2086_v59, %v2086_v59  ;;  %v3221_v3 = vunpack.c.l.b16 %v2117_v20 }
 0x3e9   : > { %v3400_v5 = vunpack.c.l.b16 %v2488_v26  ;;  %4393 = vmatmul.bf16.gmra.mxu0 %v3728_v6  ;;  %v1669_v34 = vmul.f32 %v10001_v31, %v8432_v55  ;;  %v3536_v26 = vpack.c.b16 %v3512_v29, %v3511_v49  ;;  %v3403_v59 = vunpack.c.l.b16 %v2491_v52 }
 0x3ea   : > { %v4594_v9 = vmax.f32 %v4525_v23, 0.0  ;;  %v2950_v44 = vunpack.c.l.b16 %v1702_v37 }
 0x3eb   : > { %v3424_v60 = vpack.c.b16 %v3400_v5, %v3399_v15  ;;  %v1701_v6 = vpack.c.bf16 %v1669_v34, %v1669_v34  ;;  %v931_v5 = vrot.slane %v8599_v8, 7  ;;  %v10003_v34 = vrot.slane %v9989_v28, 7 }
 0x3ec   : > { %v8693_v58 = vpack.c.bf16 %v4594_v9, %v4593_v41  ;;  %v2391_v40 = vpop.permute.xlu0 %2390  ;;  %v5635_v9 = vor.u32 %v5769_v24, %v5634_v4 }
 0x3ed   : > { %v2460_v54 = vmul.f32 %v2391_v40, %v9794_v62  ;;  %3447 = vrot.lane.b32.xlu2 %v3424_v60, %s6052_s21  ;;  %v3222_v62 = vunpack.c.l.b16 %v2118_v27  ;;  %v2949_v20 = vunpack.c.l.b16 %v1701_v6  ;;  %v8714_v60 = vsel %vm871_vm1, %v931_v5, %v933_v7  ;;  %v10005_v27 = vld [vmem:[#allocation43_spill] sm:$0xff] }
 0x3ee   : > { %10002 = vst [vmem:[#allocation129_spill] sm:$0xff] %v8714_v60  ;;  %v8721_v49 = vsel %vm871_vm1, %v10003_v34, %v931_v5  ;;  %4741 = vmatpush.bf16.msra.mxu3 %v5635_v9  ;;  %v1864_v52 = vmul.f32 %v10005_v27, %v8714_v60 }
 0x3ef   : > { %v2492_v10 = vpack.c.bf16 %v2460_v54, %v2460_v54  ;;  %v8699_v23 = vpop.permute.xlu1 %2178  ;;  %5901 = vset.pattern.permute.xlu1 %v9667_v45  ;;  %v3239_v29 = vpack.c.b16 %v3222_v62, %v3221_v3  ;;  %v2967_v31 = vpack.c.b16 %v2950_v44, %v2949_v20  ;;  %10004 = vst [vmem:[#allocation47_spill] sm:$0xff] %v8721_v49  ;;  %v5636_v3 = vld [vmem:[%s9329_s6 + $0x38] sm:$0xf0]  ;;  %v5972_v62 = vld [vmem:[%s9324_s1 + $0xc8] sm:$0xff] }
 0x3f0   : > { %v4295_v22 = vpop.f32.mrf.mxu3  ;;  %5599 = vmatmul.msk.bf16.gmra.mxu2 %vm3545_vm2, %v3536_v26  ;;  %v5768_v26 = vld [vmem:[%s9329_s6 + $0x34] sm:$0xf]  ;;  %v1896_v6 = vpack.c.bf16 %v1864_v52, %v1864_v52 }
 0x3f1   : > { %v3404_v15 = vunpack.c.l.b16 %v2492_v10  ;;  %v8704_v32 = vadd.f32 %v4295_v22, %v4207_v43  ;;  %v10007_v43 = vld [vmem:[#allocation39_spill] sm:$0xff]  ;;  %v5639_v7 = vor.u32 %v5768_v26, %v5636_v3  ;;  %v5971_v22 = vld [vmem:[%s9324_s1 + $0x88] sm:$0xff]  ;;  %v8774_v26 = vld [vmem:[%s9324_s1 + $0xe0] sm:$0xff] }
 0x3f2   : > { %v1863_v10 = vmul.f32 %v10007_v43, %v8721_v49  ;;  %v3032_v4 = vunpack.c.l.b16 %v1896_v6  ;;  %v5973_v52 = vld [vmem:[%s9324_s1 + $0xb0] sm:$0xff]  ;;  %v5626_v3 = vld [vmem:[%s9329_s6 + $0x20] sm:$0xf]  ;;  %v5767_v43 = vld [vmem:[%s9329_s6 + $0x24] sm:$0xf0] }
 0x3f3   : > { %v3426_v41 = vpack.c.b16 %v3404_v15, %v3403_v59  ;;  %4830 = vmatpush.bf16.msra.mxu0 %v5639_v7  ;;  %v4212_v15 = vadd.f32 %v8568_v50, %v8445_v48  ;;  %v8786_v7 = vpop.f32.mrf.mxu0 }
 0x3f4   : > { %v1895_v59 = vpack.c.bf16 %v1863_v10, %v1863_v10  ;;  %v2395_v5 = vpop.permute.xlu0 %2394  ;;  %v5627_v10 = vor.u32 %v5767_v43, %v5626_v3 }
 0x3f5   : > { %3269 = vrot.lane.b32.xlu2 %v3239_v29, %s6052_s21  ;;  %3451 = vrot.lane.b32.xlu1 %v3426_v41, %s6052_s21  ;;  %v2461_v20 = vmul.f32 %v2395_v5, %v7356_v0  ;;  %v5974_v0 = vld [vmem:[%s9324_s1 + $0x90] sm:$0xff]  ;;  %v5766_v5 = vld [vmem:[%s9329_s6 + $0x24] sm:$0xf] }
 0x3f6   : > { %v3031_v9 = vunpack.c.l.b16 %v1895_v59  ;;  %4742 = vmatpush.bf16.msra.mxu3 %v5627_v10  ;;  %v10008_v59 = vld [vmem:[#allocation121_spill] sm:$0xff] }
 0x3f7   : > { %v3078_v40 = vpop.permute.xlu1 %3077 }
 0x3f8   : > { %v8725_v54 = vpop.f32.mrf.mxu3  ;;  %v3668_v37 = vsel %vm3545_vm2, %v2967_v31, %v3078_v40  ;;  %v3048_v31 = vpack.c.b16 %v3032_v4, %v3031_v9  ;;  %v2493_v40 = vpack.c.bf16 %v2461_v20, %v2461_v20  ;;  %v4527_v6 = vpop.f32.mrf.mxu2  ;;  %v10010_v9 = vld [vmem:[#allocation81_spill] sm:$0xff] }
 0x3f9   : > { %10006 = vst [vmem:[#allocation50_spill] sm:$0xff] %v8725_v54  ;;  %4309 = vmatmul.bf16.gmra.mxu3 %v3668_v37  ;;  %v8768_v37 = vld [vmem:[%s9324_s1 + $0xc0] sm:$0xff] }
 0x3fa   : > { %v3405_v27 = vunpack.c.l.b16 %v2493_v40  ;;  %v10012_v40 = vld [vmem:[#allocation128_spill] sm:$0xff] }
 0x3fd   : > { %2574 = vperm.xlu2 %5893, %v5971_v22   ;;  %2414 = vperm.xlu1 %5901, %v5972_v62  }
 0x3ff   : > { %v2399_v44 = vpop.permute.xlu1 %2398 }
 0x400   : > { %v2462_v24 = vmul.f32 %v2399_v44, %v9950_v21  ;;  %v4300_v29 = vpop.f32.mrf.mxu3  ;;  %v5628_v44 = vld [vmem:[%s9329_s6 + $0x28] sm:$0xf0] }
 0x401   : > { %v8745_v41 = vadd.f32 %v4300_v29, %v4212_v15  ;;  %v4174_v15 = vadd.f32 %v8568_v50, %v10008_v59  ;;  %v5631_v4 = vor.u32 %v5766_v5, %v5628_v44  ;;  %v2183_v29 = vpop.permute.xlu2 %2182  ;;  %v8810_v5 = vpop.permute.xlu0 %2406 }
 0x402   : > { %v2494_v34 = vpack.c.bf16 %v2462_v24, %v2462_v24  ;;  %v10009_v24 = vld [vmem:[#allocation56_spill] sm:$0xff] }
 0x403   : > { %4831 = vmatpush.bf16.msra.mxu0 %v5631_v4 }
 0x404   : > { %v3406_v48 = vunpack.c.l.b16 %v2494_v34 }
 0x405   : > { %3079 = vrot.lane.b32.xlu2 %v3048_v31, %s6052_s21  ;;  %5904 = vset.pattern.permute.xlu1 %v9870_v2  ;;  %v10011_v31 = vld [vmem:[#allocation102_spill] sm:$0xff] }
 0x406   : > { %2202 = vperm.xlu1 %5904, %v8488_v46   ;;  %5895 = vset.pattern.permute.xlu2 %v9667_v45  ;;  %v3427_v21 = vpack.c.b16 %v3406_v48, %v3405_v27  ;;  %v2263_v34 = vmul.f32 %v8699_v23, %v10011_v31  ;;  %v10013_v27 = vld [vmem:[#allocation59_spill] sm:$0xff]  ;;  %v1926_v31 = vpack.c.bf16 %v9989_v28, %v9989_v28 }
 0x408   : > { %v8805_v3 = vpop.permute.xlu1 %2570  ;;  %v2295_v59 = vpack.c.bf16 %v2263_v34, %v2263_v34 }
 0x40a   : > { %v3319_v4 = vunpack.c.l.b16 %v2295_v59  ;;  %v10017_v59 = vld [vmem:[#allocation119_spill] sm:$0xff] }
 0x40d   : > { %2402 = vperm.xlu2 %5895, %v5973_v52  }
 0x40e   : > { %3453 = vrot.lane.b32.xlu1 %v3427_v21, %s6052_s21  ;;  %v2264_v21 = vmul.f32 %v2183_v29, %v10013_v27  ;;  %v2187_v27 = vpop.permute.xlu0 %2186 }
 0x40f   : > { %5908 = vset.pattern.permute.xlu1 %v9728_v1 }
 0x411   : > { %v2191_v34 = vpop.permute.xlu1 %2190 }
 0x415   : > { %5897 = vset.pattern.permute.xlu2 %v9728_v1 }
 0x416   : > { %2578 = vperm.xlu2 %5897, %v5974_v0   ;;  %2594 = vperm.xlu1 %5908, %v5973_v52  }
 0x41e   : > { %5899 = vset.pattern.permute.xlu2 %v9870_v2  ;;  %5910 = vset.pattern.permute.xlu1 %v9870_v2 }
 0x41f   : > { %2194 = vperm.xlu2 %5899, %v5974_v0   ;;  %2210 = vperm.xlu1 %5910, %v5973_v52  }
 0x427   : > { %5900 = vset.pattern.permute.xlu2 %v9667_v45  ;;  %5912 = vset.pattern.permute.xlu1 %v9667_v45 }
 0x428   : > { %2410 = vperm.xlu2 %5900, %v8768_v37   ;;  %2426 = vperm.xlu1 %5912, %v8774_v26  }
 0x430   : > { %5902 = vset.pattern.permute.xlu2 %v9728_v1  ;;  %5915 = vset.pattern.permute.xlu1 %v9728_v1 }
 0x431   : > { %2586 = vperm.xlu2 %5902, %v8488_v46   ;;  %2606 = vperm.xlu1 %5915, %v5972_v62   ;;  %v4263_v46 = vadd.f32 %v10009_v24, %v4174_v15  ;;  %v4529_v15 = vpop.f32.mrf.mxu2 }
 0x433   : > { %v4352_v48 = vadd.f32 %v10012_v40, %v4263_v46 }
 0x434   : > { %v4438_v22 = vpop.f32.mrf.mxu1 }
 0x435   : > { %v4439_v20 = vadd.f32 %v4438_v22, %v10010_v9 }
 0x437   : > { %v4528_v43 = vadd.f32 %v4527_v6, %v4439_v20  ;;  %v8825_v6 = vld [vmem:[%s9324_s1 + $0xf8] sm:$0xff]  ;;  %v1925_v20 = vpack.c.bf16 %v9853_v42, %v9853_v42 }
 0x439   : > { %5905 = vset.pattern.permute.xlu2 %v9870_v2  ;;  %5917 = vset.pattern.permute.xlu1 %v9870_v2 }
 0x43a   : > { %2206 = vperm.xlu2 %5905, %v8504_v11   ;;  %2222 = vperm.xlu1 %5917, %v5972_v62   ;;  %v2296_v11 = vpack.c.bf16 %v2264_v21, %v2264_v21  ;;  %v4595_v62 = vmax.f32 %v4528_v43, 0.0  ;;  %v10016_v21 = vld [vmem:[#allocation111_spill] sm:$0xff]  ;;  %v3142_v43 = vunpack.c.l.b16 %v1926_v31 }
 0x43c   : > { %v4384_v52 = vpop.f32.mrf.mxu0  ;;  %v4440_v0 = vpop.f32.mrf.mxu1  ;;  %v3320_v46 = vunpack.c.l.b16 %v2296_v11 }
 0x43d   : > { %v8808_v10 = vadd.f32 %v4384_v52, %v8704_v32  ;;  %v4441_v22 = vadd.f32 %v4440_v0, %v4352_v48  ;;  %v8819_v32 = vld [vmem:[%s9324_s1 + $0xd0] sm:$0xff]  ;;  %v2266_v52 = vmul.f32 %v2191_v34, %v10016_v21  ;;  %v3141_v0 = vunpack.c.l.b16 %v1925_v20  ;;  %v10019_v20 = vld [vmem:[#allocation53_spill] sm:$0xff] }
 0x43e   : > { %v3344_v9 = vpack.c.b16 %v3320_v46, %v3319_v4  ;;  %v5618_v4 = vld [vmem:[%s9329_s6 + $0x10] sm:$0xf]  ;;  %v5765_v46 = vld [vmem:[%s9329_s6 + $0x14] sm:$0xf0]  ;;  %v4179_v31 = vadd.f32 %v8568_v50, %v10019_v20 }
 0x43f   : > { %10014 = vst [vmem:[#allocation132_spill] sm:$0xff] %v8808_v10  ;;  %v4530_v23 = vadd.f32 %v4529_v15, %v4441_v22  ;;  %v2265_v15 = vmul.f32 %v2187_v27, %v10017_v59  ;;  %v8858_v27 = vpop.f32.mrf.mxu3  ;;  %v5762_v59 = vld [vmem:[%s9329_s6 + $0x4] sm:$0xf] }
 0x440   : > { %10020 = vst [vmem:[#allocation101_spill] sm:$0xff] %v8858_v27  ;;  %v2649_v27 = vmul.f32 %v8805_v3, %v7994_v51  ;;  %v1928_v51 = vpack.c.bf16 %v8603_v12, %v8603_v12 }
 0x441   : > { %v4596_v44 = vmax.f32 %v4530_v23, 0.0 }
 0x442   : > { %5906 = vset.pattern.permute.xlu2 %v9667_v45  ;;  %5919 = vset.pattern.permute.xlu1 %v9667_v45 }
 0x443   : > { %v8814_v24 = vpack.c.bf16 %v4596_v44, %v4595_v62  ;;  %2418 = vperm.xlu2 %5906, %v8819_v32   ;;  %2438 = vperm.xlu1 %5919, %v8825_v6   ;;  %v2298_v62 = vpack.c.bf16 %v2266_v52, %v2266_v52  ;;  %v3159_v44 = vpack.c.b16 %v3142_v43, %v3141_v0  ;;  %v5610_v0 = vld [vmem:[%s9329_s6] sm:$0xf]  ;;  %v5763_v43 = vld [vmem:[%s9329_s6 + $0x4] sm:$0xf0] }
 0x444   : > { %v8828_v29 = vpop.f32.mrf.mxu0  ;;  %v4443_v22 = vpop.f32.mrf.mxu1 }
 0x445   : > { %10015 = vst [vmem:[#allocation103_spill] sm:$0xff] %v8828_v29  ;;  %v3322_v20 = vunpack.c.l.b16 %v2298_v62 }
 0x447   : > { %v3448_v40 = vpop.permute.xlu2 %3447 }
 0x448   : > { %v3768_v48 = vsel %vm3545_vm2, %v3344_v9, %v3448_v40  ;;  %v5764_v9 = vld [vmem:[%s9329_s6 + $0x14] sm:$0xf]  ;;  %v5620_v40 = vld [vmem:[%s9329_s6 + $0x18] sm:$0xf0] }
 0x449   : > { %4452 = vmatmul.bf16.gmra.mxu1 %v3768_v48  ;;  %v2297_v48 = vpack.c.bf16 %v2265_v15, %v2265_v15  ;;  %v5623_v52 = vor.u32 %v5764_v9, %v5620_v40  ;;  %v5612_v9 = vld [vmem:[%s9329_s6 + $0x8] sm:$0xf0] }
 0x44a   : > { %v10022_v40 = vld [vmem:[#allocation94_spill] sm:$0xff] }
 0x44b   : > { %5909 = vset.pattern.permute.xlu2 %v9728_v1  ;;  %5921 = vset.pattern.permute.xlu1 %v9728_v1  ;;  %v3321_v29 = vunpack.c.l.b16 %v2297_v48  ;;  %v4217_v48 = vadd.f32 %v8568_v50, %v8473_v14 }
 0x44c   : > { %v4389_v23 = vpop.f32.mrf.mxu0  ;;  %2598 = vperm.xlu2 %5909, %v8498_v19   ;;  %2614 = vperm.xlu1 %5921, %v8543_v17  }
 0x44d   : > { %v8842_v11 = vadd.f32 %v4389_v23, %v8745_v41  ;;  %v5619_v41 = vor.u32 %v5765_v46, %v5618_v4  ;;  %v10021_v23 = vld [vmem:[#allocation96_spill] sm:$0xff]  ;;  %v4268_v4 = vadd.f32 %v8359_v16, %v4179_v31  ;;  %4832 = vmatpush.bf16.msra.mxu0 %v5623_v52  ;;  %v3345_v62 = vpack.c.b16 %v3322_v20, %v3321_v29  ;;  %v10024_v52 = vld [vmem:[#allocation33_spill] sm:$0xff] }
 0x44e   : > { %v1672_v15 = vmul.f32 %v10021_v23, %v8680_v63  ;;  %v3450_v23 = vpop.permute.xlu1 %3449  ;;  %v10023_v31 = vld [vmem:[#allocation104_spill] sm:$0xff] }
 0x44f   : > { %10018 = vst [vmem:[#allocation133_spill] sm:$0xff] %v8842_v11  ;;  %v3270_v34 = vpop.permute.xlu2 %3269  ;;  %4743 = vmatpush.bf16.msra.mxu3 %v5619_v41  ;;  %v1671_v11 = vmul.f32 %v10022_v40, %v8671_v56  ;;  %v4357_v41 = vadd.f32 %v10023_v31, %v4268_v4 }
 0x450   : > { %v3732_v21 = vsel %vm3545_vm2, %v3159_v44, %v3270_v34  ;;  %v5611_v44 = vor.u32 %v5763_v43, %v5610_v0  ;;  %v5615_v34 = vor.u32 %v5762_v59, %v5612_v9  ;;  %v1704_v16 = vpack.c.bf16 %v1672_v15, %v1672_v15 }
 0x451   : > { %v4532_v46 = vpop.f32.mrf.mxu2  ;;  %4398 = vmatmul.bf16.gmra.mxu0 %v3732_v21  ;;  %v4445_v21 = vpop.f32.mrf.mxu1  ;;  %v4444_v0 = vadd.f32 %v4443_v22, %v10024_v52  ;;  %v1927_v43 = vpack.c.bf16 %v8599_v8, %v8599_v8  ;;  %v1703_v3 = vpack.c.bf16 %v1671_v11, %v1671_v11  ;;  %v2681_v59 = vpack.c.bf16 %v2649_v27, %v2649_v27 }
 0x452   : > { %4833 = vmatpush.bf16.msra.mxu0 %v5615_v34  ;;  %v4446_v4 = vadd.f32 %v4445_v21, %v4357_v41  ;;  %v3772_v22 = vsel %vm3545_vm2, %v3345_v62, %v3450_v23  ;;  %v2952_v20 = vunpack.c.l.b16 %v1704_v16  ;;  %v3144_v11 = vunpack.c.l.b16 %v1928_v51  ;;  %v8900_v62 = vld [vmem:[%s9324_s1 + $0xe8] sm:$0xff] }
 0x453   : > { %4744 = vmatpush.bf16.msra.mxu3 %v5611_v44  ;;  %v4533_v9 = vadd.f32 %v4532_v46, %v4444_v0  ;;  %v3143_v34 = vunpack.c.l.b16 %v1927_v43  ;;  %v2951_v54 = vunpack.c.l.b16 %v1703_v3  ;;  %v3513_v60 = vunpack.c.l.b16 %v2681_v59 }
 0x454   : > { %5911 = vset.pattern.permute.xlu2 %v9870_v2  ;;  %v8893_v46 = vpop.f32.mrf.mxu0 }
 0x455   : > { %2214 = vperm.xlu2 %5911, %v8498_v19   ;;  %v10025_v19 = vld [vmem:[#allocation73_spill] sm:$0xff]  ;;  %v4597_v14 = vmax.f32 %v4533_v9, 0.0  ;;  %v2968_v0 = vpack.c.b16 %v2952_v20, %v2951_v54  ;;  %v3160_v43 = vpack.c.b16 %v3144_v11, %v3143_v34 }
 0x456   : > { %v3272_v41 = vpop.permute.xlu1 %3271 }
 0x457   : > { %v2575_v15 = vpop.permute.xlu2 %2574  ;;  %v3736_v3 = vsel %vm3545_vm2, %v3160_v43, %v3272_v41 }
 0x458   : > { %v2650_v44 = vmul.f32 %v2575_v15, %v10025_v19  ;;  %v4305_v29 = vpop.f32.mrf.mxu3  ;;  %v2464_v15 = vmul.f32 %v8810_v5, %v9826_v53 }
 0x459   : > { %v4306_v40 = vadd.f32 %v4305_v29, %v4217_v48  ;;  %v4534_v31 = vpop.f32.mrf.mxu2  ;;  %4457 = vmatmul.bf16.gmra.mxu1 %v3772_v22 }
 0x45a   : > { %v2682_v52 = vpack.c.bf16 %v2650_v44, %v2650_v44  ;;  %v4535_v10 = vadd.f32 %v4534_v31, %v4446_v4  ;;  %v2496_v29 = vpack.c.bf16 %v2464_v15, %v2464_v15  ;;  %v10030_v15 = vld [vmem:[#allocation21_spill] sm:$0xff] }
 0x45c   : > { %v3514_v27 = vunpack.c.l.b16 %v2682_v52  ;;  %v4598_v49 = vmax.f32 %v4535_v10, 0.0  ;;  %v3408_v34 = vunpack.c.l.b16 %v2496_v29  ;;  %v10031_v29 = vld [vmem:[#allocation22_spill] sm:$0xff] }
 0x45d   : > { %5913 = vset.pattern.permute.xlu2 %v9667_v45 }
 0x45e   : > { %v3537_v21 = vpack.c.b16 %v3514_v27, %v3513_v60  ;;  %v8895_v23 = vpack.c.bf16 %v4598_v49, %v4597_v14  ;;  %v4448_v16 = vpop.f32.mrf.mxu1  ;;  %2430 = vperm.xlu2 %5913, %v8900_v62   ;;  %v10026_v60 = vld [vmem:[#allocation124_spill] sm:$0xff] }
 0x45f   : > { %v3080_v51 = vpop.permute.xlu2 %3079  ;;  %v4184_v49 = vadd.f32 %v8568_v50, %v10026_v60  ;;  %v4449_v22 = vadd.f32 %v4448_v16, %v8387_v47  ;;  %v10027_v14 = vld [vmem:[#allocation72_spill] sm:$0xff]  ;;  %v10028_v16 = vld [vmem:[#allocation110_spill] sm:$0xff] }
 0x460   : > { %5600 = vmatmul.msk.bf16.gmra.mxu2 %vm3545_vm2, %v3537_v21  ;;  %v3672_v10 = vsel %vm3545_vm2, %v2968_v0, %v3080_v51  ;;  %v10029_v51 = vld [vmem:[#allocation26_spill] sm:$0xff] }
 0x461   : > { %4314 = vmatmul.bf16.gmra.mxu3 %v3672_v10  ;;  %4403 = vmatmul.bf16.gmra.mxu0 %v3736_v3  ;;  %v4273_v59 = vadd.f32 %v8396_v33, %v4184_v49  ;;  %v2583_v33 = vpop.permute.xlu1 %2582  ;;  %v2199_v3 = vpop.permute.xlu0 %2198 }
 0x462   : > { %v2652_v27 = vmul.f32 %v2583_v33, %v10027_v14  ;;  %v8928_v49 = vpop.f32.mrf.mxu3 }
 0x463   : > { %v4537_v48 = vpop.f32.mrf.mxu2  ;;  %v4362_v44 = vadd.f32 %v8521_v30, %v4273_v59 }
 0x464   : > { %v4538_v31 = vadd.f32 %v4537_v48, %v4449_v22 }
 0x466   : > { %v4394_v54 = vpop.f32.mrf.mxu0  ;;  %5916 = vset.pattern.permute.xlu2 %v9870_v2  ;;  %v4450_v9 = vpop.f32.mrf.mxu1  ;;  %v4599_v41 = vmax.f32 %v4538_v31, 0.0 }
 0x467   : > { %v8912_v4 = vadd.f32 %v4394_v54, %v4306_v40  ;;  %2218 = vperm.xlu2 %5916, %v8768_v37   ;;  %v2403_v19 = vpop.permute.xlu2 %2402  ;;  %v4451_v52 = vadd.f32 %v4450_v9, %v4362_v44  ;;  %v2268_v54 = vmul.f32 %v2199_v3, %v10030_v15  ;;  %v10034_v3 = vld [vmem:[#allocation7_spill] sm:$0xff] }
 0x468   : > { %v2463_v20 = vmul.f32 %v2403_v19, %v9964_v39  ;;  %v2684_v39 = vpack.c.bf16 %v2652_v27, %v2652_v27  ;;  %v10035_v15 = vld [vmem:[#allocation11_spill] sm:$0xff] }
 0x469   : > { %v3452_v10 = vpop.permute.xlu1 %3451  ;;  %v2300_v44 = vpack.c.bf16 %v2268_v54, %v2268_v54 }
 0x46a   : > { %v2495_v53 = vpack.c.bf16 %v2463_v20, %v2463_v20  ;;  %v3516_v48 = vunpack.c.l.b16 %v2684_v39  ;;  %v10032_v20 = vld [vmem:[#allocation69_spill] sm:$0xff]  ;;  %v10033_v39 = vld [vmem:[#allocation32_spill] sm:$0xff] }
 0x46b   : > { %v4539_v5 = vpop.f32.mrf.mxu2  ;;  %v4222_v33 = vadd.f32 %v8568_v50, %v10032_v20 }
 0x46c   : > { %v3407_v11 = vunpack.c.l.b16 %v2495_v53  ;;  %v4540_v40 = vadd.f32 %v4539_v5, %v4451_v52 }
 0x46e   : > { %v3428_v21 = vpack.c.b16 %v3408_v34, %v3407_v11  ;;  %v4600_v0 = vmax.f32 %v4540_v40, 0.0  ;;  %v3324_v34 = vunpack.c.l.b16 %v2300_v44 }
 0x46f   : > { %5920 = vset.pattern.permute.xlu2 %v9728_v1 }
 0x470   : > { %v8920_v30 = vpack.c.bf16 %v4600_v0, %v4599_v41  ;;  %3455 = vrot.lane.b32.xlu0 %v3428_v21, %s6052_s21  ;;  %v2579_v47 = vpop.permute.xlu2 %2578 }
 0x471   : > { %v2651_v43 = vmul.f32 %v2579_v47, %v10028_v16  ;;  %5640 = vmatmul.msk.bf16.vlgmr.msra.gmra.mxu3 %vm3545_vm2, %v10029_v51  ;;  %5656 = vmatmul.msk.bf16.vlgmr.msra.gmra.mxu0 %vm3545_vm2, %v10029_v51  ;;  %v2415_v31 = vpop.permute.xlu1 %2414 }
 0x472   : > { %v2466_v40 = vmul.f32 %v2415_v31, %v9842_v25 }
 0x473   : > { %v2683_v60 = vpack.c.bf16 %v2651_v43, %v2651_v43 }
 0x474   : > { %v2498_v25 = vpack.c.bf16 %v2466_v40, %v2466_v40 }
 0x475   : > { %v3515_v59 = vunpack.c.l.b16 %v2683_v60 }
 0x476   : > { %v3410_v0 = vunpack.c.l.b16 %v2498_v25 }
 0x477   : > { %v3538_v9 = vpack.c.b16 %v3516_v48, %v3515_v59 }
 0x478   : > { %2602 = vperm.xlu0 %5914, %v8768_v37   ;;  %v8943_v37 = vld [vmem:[%s9324_s1 + $0xf0] sm:$0xff] }
 0x479   : > { %v2195_v19 = vpop.permute.xlu2 %2194  ;;  %5601 = vmatmul.msk.bf16.gmra.mxu2 %vm3545_vm2, %v3538_v9  ;;  %v2203_v51 = vpop.permute.xlu1 %2202 }
 0x47a   : > { %v2267_v22 = vmul.f32 %v2195_v19, %v10031_v29  ;;  %v2269_v54 = vmul.f32 %v2203_v51, %v10035_v15  ;;  %v10036_v29 = vld [vmem:[#allocation25_spill] sm:$0xff] }
 0x47c   : > { %v2299_v52 = vpack.c.bf16 %v2267_v22, %v2267_v22  ;;  %v4310_v53 = vpop.f32.mrf.mxu3  ;;  %v2301_v44 = vpack.c.bf16 %v2269_v54, %v2269_v54  ;;  %v10040_v54 = vld [vmem:[#allocation12_spill] sm:$0xff] }
 0x47d   : > { %v8936_v5 = vadd.f32 %v4310_v53, %v4222_v33 }
 0x47e   : > { %v3323_v11 = vunpack.c.l.b16 %v2299_v52  ;;  %v3325_v31 = vunpack.c.l.b16 %v2301_v44 }
 0x480   : > { %v3346_v14 = vpack.c.b16 %v3324_v34, %v3323_v11  ;;  %5918 = vset.pattern.permute.xlu0 %v9667_v45  ;;  %v2591_v45 = vpop.permute.xlu0 %2590 }
 0x481   : > { %2434 = vperm.xlu0 %5918, %v8943_v37   ;;  %5641 = vmatmul.msk.bf16.gmra.mxu3 %vm3545_vm2, %v8601_v38  ;;  %v2654_v16 = vmul.f32 %v2591_v45, %v10033_v39 }
 0x482   : > { %5657 = vmatmul.msk.bf16.gmra.mxu0 %vm3545_vm2, %v8601_v38  ;;  %v2411_v50 = vpop.permute.xlu2 %2410  ;;  %v3776_v27 = vsel %vm3545_vm2, %v3346_v14, %v3452_v10 }
 0x483   : > { %v2465_v41 = vmul.f32 %v2411_v50, %v9844_v13  ;;  %4462 = vmatmul.bf16.gmra.mxu1 %v3776_v27  ;;  %v2686_v10 = vpack.c.bf16 %v2654_v16, %v2654_v16 }
 0x485   : > { %v2497_v21 = vpack.c.bf16 %v2465_v41, %v2465_v41  ;;  %v3518_v48 = vunpack.c.l.b16 %v2686_v10 }
 0x487   : > { %v3409_v47 = vunpack.c.l.b16 %v2497_v21  ;;  %v10037_v21 = vld [vmem:[#allocation109_spill] sm:$0xff] }
 0x488   : > { %v2423_v20 = vpop.permute.xlu0 %2422 }
 0x489   : > { %v3429_v43 = vpack.c.b16 %v3410_v0, %v3409_v47  ;;  %5923 = vset.pattern.permute.xlu0 %v9870_v2  ;;  %v2468_v53 = vmul.f32 %v2423_v20, %v9989_v28 }
 0x48a   : > { %2230 = vperm.xlu0 %5923, %v8543_v17   ;;  %v3454_v17 = vpop.permute.xlu1 %3453 }
 0x48b   : > { %3457 = vrot.lane.b32.xlu2 %v3429_v43, %s6052_s21  ;;  %v2587_v38 = vpop.permute.xlu2 %2586  ;;  %v2500_v40 = vpack.c.bf16 %v2468_v53, %v2468_v53  ;;  %v10042_v53 = vld [vmem:[#allocation24_spill] sm:$0xff] }
 0x48c   : > { %v2653_v60 = vmul.f32 %v2587_v38, %v10034_v3 }
 0x48d   : > { %v3412_v28 = vunpack.c.l.b16 %v2500_v40  ;;  %v10043_v40 = vld [vmem:[#allocation67_spill] sm:$0xff] }
 0x48e   : > { %v2685_v13 = vpack.c.bf16 %v2653_v60, %v2653_v60 }
 0x490   : > { %v3517_v59 = vunpack.c.l.b16 %v2685_v13 }
 0x491   : > { %5642 = vmatmul.msk.bf16.gmra.mxu3 %vm3545_vm2, %v8642_v35 }
 0x492   : > { %v3539_v9 = vpack.c.b16 %v3518_v48, %v3517_v59  ;;  %5658 = vmatmul.msk.bf16.gmra.mxu0 %vm3545_vm2, %v8642_v35  ;;  %2238 = vperm.xlu0 %5923, %v8900_v62   ;;  %v2595_v14 = vpop.permute.xlu1 %2594  ;;  %v10039_v59 = vld [vmem:[#allocation45_spill] sm:$0xff] }
 0x493   : > { %2610 = vperm.xlu2 %5920, %v8819_v32   ;;  %v2655_v41 = vmul.f32 %v2595_v14, %v8346_v18 }
 0x494   : > { %v2207_v19 = vpop.permute.xlu2 %2206  ;;  %5602 = vmatmul.msk.bf16.gmra.mxu2 %vm3545_vm2, %v3539_v9 }
 0x495   : > { %v2270_v22 = vmul.f32 %v2207_v19, %v10036_v29  ;;  %v2687_v45 = vpack.c.bf16 %v2655_v41, %v2655_v41 }
 0x497   : > { %v2302_v33 = vpack.c.bf16 %v2270_v22, %v2270_v22  ;;  %v3519_v16 = vunpack.c.l.b16 %v2687_v45 }
 0x499   : > { %v3326_v52 = vunpack.c.l.b16 %v2302_v33 }
 0x49a   : > { %5927 = vset.pattern.permute.xlu0 %v9728_v1  ;;  %v2211_v47 = vpop.permute.xlu1 %2210 }
 0x49b   : > { %v3347_v35 = vpack.c.b16 %v3326_v52, %v3325_v31  ;;  %5922 = vset.pattern.permute.xlu2 %v9870_v2  ;;  %2630 = vperm.xlu0 %5927, %v8825_v6   ;;  %v2271_v14 = vmul.f32 %v2211_v47, %v10043_v40 }
 0x49c   : > { %2226 = vperm.xlu2 %5922, %v8819_v32  }
 0x49d   : > { %v2419_v34 = vpop.permute.xlu2 %2418  ;;  %v3780_v11 = vsel %vm3545_vm2, %v3347_v35, %v3454_v17  ;;  %v10041_v17 = vld [vmem:[#allocation143_spill] sm:$0xff] }
 0x49e   : > { %v2467_v50 = vmul.f32 %v2419_v34, %v9853_v42  ;;  %4467 = vmatmul.bf16.gmra.mxu1 %v3780_v11 }
 0x4a0   : > { %v2499_v27 = vpack.c.bf16 %v2467_v50, %v2467_v50 }
 0x4a1   : > { %5643 = vmatmul.msk.bf16.gmra.mxu3 %vm3545_vm2, %v8693_v58 }
 0x4a2   : > { %v3411_v25 = vunpack.c.l.b16 %v2499_v27  ;;  %5659 = vmatmul.msk.bf16.gmra.mxu0 %vm3545_vm2, %v8693_v58  ;;  %v2427_v58 = vpop.permute.xlu1 %2426  ;;  %v2303_v27 = vpack.c.bf16 %v2271_v14, %v2271_v14 }
 0x4a3   : > { %v2469_v38 = vmul.f32 %v2427_v58, %v8599_v8  ;;  %v4542_v8 = vpop.f32.mrf.mxu2 }
 0x4a4   : > { %v3430_v32 = vpack.c.b16 %v3412_v28, %v3411_v25  ;;  %5924 = vset.pattern.permute.xlu2 %v9728_v1  ;;  %v9026_v28 = vpop.f32.mrf.mxu3 }
 0x4a5   : > { %2618 = vperm.xlu2 %5924, %v8774_v26  }
 0x4a6   : > { %3459 = vrot.lane.b32.xlu1 %v3430_v32, %s6052_s21  ;;  %v2599_v42 = vpop.permute.xlu2 %2598 }
 0x4a7   : > { %v2656_v0 = vmul.f32 %v2599_v42, %v10037_v21  ;;  %v3327_v42 = vunpack.c.l.b16 %v2303_v27 }
 0x4a9   : > { %v2688_v39 = vpack.c.bf16 %v2656_v0, %v2656_v0 }
 0x4ab   : > { %v3520_v43 = vunpack.c.l.b16 %v2688_v39  ;;  %v4544_v33 = vpop.f32.mrf.mxu2  ;;  %v10044_v39 = vld [vmem:[#allocation36_spill] sm:$0xff] }
 0x4ad   : > { %v3540_v51 = vpack.c.b16 %v3520_v43, %v3519_v16  ;;  %5925 = vset.pattern.permute.xlu2 %v9870_v2 }
 0x4ae   : > { %2234 = vperm.xlu2 %5925, %v8774_v26   ;;  %2622 = vperm.xlu1 %5921, %v8900_v62   ;;  %v2501_v62 = vpack.c.bf16 %v2469_v38, %v2469_v38  ;;  %v10046_v38 = vld [vmem:[#allocation28_spill] sm:$0xff] }
 0x4af   : > { %v2215_v18 = vpop.permute.xlu2 %2214  ;;  %5603 = vmatmul.msk.bf16.gmra.mxu2 %vm3545_vm2, %v3540_v51  ;;  %v10045_v51 = vld [vmem:[#allocation30_spill] sm:$0xff] }
 0x4b0   : > { %v3413_v60 = vunpack.c.l.b16 %v2501_v62  ;;  %v2272_v35 = vmul.f32 %v2215_v18, %v10042_v53 }
 0x4b1   : > { %5644 = vmatmul.msk.bf16.gmra.mxu3 %vm3545_vm2, %v8814_v24 }
 0x4b2   : > { %5660 = vmatmul.msk.bf16.gmra.mxu0 %vm3545_vm2, %v8814_v24  ;;  %v9007_v24 = vld [vmem:[%s9328_s5] ss:$0 sm:$0xff]  ;;  %v2304_v50 = vpack.c.bf16 %v2272_v35, %v2272_v35 }
 0x4b3   : > { %v4227_v47 = vadd.f32 %v9007_v24, %v10044_v39  ;;  %v4194_v18 = vadd.f32 %v9007_v24, %v10045_v51  ;;  %v306_v51 = vld [vmem:[%s6247_s20 + $0x8] sm:$0xff] }
 0x4b4   : > { %v3328_v25 = vunpack.c.l.b16 %v2304_v50 }
 0x4b6   : > { %5928 = vset.pattern.permute.xlu1 %v9870_v2  ;;  %5926 = vset.pattern.permute.xlu2 %v9728_v1  ;;  %v9002_v1 = vpop.f32.mrf.mxu0 }
 0x4b7   : > { %2626 = vperm.xlu2 %5926, %v8943_v37  }
 0x4b8   : > { %v2431_v26 = vpop.permute.xlu2 %2430 }
 0x4b9   : > { %v2470_v10 = vmul.f32 %v2431_v26, %v8603_v12 }
 0x4bb   : > { %v2502_v3 = vpack.c.bf16 %v2470_v10, %v2470_v10  ;;  %v10047_v10 = vld [vmem:[#allocation146_spill] sm:$0xff] }
 0x4bd   : > { %v3414_v13 = vunpack.c.l.b16 %v2502_v3  ;;  %v4283_v3 = vadd.f32 %v10047_v10, %v4194_v18 }
 0x4bf   : > { %v3431_v48 = vpack.c.b16 %v3414_v13, %v3413_v60  ;;  %5929 = vset.pattern.permute.xlu2 %v9870_v2  ;;  %v10038_v2 = vld [vmem:[#allocation78_spill] sm:$0xff] }
 0x4c0   : > { %2246 = vperm.xlu2 %5929, %v8825_v6   ;;  %v4189_v6 = vadd.f32 %v9007_v24, %v10038_v2 }
 0x4c1   : > { %3461 = vrot.lane.b32.xlu1 %v3431_v48, %s6052_s21  ;;  %5645 = vmatmul.msk.bf16.gmra.mxu3 %vm3545_vm2, %v8895_v23  ;;  %v2219_v45 = vpop.permute.xlu2 %2218  ;;  %v10048_v48 = vld [vmem:[#allocation54_spill] sm:$0xff] }
 0x4c2   : > { %5661 = vmatmul.msk.bf16.gmra.mxu0 %vm3545_vm2, %v8895_v23  ;;  %v4278_v15 = vadd.f32 %v10039_v59, %v4189_v6  ;;  %v2273_v26 = vmul.f32 %v2219_v45, %v10046_v38  ;;  %v10049_v6 = vld [vmem:[#allocation37_spill] sm:$0xff] }
 0x4c3   : > { %v4372_v59 = vadd.f32 %v10049_v6, %v4283_v3 }
 0x4c4   : > { %v4367_v23 = vadd.f32 %v10041_v17, %v4278_v15  ;;  %v10050_v15 = vld [vmem:[#allocation35_spill] sm:$0xff]  ;;  %v4643_v17 = vld [vmem:[%s9330_s7] sm:$0x3] }
 0x4c5   : > { %v9050_v53 = vperm.slane %v4643_v17, 1 }
 0x4c6   : > { %v4453_v12 = vpop.f32.mrf.mxu1 }
 0x4c7   : > { %v4454_v9 = vadd.f32 %v4453_v12, %v10040_v54 }
 0x4c9   : > { %2242 = vperm.xlu1 %5928, %v8943_v37   ;;  %v4543_v29 = vadd.f32 %v4542_v8, %v4454_v9 }
 0x4cb   : > { %v4601_v37 = vmax.f32 %v4543_v29, 0.0 }
 0x4ce   : > { %v4399_v19 = vpop.f32.mrf.mxu0  ;;  %v4455_v44 = vpop.f32.mrf.mxu1 }
 0x4cf   : > { %v9016_v22 = vadd.f32 %v4399_v19, %v8936_v5  ;;  %v4456_v20 = vadd.f32 %v4455_v44, %v4367_v23  ;;  %v2607_v5 = vpop.permute.xlu1 %2606  ;;  %v2305_v23 = vpack.c.bf16 %v2273_v26, %v2273_v26 }
 0x4d0   : > { %v2658_v13 = vmul.f32 %v2607_v5, %v8439_v61 }
 0x4d1   : > { %v4545_v31 = vadd.f32 %v4544_v33, %v4456_v20  ;;  %5646 = vmatmul.msk.bf16.gmra.mxu3 %vm3545_vm2, %v8920_v30  ;;  %v305_v20 = vld [vmem:[%s6247_s20] sm:$0xff]  ;;  %v3329_v40 = vunpack.c.l.b16 %v2305_v23 }
 0x4d2   : > { %5662 = vmatmul.msk.bf16.gmra.mxu0 %vm3545_vm2, %v8920_v30  ;;  %v3348_v30 = vpack.c.b16 %v3328_v25, %v3327_v42  ;;  %v2690_v33 = vpack.c.bf16 %v2658_v13, %v2658_v13  ;;  %v4916_v5 = vunpack.c.h.bf16 %v305_v20  ;;  %v4915_v26 = vunpack.c.l.bf16 %v305_v20  ;;  %v307_v20 = vld [vmem:[%s6247_s20 + $0x10] sm:$0xff] }
 0x4d3   : > { %v4602_v52 = vmax.f32 %v4545_v31, 0.0 }
 0x4d5   : > { %v4626_v34 = vpack.c.bf16 %v4602_v52, %v4601_v37 }
 0x4d6   : > { %v9023_v11 = vpop.f32.mrf.mxu0  ;;  %v4458_v41 = vpop.f32.mrf.mxu1 }
 0x4d7   : > { %v2223_v21 = vpop.permute.xlu1 %2222  ;;  %v4459_v54 = vadd.f32 %v4458_v41, %v10050_v15 }
 0x4d8   : > { %v2274_v8 = vmul.f32 %v2223_v21, %v10048_v48 }
 0x4da   : > { %v2306_v31 = vpack.c.bf16 %v2274_v8, %v2274_v8  ;;  %v4918_v8 = vunpack.c.h.bf16 %v306_v51 }
 0x4dc   : > { %v3330_v42 = vunpack.c.l.b16 %v2306_v31 }
 0x4de   : > { %v4404_v32 = vpop.f32.mrf.mxu0  ;;  %v4460_v12 = vpop.f32.mrf.mxu1  ;;  %v3349_v21 = vpack.c.b16 %v3330_v42, %v3329_v40  ;;  %v10051_v42 = vld [vmem:[#allocation130_spill] sm:$0xff] }
 0x4df   : > { %v2439_v19 = vpop.permute.xlu1 %2438  ;;  %v4461_v44 = vadd.f32 %v4460_v12, %v4372_v59 }
 0x4e0   : > { %v2472_v50 = vmul.f32 0.0, %v2439_v19 }
 0x4e1   : > { %5647 = vmatmul.msk.bf16.gmra.mxu3 %vm3545_vm2, %v4626_v34 }
 0x4e2   : > { %5663 = vmatmul.msk.bf16.gmra.mxu0 %vm3545_vm2, %v4626_v34  ;;  %v3456_v0 = vpop.permute.xlu0 %3455 }
 0x4e3   : > { %v4547_v16 = vpop.f32.mrf.mxu2  ;;  %v3784_v43 = vsel %vm3545_vm2, %v3348_v30, %v3456_v0 }
 0x4e4   : > { %v4315_v58 = vpop.f32.mrf.mxu3  ;;  %4472 = vmatmul.bf16.gmra.mxu1 %v3784_v43  ;;  %v4548_v29 = vadd.f32 %v4547_v16, %v4459_v54  ;;  %v2504_v16 = vpack.c.bf16 %v2472_v50, %v2472_v50 }
 0x4e5   : > { %v4316_v62 = vadd.f32 %v4315_v58, %v4227_v47  ;;  %v3458_v9 = vpop.permute.xlu2 %3457  ;;  %v9058_v47 = vperm.slane %v4643_v17, 0 }
 0x4e6   : > { %v9037_v60 = vpop.f32.mrf.mxu0  ;;  %v4603_v27 = vmax.f32 %v4548_v29, 0.0  ;;  %v3788_v38 = vsel %vm3545_vm2, %v3349_v21, %v3458_v9  ;;  %v3416_v12 = vunpack.c.l.b16 %v2504_v16  ;;  %v4919_v21 = vunpack.c.l.bf16 %v307_v20  ;;  %v10053_v16 = vld [vmem:[#allocation44_spill] sm:$0xff] }
 0x4e7   : > { %v9041_v2 = vadd.f32 %v4404_v32, %v4316_v62  ;;  %v3522_v32 = vunpack.c.l.b16 %v2690_v33  ;;  %v2615_v62 = vpop.permute.xlu1 %2614  ;;  %v4917_v33 = vunpack.c.l.bf16 %v306_v51 }
 0x4e8   : > { %v2660_v15 = vmul.f32 %v2615_v62, %v8680_v63 }
 0x4ea   : > { %v2603_v61 = vpop.permute.xlu0 %2602  ;;  %v2692_v29 = vpack.c.bf16 %v2660_v15, %v2660_v15 }
 0x4eb   : > { %v2657_v37 = vmul.f32 %v2603_v61, %v8432_v55  ;;  %v4549_v52 = vpop.f32.mrf.mxu2 }
 0x4ec   : > { %v4550_v35 = vadd.f32 %v4549_v52, %v4461_v44  ;;  %v9052_v34 = vpop.f32.mrf.mxu3  ;;  %v4920_v52 = vunpack.c.h.bf16 %v307_v20 }
 0x4ed   : > { %v2689_v14 = vpack.c.bf16 %v2657_v37, %v2657_v37  ;;  %v2611_v43 = vpop.permute.xlu2 %2610 }
 0x4ee   : > { %v4604_v25 = vmax.f32 %v4550_v35, 0.0  ;;  %v4835_v41 = vpop.f32.mrf.mxu0  ;;  %v2659_v13 = vmul.f32 %v2611_v43, %v8671_v56  ;;  %v3524_v35 = vunpack.c.l.b16 %v2692_v29  ;;  %v10056_v29 = vld [vmem:[#allocation31_spill] sm:$0xff] }
 0x4ef   : > { %v3521_v45 = vunpack.c.l.b16 %v2689_v14  ;;  %v4836_v55 = vadd.f32 %v4835_v41, %v9050_v53 }
 0x4f0   : > { %v4627_v30 = vpack.c.bf16 %v4604_v25, %v4603_v27  ;;  %v2691_v56 = vpack.c.bf16 %v2659_v13, %v2659_v13 }
 0x4f1   : > { %v3541_v0 = vpack.c.b16 %v3522_v32, %v3521_v45  ;;  %v4980_v39 = vadd.f32 %v4916_v5, %v4836_v55  ;;  %v4199_v45 = vadd.f32 %v9007_v24, %v10051_v42  ;;  %v308_v55 = vld [vmem:[%s6247_s20 + $0x18] sm:$0xff] }
 0x4f2   : > { %5648 = vmatmul.msk.bf16.gmra.mxu3 %vm3545_vm2, %v4627_v30  ;;  %5664 = vmatmul.msk.bf16.gmra.mxu0 %vm3545_vm2, %v4627_v30  ;;  %v3523_v31 = vunpack.c.l.b16 %v2691_v56 }
 0x4f3   : > { %v5044_v18 = vmax.f32 %v4980_v39, 0.0  ;;  %v2435_v58 = vpop.permute.xlu0 %2434  ;;  %5604 = vmatmul.msk.bf16.gmra.mxu2 %vm3545_vm2, %v3541_v0  ;;  %v10052_v0 = vld [vmem:[#allocation115_spill] sm:$0xff] }
 0x4f4   : > { %v2471_v10 = vmul.f32 0.0, %v2435_v58  ;;  %4477 = vmatmul.bf16.gmra.mxu1 %v3788_v38  ;;  %v4746_v3 = vpop.f32.mrf.mxu3  ;;  %v3542_v25 = vpack.c.b16 %v3524_v35, %v3523_v31  ;;  %v4288_v39 = vadd.f32 %v10052_v0, %v4199_v45  ;;  %v4922_v58 = vunpack.c.h.bf16 %v308_v55  ;;  %v10054_v38 = vld [vmem:[#allocation6_spill] sm:$0xff] }
 0x4f5   : > { %5108 = vst [vmem:[%s9066_s23 + $0x8] sm:$0xff] %v5044_v18  ;;  %v4747_v48 = vadd.f32 %v4746_v3, %v9058_v47 }
 0x4f6   : > { %v2503_v6 = vpack.c.bf16 %v2471_v10, %v2471_v10  ;;  %v4837_v59 = vpop.f32.mrf.mxu0 }
 0x4f7   : > { %v4979_v54 = vadd.f32 %v4915_v26, %v4747_v48  ;;  %v4838_v9 = vadd.f32 %v4837_v59, %v9050_v53  ;;  %v4377_v26 = vadd.f32 %v10054_v38, %v4288_v39 }
 0x4f8   : > { %v3415_v17 = vunpack.c.l.b16 %v2503_v6  ;;  %v2227_v6 = vpop.permute.xlu2 %2226 }
 0x4f9   : > { %v5043_v23 = vmax.f32 %v4979_v54, 0.0  ;;  %v4982_v19 = vadd.f32 %v4918_v8, %v4838_v9  ;;  %v10055_v9 = vld [vmem:[#allocation71_spill] sm:$0xff] }
 0x4fa   : > { %v3432_v44 = vpack.c.b16 %v3416_v12, %v3415_v17 }
 0x4fb   : > { %5107 = vst [vmem:[%s9066_s23] sm:$0xff] %v5043_v23  ;;  %v5046_v61 = vmax.f32 %v4982_v19, 0.0  ;;  %v309_v23 = vld [vmem:[%s6247_s20 + $0x20] sm:$0xff] }
 0x4fc   : > { %3463 = vrot.lane.b32.xlu1 %v3432_v44, %s6052_s21  ;;  %v4748_v63 = vpop.f32.mrf.mxu3  ;;  %v4552_v14 = vpop.f32.mrf.mxu2  ;;  %v4921_v44 = vunpack.c.l.bf16 %v308_v55  ;;  %v4923_v45 = vunpack.c.l.bf16 %v309_v23 }
 0x4fd   : > { %5110 = vst [vmem:[%s9066_s23 + $0x18] sm:$0xff] %v5046_v61  ;;  %v4749_v37 = vadd.f32 %v4748_v63, %v9058_v47  ;;  %v2231_v10 = vpop.permute.xlu0 %2230  ;;  %v2275_v61 = vmul.f32 %v2227_v6, %v10056_v29 }
 0x4fe   : > { %v2276_v17 = vmul.f32 %v2231_v10, %v10055_v9 }
 0x4ff   : > { %v4840_v40 = vpop.f32.mrf.mxu0  ;;  %v4981_v5 = vadd.f32 %v4917_v33, %v4749_v37  ;;  %v4924_v37 = vunpack.c.h.bf16 %v309_v23 }
 0x500   : > { %v4841_v50 = vadd.f32 %v4840_v40, %v9050_v53  ;;  %v4463_v27 = vpop.f32.mrf.mxu1 }
 0x501   : > { %v5045_v41 = vmax.f32 %v4981_v5, 0.0  ;;  %v4464_v43 = vadd.f32 %v4463_v27, %v10053_v16 }
 0x502   : > { %v4984_v32 = vadd.f32 %v4920_v52, %v4841_v50  ;;  %v2308_v52 = vpack.c.bf16 %v2276_v17, %v2276_v17  ;;  %v2307_v50 = vpack.c.bf16 %v2275_v61, %v2275_v61 }
 0x503   : > { %5605 = vmatmul.msk.bf16.gmra.mxu2 %vm3545_vm2, %v3542_v25  ;;  %5109 = vst [vmem:[%s9066_s23 + $0x10] sm:$0xff] %v5045_v41  ;;  %v4553_v8 = vadd.f32 %v4552_v14, %v4464_v43 }
 0x504   : > { %v5048_v30 = vmax.f32 %v4984_v32, 0.0  ;;  %v4751_v51 = vpop.f32.mrf.mxu3  ;;  %v4554_v59 = vpop.f32.mrf.mxu2  ;;  %v3332_v41 = vunpack.c.l.b16 %v2308_v52  ;;  %v310_v32 = vld [vmem:[%s6247_s20 + $0x28] sm:$0xff]  ;;  %v3331_v55 = vunpack.c.l.b16 %v2307_v50 }
 0x505   : > { %v4752_v18 = vadd.f32 %v4751_v51, %v9058_v47  ;;  %v4605_v20 = vmax.f32 %v4553_v8, 0.0  ;;  %v4926_v0 = vunpack.c.h.bf16 %v310_v32  ;;  %v4925_v6 = vunpack.c.l.bf16 %v310_v32 }
 0x506   : > { %5112 = vst [vmem:[%s9066_s23 + $0x28] sm:$0xff] %v5048_v30  ;;  %v3350_v39 = vpack.c.b16 %v3332_v41, %v3331_v55  ;;  %v10060_v55 = vld [vmem:[#allocation47_spill] sm:$0xff] }
 0x507   : > { %v4842_v62 = vpop.f32.mrf.mxu0  ;;  %v4983_v3 = vadd.f32 %v4919_v21, %v4752_v18 }
 0x508   : > { %v4843_v13 = vadd.f32 %v4842_v62, %v9050_v53  ;;  %v4465_v48 = vpop.f32.mrf.mxu1 }
 0x509   : > { %v4466_v12 = vadd.f32 %v4465_v48, %v4377_v26  ;;  %v5047_v15 = vmax.f32 %v4983_v3, 0.0  ;;  %v10057_v48 = vld [vmem:[#allocation10_spill] sm:$0xff] }
 0x50a   : > { %v4986_v54 = vadd.f32 %v4922_v58, %v4843_v13  ;;  %v2619_v58 = vpop.permute.xlu2 %2618  ;;  %v311_v13 = vld [vmem:[%s6247_s20 + $0x30] sm:$0xff]  ;;  %v4204_v8 = vadd.f32 %v9007_v24, %v10057_v48  ;;  %v313_v48 = vld [vmem:[%s6247_s20 + $0x40] sm:$0xff] }
 0x50b   : > { %v4555_v56 = vadd.f32 %v4554_v59, %v4466_v12  ;;  %5111 = vst [vmem:[%s9066_s23 + $0x20] sm:$0xff] %v5047_v15  ;;  %v10058_v59 = vld [vmem:[#allocation38_spill] sm:$0xff] }
 0x50c   : > { %v5050_v19 = vmax.f32 %v4986_v54, 0.0  ;;  %v4753_v31 = vpop.f32.mrf.mxu3  ;;  %v2661_v15 = vmul.f32 %v2619_v58, %v10058_v59  ;;  %v4293_v9 = vadd.f32 %v8682_v57, %v4204_v8 }
 0x50d   : > { %v4606_v33 = vmax.f32 %v4555_v56, 0.0  ;;  %v4754_v63 = vadd.f32 %v4753_v31, %v9058_v47  ;;  %v4928_v56 = vunpack.c.h.bf16 %v311_v13 }
 0x50e   : > { %5114 = vst [vmem:[%s9066_s23 + $0x38] sm:$0xff] %v5050_v19 }
 0x50f   : > { %v4628_v35 = vpack.c.bf16 %v4606_v33, %v4605_v20  ;;  %v4845_v40 = vpop.f32.mrf.mxu0  ;;  %v4985_v14 = vadd.f32 %v4921_v44, %v4754_v63  ;;  %v2693_v20 = vpack.c.bf16 %v2661_v15, %v2661_v15  ;;  %v10059_v33 = vld [vmem:[#allocation48_spill] sm:$0xff]  ;;  %v4382_v63 = vadd.f32 %v8786_v7, %v4293_v9 }
 0x510   : > { %v4846_v5 = vadd.f32 %v4845_v40, %v9050_v53  ;;  %v4932_v9 = vunpack.c.h.bf16 %v313_v48 }
 0x511   : > { %5649 = vmatmul.msk.bf16.gmra.mxu3 %vm3545_vm2, %v4628_v35  ;;  %5665 = vmatmul.msk.bf16.gmra.mxu0 %vm3545_vm2, %v4628_v35  ;;  %v5049_v27 = vmax.f32 %v4985_v14, 0.0  ;;  %v312_v14 = vld [vmem:[%s6247_s20 + $0x38] sm:$0xff]  ;;  %v3525_v41 = vunpack.c.l.b16 %v2693_v20 }
 0x512   : > { %v4988_v25 = vadd.f32 %v4924_v37, %v4846_v5  ;;  %v2235_v52 = vpop.permute.xlu2 %2234  ;;  %v2239_v5 = vpop.permute.xlu0 %2238 }
 0x513   : > { %5113 = vst [vmem:[%s9066_s23 + $0x30] sm:$0xff] %v5049_v27 }
 0x514   : > { %v5052_v42 = vmax.f32 %v4988_v25, 0.0  ;;  %v4756_v30 = vpop.f32.mrf.mxu3  ;;  %v4927_v25 = vunpack.c.l.bf16 %v311_v13 }
 0x515   : > { %v4757_v21 = vadd.f32 %v4756_v30, %v9058_v47  ;;  %v2277_v30 = vmul.f32 %v2235_v52, %v10060_v55 }
 0x516   : > { %5116 = vst [vmem:[%s9066_s23 + $0x48] sm:$0xff] %v5052_v42 }
 0x517   : > { %v4847_v16 = vpop.f32.mrf.mxu0  ;;  %v4987_v43 = vadd.f32 %v4923_v45, %v4757_v21  ;;  %v4557_v10 = vpop.f32.mrf.mxu2 }
 0x518   : > { %v4848_v51 = vadd.f32 %v4847_v16, %v9050_v53  ;;  %v3460_v18 = vpop.permute.xlu1 %3459 }
 0x519   : > { %v3792_v38 = vsel %vm3545_vm2, %v3350_v39, %v3460_v18  ;;  %v5051_v26 = vmax.f32 %v4987_v43, 0.0  ;;  %v10061_v39 = vld [vmem:[#allocation129_spill] sm:$0xff] }
 0x51a   : > { %v4990_v62 = vadd.f32 %v4926_v0, %v4848_v51  ;;  %4482 = vmatmul.bf16.gmra.mxu1 %v3792_v38  ;;  %v4930_v0 = vunpack.c.h.bf16 %v312_v14  ;;  %v2278_v16 = vmul.f32 %v2239_v5, %v10061_v39 }
 0x51b   : > { %v4468_v3 = vpop.f32.mrf.mxu1  ;;  %5115 = vst [vmem:[%s9066_s23 + $0x40] sm:$0xff] %v5051_v26 }
 0x51c   : > { %v5054_v12 = vmax.f32 %v4990_v62, 0.0  ;;  %v4758_v54 = vpop.f32.mrf.mxu3  ;;  %v4469_v19 = vadd.f32 %v4468_v3, %v8663_v36  ;;  %v2309_v62 = vpack.c.bf16 %v2277_v30, %v2277_v30  ;;  %v2310_v8 = vpack.c.bf16 %v2278_v16, %v2278_v16 }
 0x51d   : > { %v4759_v17 = vadd.f32 %v4758_v54, %v9058_v47 }
 0x51e   : > { %5118 = vst [vmem:[%s9066_s23 + $0x58] sm:$0xff] %v5054_v12  ;;  %v4558_v50 = vadd.f32 %v4557_v10, %v4469_v19  ;;  %v3333_v15 = vunpack.c.l.b16 %v2309_v62  ;;  %v316_v62 = vld [vmem:[%s6247_s20 + $0x58] sm:$0xff] }
 0x51f   : > { %v4850_v23 = vpop.f32.mrf.mxu0  ;;  %v4989_v44 = vadd.f32 %v4925_v6, %v4759_v17  ;;  %v4559_v32 = vpop.f32.mrf.mxu2  ;;  %v4929_v6 = vunpack.c.l.bf16 %v312_v14 }
 0x520   : > { %v4851_v29 = vadd.f32 %v4850_v23, %v9050_v53  ;;  %v2623_v61 = vpop.permute.xlu1 %2622  ;;  %v4607_v18 = vmax.f32 %v4558_v50, 0.0 }
 0x521   : > { %v2662_v31 = vmul.f32 %v2623_v61, %v10059_v33  ;;  %v5053_v37 = vmax.f32 %v4989_v44, 0.0  ;;  %v314_v33 = vld [vmem:[%s6247_s20 + $0x48] sm:$0xff] }
 0x522   : > { %v4992_v57 = vadd.f32 %v4928_v56, %v4851_v29  ;;  %v3334_v56 = vunpack.c.l.b16 %v2310_v8 }
 0x523   : > { %v2694_v35 = vpack.c.bf16 %v2662_v31, %v2662_v31  ;;  %v4470_v40 = vpop.f32.mrf.mxu1  ;;  %5117 = vst [vmem:[%s9066_s23 + $0x50] sm:$0xff] %v5053_v37 }
 0x524   : > { %v5056_v36 = vmax.f32 %v4992_v57, 0.0  ;;  %v4471_v27 = vadd.f32 %v4470_v40, %v4382_v63  ;;  %v4761_v45 = vpop.f32.mrf.mxu3  ;;  %v3351_v44 = vpack.c.b16 %v3334_v56, %v3333_v15  ;;  %v4931_v63 = vunpack.c.l.bf16 %v313_v48 }
 0x525   : > { %v3526_v42 = vunpack.c.l.b16 %v2694_v35  ;;  %v4762_v21 = vadd.f32 %v4761_v45, %v9058_v47  ;;  %v4934_v35 = vunpack.c.h.bf16 %v314_v33 }
 0x526   : > { %5120 = vst [vmem:[%s9066_s23 + $0x68] sm:$0xff] %v5056_v36  ;;  %v4560_v7 = vadd.f32 %v4559_v32, %v4471_v27  ;;  %v315_v27 = vld [vmem:[%s6247_s20 + $0x50] sm:$0xff]  ;;  %v2631_v32 = vpop.permute.xlu0 %2630 }
 0x527   : > { %v3543_v43 = vpack.c.b16 %v3526_v42, %v3525_v41  ;;  %v4852_v51 = vpop.f32.mrf.mxu0  ;;  %v4991_v38 = vadd.f32 %v4927_v25, %v4762_v21  ;;  %v4933_v41 = vunpack.c.l.bf16 %v314_v33  ;;  %v2627_v42 = vpop.permute.xlu2 %2626  ;;  %v2664_v55 = vmul.f32 0.0, %v2631_v32 }
 0x528   : > { %v4608_v58 = vmax.f32 %v4560_v7, 0.0  ;;  %v4853_v26 = vadd.f32 %v4852_v51, %v9050_v53  ;;  %v2663_v30 = vmul.f32 0.0, %v2627_v42  ;;  %v4936_v21 = vunpack.c.h.bf16 %v315_v27 }
 0x529   : > { %5606 = vmatmul.msk.bf16.gmra.mxu2 %vm3545_vm2, %v3543_v43  ;;  %v5055_v3 = vmax.f32 %v4991_v38, 0.0  ;;  %v2696_v39 = vpack.c.bf16 %v2664_v55, %v2664_v55 }
 0x52a   : > { %v4629_v10 = vpack.c.bf16 %v4608_v58, %v4607_v18  ;;  %v4994_v13 = vadd.f32 %v4930_v0, %v4853_v26  ;;  %v2695_v16 = vpack.c.bf16 %v2663_v30, %v2663_v30 }
 0x52b   : > { %5119 = vst [vmem:[%s9066_s23 + $0x60] sm:$0xff] %v5055_v3  ;;  %v3528_v18 = vunpack.c.l.b16 %v2696_v39 }
 0x52c   : > { %v5058_v12 = vmax.f32 %v4994_v13, 0.0  ;;  %5650 = vmatmul.msk.bf16.gmra.mxu3 %vm3545_vm2, %v4629_v10  ;;  %5666 = vmatmul.msk.bf16.gmra.mxu0 %vm3545_vm2, %v4629_v10  ;;  %v4763_v59 = vpop.f32.mrf.mxu3  ;;  %v3527_v58 = vunpack.c.l.b16 %v2695_v16  ;;  %v4935_v13 = vunpack.c.l.bf16 %v315_v27 }
 0x52d   : > { %v4764_v54 = vadd.f32 %v4763_v59, %v9058_v47 }
 0x52e   : > { %5122 = vst [vmem:[%s9066_s23 + $0x78] sm:$0xff] %v5058_v12  ;;  %v3544_v10 = vpack.c.b16 %v3528_v18, %v3527_v58  ;;  %v4938_v12 = vunpack.c.h.bf16 %v316_v62 }
 0x52f   : > { %v4855_v17 = vpop.f32.mrf.mxu0  ;;  %v4993_v23 = vadd.f32 %v4929_v6, %v4764_v54  ;;  %v2247_v55 = vpop.permute.xlu2 %2246 }
 0x530   : > { %v4856_v19 = vadd.f32 %v4855_v17, %v9050_v53  ;;  %v317_v17 = vld [vmem:[%s6247_s20 + $0x60] sm:$0xff]  ;;  %v2280_v16 = vmul.f32 0.0, %v2247_v55 }
 0x531   : > { %v5057_v29 = vmax.f32 %v4993_v23, 0.0  ;;  %v4937_v23 = vunpack.c.l.bf16 %v316_v62 }
 0x532   : > { %v4996_v61 = vadd.f32 %v4932_v9, %v4856_v19  ;;  %v4562_v18 = vpop.f32.mrf.mxu2 }
 0x533   : > { %v3462_v20 = vpop.permute.xlu1 %3461  ;;  %5121 = vst [vmem:[%s9066_s23 + $0x70] sm:$0xff] %v5057_v29  ;;  %v4940_v29 = vunpack.c.h.bf16 %v317_v17 }
 0x534   : > { %v5060_v31 = vmax.f32 %v4996_v61, 0.0  ;;  %v3796_v37 = vsel %vm3545_vm2, %v3351_v44, %v3462_v20  ;;  %v4766_v57 = vpop.f32.mrf.mxu3 }
 0x535   : > { %4487 = vmatmul.bf16.gmra.mxu1 %v3796_v37  ;;  %v4767_v52 = vadd.f32 %v4766_v57, %v9058_v47  ;;  %v318_v37 = vld [vmem:[%s6247_s20 + $0x68] sm:$0xff] }
 0x536   : > { %5124 = vst [vmem:[%s9066_s23 + $0x88] sm:$0xff] %v5060_v31  ;;  %v4941_v42 = vunpack.c.l.bf16 %v318_v37 }
 0x537   : > { %v4857_v40 = vpop.f32.mrf.mxu0  ;;  %v4995_v14 = vadd.f32 %v4931_v63, %v4767_v52  ;;  %v4939_v52 = vunpack.c.l.bf16 %v317_v17 }
 0x538   : > { %v4858_v5 = vadd.f32 %v4857_v40, %v9050_v53 }
 0x539   : > { %v5059_v50 = vmax.f32 %v4995_v14, 0.0  ;;  %5607 = vmatmul.msk.bf16.gmra.mxu2 %vm3545_vm2, %v3544_v10  ;;  %v4942_v14 = vunpack.c.h.bf16 %v318_v37  ;;  %v2312_v10 = vpack.c.bf16 %v2280_v16, %v2280_v16 }
 0x53a   : > { %v4998_v36 = vadd.f32 %v4934_v35, %v4858_v5 }
 0x53b   : > { %5123 = vst [vmem:[%s9066_s23 + $0x80] sm:$0xff] %v5059_v50 }
 0x53c   : > { %v5062_v25 = vmax.f32 %v4998_v36, 0.0  ;;  %v4768_v45 = vpop.f32.mrf.mxu3 }
 0x53d   : > { %v4769_v7 = vadd.f32 %v4768_v45, %v9058_v47  ;;  %v2243_v45 = vpop.permute.xlu1 %2242 }
 0x53e   : > { %5126 = vst [vmem:[%s9066_s23 + $0x98] sm:$0xff] %v5062_v25  ;;  %v2279_v39 = vmul.f32 0.0, %v2243_v45 }
 0x53f   : > { %v4860_v0 = vpop.f32.mrf.mxu0  ;;  %v4997_v43 = vadd.f32 %v4933_v41, %v4769_v7  ;;  %v319_v41 = vld [vmem:[%s6247_s20 + $0x70] sm:$0xff] }
 0x540   : > { %v4861_v51 = vadd.f32 %v4860_v0, %v9050_v53  ;;  %v2311_v62 = vpack.c.bf16 %v2279_v39, %v2279_v39 }
 0x541   : > { %v5061_v38 = vmax.f32 %v4997_v43, 0.0 }
 0x542   : > { %v5000_v26 = vadd.f32 %v4936_v21, %v4861_v51  ;;  %v4944_v21 = vunpack.c.h.bf16 %v319_v41 }
 0x543   : > { %5125 = vst [vmem:[%s9066_s23 + $0x90] sm:$0xff] %v5061_v38 }
 0x544   : > { %v5064_v3 = vmax.f32 %v5000_v26, 0.0  ;;  %v4771_v48 = vpop.f32.mrf.mxu3 }
 0x545   : > { %v4772_v8 = vadd.f32 %v4771_v48, %v9058_v47 }
 0x546   : > { %5128 = vst [vmem:[%s9066_s23 + $0xa8] sm:$0xff] %v5064_v3  ;;  %v320_v3 = vld [vmem:[%s6247_s20 + $0x78] sm:$0xff] }
 0x547   : > { %v4862_v6 = vpop.f32.mrf.mxu0  ;;  %v4999_v59 = vadd.f32 %v4935_v13, %v4772_v8  ;;  %v10062_v13 = vld [vmem:[#allocation77_spill] sm:$0xff] }
 0x548   : > { %v4863_v15 = vadd.f32 %v4862_v6, %v9050_v53  ;;  %v4209_v48 = vadd.f32 %v9007_v24, %v10062_v13 }
 0x549   : > { %v5063_v54 = vmax.f32 %v4999_v59, 0.0  ;;  %v10063_v59 = vld [vmem:[#allocation50_spill] sm:$0xff] }
 0x54a   : > { %v5002_v9 = vadd.f32 %v4938_v12, %v4863_v15  ;;  %v4943_v12 = vunpack.c.l.bf16 %v319_v41  ;;  %v4298_v15 = vadd.f32 %v10063_v59, %v4209_v48 }
 0x54b   : > { %5127 = vst [vmem:[%s9066_s23 + $0xa0] sm:$0xff] %v5063_v54  ;;  %v10064_v54 = vld [vmem:[#allocation132_spill] sm:$0xff] }
 0x54c   : > { %v5066_v56 = vmax.f32 %v5002_v9, 0.0  ;;  %v4773_v19 = vpop.f32.mrf.mxu3 }
 0x54d   : > { %v4774_v44 = vadd.f32 %v4773_v19, %v9058_v47  ;;  %v3336_v19 = vunpack.c.l.b16 %v2312_v10 }
 0x54e   : > { %5130 = vst [vmem:[%s9066_s23 + $0xb8] sm:$0xff] %v5066_v56  ;;  %v4946_v56 = vunpack.c.h.bf16 %v320_v3 }
 0x54f   : > { %v4865_v61 = vpop.f32.mrf.mxu0  ;;  %v5001_v20 = vadd.f32 %v4937_v23, %v4774_v44  ;;  %v3335_v23 = vunpack.c.l.b16 %v2311_v62 }
 0x550   : > { %v4866_v33 = vadd.f32 %v4865_v61, %v9050_v53 }
 0x551   : > { %v5065_v31 = vmax.f32 %v5001_v20, 0.0 }
 0x552   : > { %v5004_v63 = vadd.f32 %v4940_v29, %v4866_v33  ;;  %v10065_v29 = vld [vmem:[#allocation103_spill] sm:$0xff] }
 0x553   : > { %5129 = vst [vmem:[%s9066_s23 + $0xb0] sm:$0xff] %v5065_v31  ;;  %v4387_v61 = vadd.f32 %v10065_v29, %v4298_v15 }
 0x554   : > { %v5068_v57 = vmax.f32 %v5004_v63, 0.0  ;;  %v4776_v35 = vpop.f32.mrf.mxu3 }
 0x555   : > { %v4777_v40 = vadd.f32 %v4776_v35, %v9058_v47  ;;  %v4564_v35 = vpop.f32.mrf.mxu2 }
 0x556   : > { %5132 = vst [vmem:[%s9066_s23 + $0xc8] sm:$0xff] %v5068_v57 }
 0x557   : > { %v4867_v5 = vpop.f32.mrf.mxu0  ;;  %v5003_v50 = vadd.f32 %v4939_v52, %v4777_v40  ;;  %v3352_v40 = vpack.c.b16 %v3336_v19, %v3335_v23 }
 0x558   : > { %v4868_v36 = vadd.f32 %v4867_v5, %v9050_v53 }
 0x559   : > { %v5067_v27 = vmax.f32 %v5003_v50, 0.0 }
 0x55a   : > { %v5006_v25 = vadd.f32 %v4942_v14, %v4868_v36  ;;  %v321_v14 = vld [vmem:[%s6247_s20 + $0x80] sm:$0xff]  ;;  %v4945_v36 = vunpack.c.l.bf16 %v320_v3 }
 0x55b   : > { %5131 = vst [vmem:[%s9066_s23 + $0xc0] sm:$0xff] %v5067_v27  ;;  %v4948_v45 = vunpack.c.h.bf16 %v321_v14  ;;  %v10066_v3 = vld [vmem:[#allocation85_spill] sm:$0xff] }
 0x55c   : > { %v5070_v32 = vmax.f32 %v5006_v25, 0.0  ;;  %v4778_v30 = vpop.f32.mrf.mxu3  ;;  %v4214_v13 = vadd.f32 %v9007_v24, %v10066_v3 }
 0x55d   : > { %v4779_v7 = vadd.f32 %v4778_v30, %v9058_v47 }
 0x55e   : > { %5134 = vst [vmem:[%s9066_s23 + $0xd8] sm:$0xff] %v5070_v32 }
 0x55f   : > { %v4870_v0 = vpop.f32.mrf.mxu0  ;;  %v5005_v43 = vadd.f32 %v4941_v42, %v4779_v7 }
 0x560   : > { %v4871_v51 = vadd.f32 %v4870_v0, %v9050_v53 }
 0x561   : > { %v4473_v58 = vpop.f32.mrf.mxu1  ;;  %v5069_v38 = vmax.f32 %v5005_v43, 0.0 }
 0x562   : > { %v5008_v26 = vadd.f32 %v4944_v21, %v4871_v51  ;;  %v4474_v9 = vadd.f32 %v4473_v58, %v10064_v54  ;;  %v322_v51 = vld [vmem:[%s6247_s20 + $0x88] sm:$0xff]  ;;  %v4947_v58 = vunpack.c.l.bf16 %v321_v14 }
 0x563   : > { %5133 = vst [vmem:[%s9066_s23 + $0xd0] sm:$0xff] %v5069_v38  ;;  %v4950_v10 = vunpack.c.h.bf16 %v322_v51 }
 0x564   : > { %v5072_v8 = vmax.f32 %v5008_v26, 0.0  ;;  %v4781_v6 = vpop.f32.mrf.mxu3  ;;  %v4563_v63 = vadd.f32 %v4562_v18, %v4474_v9 }
 0x565   : > { %v4782_v17 = vadd.f32 %v4781_v6, %v9058_v47  ;;  %v10067_v6 = vld [vmem:[#allocation101_spill] sm:$0xff] }
 0x566   : > { %5136 = vst [vmem:[%s9066_s23 + $0xe8] sm:$0xff] %v5072_v8  ;;  %v4609_v25 = vmax.f32 %v4563_v63, 0.0  ;;  %v4303_v59 = vadd.f32 %v10067_v6, %v4214_v13 }
 0x567   : > { %v4872_v44 = vpop.f32.mrf.mxu0  ;;  %v5007_v20 = vadd.f32 %v4943_v12, %v4782_v17 }
 0x568   : > { %v4873_v33 = vadd.f32 %v4872_v44, %v9050_v53  ;;  %v4392_v17 = vadd.f32 %v8893_v46, %v4303_v59  ;;  %v4949_v44 = vunpack.c.l.bf16 %v322_v51 }
 0x569   : > { %v4475_v31 = vpop.f32.mrf.mxu1  ;;  %v5071_v37 = vmax.f32 %v5007_v20, 0.0 }
 0x56a   : > { %v5010_v57 = vadd.f32 %v4946_v56, %v4873_v33  ;;  %v4476_v52 = vadd.f32 %v4475_v31, %v4387_v61  ;;  %v10068_v56 = vld [vmem:[#allocation133_spill] sm:$0xff] }
 0x56b   : > { %5135 = vst [vmem:[%s9066_s23 + $0xe0] sm:$0xff] %v5071_v37 }
 0x56c   : > { %v5074_v5 = vmax.f32 %v5010_v57, 0.0  ;;  %v4565_v50 = vadd.f32 %v4564_v35, %v4476_v52  ;;  %v4783_v27 = vpop.f32.mrf.mxu3 }
 0x56d   : > { %v4784_v32 = vadd.f32 %v4783_v27, %v9058_v47  ;;  %v324_v27 = vld [vmem:[%s6247_s20 + $0x98] sm:$0xff] }
 0x56e   : > { %5138 = vst [vmem:[%s9066_s23 + $0xf8] sm:$0xff] %v5074_v5  ;;  %v4610_v41 = vmax.f32 %v4565_v50, 0.0  ;;  %v3464_v42 = vpop.permute.xlu1 %3463 }
 0x56f   : > { %v4875_v55 = vpop.f32.mrf.mxu0  ;;  %v3800_v30 = vsel %vm3545_vm2, %v3352_v40, %v3464_v42  ;;  %v5009_v21 = vadd.f32 %v4945_v36, %v4784_v32  ;;  %v323_v40 = vld [vmem:[%s6247_s20 + $0x90] sm:$0xff] }
 0x570   : > { %v4630_v7 = vpack.c.bf16 %v4610_v41, %v4609_v25  ;;  %v4876_v0 = vadd.f32 %v4875_v55, %v9050_v53  ;;  %4492 = vmatmul.bf16.gmra.mxu1 %v3800_v30  ;;  %v4952_v14 = vunpack.c.h.bf16 %v323_v40  ;;  %v4951_v41 = vunpack.c.l.bf16 %v323_v40  ;;  %v10070_v40 = vld [vmem:[#allocation113_spill] sm:$0xff] }
 0x571   : > { %v4478_v39 = vpop.f32.mrf.mxu1  ;;  %v5073_v16 = vmax.f32 %v5009_v21, 0.0 }
 0x572   : > { %v5012_v43 = vadd.f32 %v4948_v45, %v4876_v0  ;;  %5651 = vmatmul.msk.bf16.gmra.mxu3 %vm3545_vm2, %v4630_v7  ;;  %5667 = vmatmul.msk.bf16.gmra.mxu0 %vm3545_vm2, %v4630_v7  ;;  %v4479_v23 = vadd.f32 %v4478_v39, %v10068_v56  ;;  %v4954_v45 = vunpack.c.h.bf16 %v324_v27 }
 0x573   : > { %5137 = vst [vmem:[%s9066_s23 + $0xf0] sm:$0xff] %v5073_v16 }
 0x574   : > { %v5076_v18 = vmax.f32 %v5012_v43, 0.0  ;;  %v10069_v43 = vld [vmem:[#allocation108_spill] sm:$0xff] }
 0x575   : > { %v4786_v38 = vpop.f32.mrf.mxu3  ;;  %v4219_v51 = vadd.f32 %v9007_v24, %v10069_v43 }
 0x576   : > { %5140 = vst [vmem:[%s9066_s23 + $0x108] sm:$0xff] %v5076_v18  ;;  %v4787_v26 = vadd.f32 %v4786_v38, %v9058_v47  ;;  %v4567_v62 = vpop.f32.mrf.mxu2 }
 0x577   : > { %v4877_v48 = vpop.f32.mrf.mxu0  ;;  %v4568_v29 = vadd.f32 %v4567_v62, %v4479_v23  ;;  %v4308_v38 = vadd.f32 %v8928_v49, %v4219_v51  ;;  %v326_v23 = vld [vmem:[%s6247_s20 + $0xa8] sm:$0xff]  ;;  %v10071_v51 = vld [vmem:[#allocation23_spill] sm:$0xff] }
 0x578   : > { %v5011_v8 = vadd.f32 %v4947_v58, %v4787_v26  ;;  %v4878_v12 = vadd.f32 %v4877_v48, %v9050_v53  ;;  %v4953_v58 = vunpack.c.l.bf16 %v324_v27 }
 0x579   : > { %v4480_v9 = vpop.f32.mrf.mxu1  ;;  %v4611_v57 = vmax.f32 %v4568_v29, 0.0  ;;  %v4397_v3 = vadd.f32 %v9002_v1, %v4308_v38 }
 0x57a   : > { %v5075_v15 = vmax.f32 %v5011_v8, 0.0  ;;  %v5014_v54 = vadd.f32 %v4950_v10, %v4878_v12  ;;  %v4481_v61 = vadd.f32 %v4480_v9, %v4392_v17 }
 0x57c   : > { %5139 = vst [vmem:[%s9066_s23 + $0x100] sm:$0xff] %v5075_v15  ;;  %v5078_v19 = vmax.f32 %v5014_v54, 0.0  ;;  %v325_v54 = vld [vmem:[%s6247_s20 + $0xa0] sm:$0xff] }
 0x57d   : > { %v4788_v20 = vpop.f32.mrf.mxu3  ;;  %v4956_v9 = vunpack.c.h.bf16 %v325_v54 }
 0x57e   : > { %5142 = vst [vmem:[%s9066_s23 + $0x118] sm:$0xff] %v5078_v19  ;;  %v4789_v33 = vadd.f32 %v4788_v20, %v9058_v47  ;;  %v4569_v31 = vpop.f32.mrf.mxu2  ;;  %v4958_v20 = vunpack.c.h.bf16 %v326_v23 }
 0x57f   : > { %v4570_v63 = vadd.f32 %v4569_v31, %v4481_v61 }
 0x580   : > { %v5013_v37 = vadd.f32 %v4949_v44, %v4789_v33  ;;  %v4955_v44 = vunpack.c.l.bf16 %v325_v54 }
 0x581   : > { %v4612_v46 = vmax.f32 %v4570_v63, 0.0 }
 0x582   : > { %v5077_v52 = vmax.f32 %v5013_v37, 0.0 }
 0x583   : > { %v4631_v35 = vpack.c.bf16 %v4612_v46, %v4611_v57 }
 0x584   : > { %5141 = vst [vmem:[%s9066_s23 + $0x110] sm:$0xff] %v5077_v52 }
 0x585   : > { %5652 = vmatmul.msk.bf16.gmra.mxu3 %vm3545_vm2, %v4631_v35  ;;  %5668 = vmatmul.msk.bf16.gmra.mxu0 %vm3545_vm2, %v4631_v35  ;;  %v5982_v35 = vld [vmem:[%s9328_s5] ss:$0 sm:$0xff] }
 0x586   : > { %v4572_v30 = vpop.f32.mrf.mxu2 }
 0x58e   : > { %v4880_v5 = vpop.f32.mrf.mxu0  ;;  %v4574_v12 = vpop.f32.mrf.mxu2 }
 0x58f   : > { %v4881_v50 = vadd.f32 %v4880_v5, %v9050_v53 }
 0x591   : > { %v5016_v36 = vadd.f32 %v4952_v14, %v4881_v50  ;;  %v4224_v14 = vadd.f32 %v5982_v35, %v10070_v40  ;;  %v4957_v50 = vunpack.c.l.bf16 %v326_v23 }
 0x593   : > { %v5080_v25 = vmax.f32 %v5016_v36, 0.0  ;;  %v4313_v36 = vadd.f32 %v9026_v28, %v4224_v14 }
 0x594   : > { %v4791_v32 = vpop.f32.mrf.mxu3 }
 0x595   : > { %5144 = vst [vmem:[%s9066_s23 + $0x128] sm:$0xff] %v5080_v25  ;;  %v4792_v42 = vadd.f32 %v4791_v32, %v9058_v47  ;;  %v4402_v32 = vadd.f32 %v9023_v11, %v4313_v36 }
 0x596   : > { %v4882_v55 = vpop.f32.mrf.mxu0 }
 0x597   : > { %v5015_v7 = vadd.f32 %v4951_v41, %v4792_v42  ;;  %v4883_v21 = vadd.f32 %v4882_v55, %v9050_v53  ;;  %v4483_v0 = vpop.f32.mrf.mxu1 }
 0x598   : > { %v4484_v26 = vadd.f32 %v4483_v0, %v8912_v4 }
 0x599   : > { %v5079_v39 = vmax.f32 %v5015_v7, 0.0  ;;  %v5018_v16 = vadd.f32 %v4954_v45, %v4883_v21 }
 0x59a   : > { %v4573_v8 = vadd.f32 %v4572_v30, %v4484_v26 }
 0x59b   : > { %5143 = vst [vmem:[%s9066_s23 + $0x120] sm:$0xff] %v5079_v39  ;;  %v5082_v18 = vmax.f32 %v5018_v16, 0.0 }
 0x59c   : > { %v4793_v62 = vpop.f32.mrf.mxu3  ;;  %v4613_v49 = vmax.f32 %v4573_v8, 0.0 }
 0x59d   : > { %5146 = vst [vmem:[%s9066_s23 + $0x138] sm:$0xff] %v5082_v18  ;;  %v4794_v10 = vadd.f32 %v4793_v62, %v9058_v47  ;;  %v4229_v18 = vadd.f32 %v5982_v35, %v10071_v51  ;;  %v330_v35 = vld [vmem:[%s6247_s20 + $0xc8] sm:$0xff] }
 0x59e   : > { %v4966_v36 = vunpack.c.h.bf16 %v330_v35 }
 0x59f   : > { %v5017_v13 = vadd.f32 %v4953_v58, %v4794_v10  ;;  %v4485_v48 = vpop.f32.mrf.mxu1  ;;  %v4318_v26 = vadd.f32 %v9052_v34, %v4229_v18 }
 0x5a0   : > { %v4486_v24 = vadd.f32 %v4485_v48, %v4397_v3 }
 0x5a1   : > { %v5081_v6 = vmax.f32 %v5017_v13, 0.0  ;;  %v328_v13 = vld [vmem:[%s6247_s20 + $0xb8] sm:$0xff]  ;;  %v4407_v8 = vadd.f32 %v9037_v60, %v4318_v26 }
 0x5a2   : > { %v4575_v59 = vadd.f32 %v4574_v12, %v4486_v24  ;;  %v4962_v34 = vunpack.c.h.bf16 %v328_v13 }
 0x5a3   : > { %5145 = vst [vmem:[%s9066_s23 + $0x130] sm:$0xff] %v5081_v6 }
 0x5a4   : > { %v4614_v15 = vmax.f32 %v4575_v59, 0.0 }
 0x5a6   : > { %v4632_v4 = vpack.c.bf16 %v4614_v15, %v4613_v49 }
 0x5a8   : > { %5653 = vmatmul.msk.bf16.gmra.mxu3 %vm3545_vm2, %v4632_v4  ;;  %5669 = vmatmul.msk.bf16.gmra.mxu0 %vm3545_vm2, %v4632_v4 }
 0x5a9   : > { %v4885_v1 = vpop.f32.mrf.mxu0 }
 0x5aa   : > { %v4886_v17 = vadd.f32 %v4885_v1, %v9050_v53 }
 0x5ac   : > { %v5020_v56 = vadd.f32 %v4956_v9, %v4886_v17  ;;  %v4577_v31 = vpop.f32.mrf.mxu2 }
 0x5ae   : > { %v5084_v19 = vmax.f32 %v5020_v56, 0.0 }
 0x5af   : > { %v4796_v29 = vpop.f32.mrf.mxu3 }
 0x5b0   : > { %5148 = vst [vmem:[%s9066_s23 + $0x148] sm:$0xff] %v5084_v19  ;;  %v4797_v61 = vadd.f32 %v4796_v29, %v9058_v47  ;;  %v4961_v29 = vunpack.c.l.bf16 %v328_v13 }
 0x5b1   : > { %v4887_v33 = vpop.f32.mrf.mxu0 }
 0x5b2   : > { %v5019_v63 = vadd.f32 %v4955_v44, %v4797_v61  ;;  %v4888_v37 = vadd.f32 %v4887_v33, %v9050_v53  ;;  %v4488_v57 = vpop.f32.mrf.mxu1  ;;  %v329_v33 = vld [vmem:[%s6247_s20 + $0xc0] sm:$0xff] }
 0x5b3   : > { %v4489_v27 = vadd.f32 %v4488_v57, %v9016_v22  ;;  %v327_v22 = vld [vmem:[%s6247_s20 + $0xb0] sm:$0xff]  ;;  %v4963_v14 = vunpack.c.l.bf16 %v329_v33 }
 0x5b4   : > { %v5083_v46 = vmax.f32 %v5019_v63, 0.0  ;;  %v5022_v52 = vadd.f32 %v4958_v20, %v4888_v37  ;;  %v4579_v7 = vpop.f32.mrf.mxu2  ;;  %v4960_v58 = vunpack.c.h.bf16 %v327_v22  ;;  %v4959_v24 = vunpack.c.l.bf16 %v327_v22 }
 0x5b5   : > { %v4578_v55 = vadd.f32 %v4577_v31, %v4489_v27  ;;  %v4964_v63 = vunpack.c.h.bf16 %v329_v33 }
 0x5b6   : > { %5147 = vst [vmem:[%s9066_s23 + $0x140] sm:$0xff] %v5083_v46  ;;  %v5086_v5 = vmax.f32 %v5022_v52, 0.0 }
 0x5b7   : > { %v4798_v25 = vpop.f32.mrf.mxu3  ;;  %v4615_v39 = vmax.f32 %v4578_v55, 0.0  ;;  %v4965_v55 = vunpack.c.l.bf16 %v330_v35 }
 0x5b8   : > { %5150 = vst [vmem:[%s9066_s23 + $0x158] sm:$0xff] %v5086_v5  ;;  %v4799_v41 = vadd.f32 %v4798_v25, %v9058_v47 }
 0x5ba   : > { %v5021_v42 = vadd.f32 %v4957_v50, %v4799_v41  ;;  %v4490_v45 = vpop.f32.mrf.mxu1 }
 0x5bb   : > { %v4491_v30 = vadd.f32 %v4490_v45, %v4402_v32 }
 0x5bc   : > { %v5085_v21 = vmax.f32 %v5021_v42, 0.0  ;;  %v4582_v43 = vpop.f32.mrf.mxu2 }
 0x5bd   : > { %v4580_v0 = vadd.f32 %v4579_v7, %v4491_v30 }
 0x5be   : > { %5149 = vst [vmem:[%s9066_s23 + $0x150] sm:$0xff] %v5085_v21 }
 0x5bf   : > { %v4616_v28 = vmax.f32 %v4580_v0, 0.0 }
 0x5c1   : > { %v4633_v16 = vpack.c.bf16 %v4616_v28, %v4615_v39  ;;  %v331_v39 = vld [vmem:[%s6247_s20 + $0xd0] sm:$0xff] }
 0x5c2   : > { %v4968_v28 = vunpack.c.h.bf16 %v331_v39  ;;  %v4967_v18 = vunpack.c.l.bf16 %v331_v39 }
 0x5c3   : > { %5654 = vmatmul.msk.bf16.gmra.mxu3 %vm3545_vm2, %v4633_v16  ;;  %5670 = vmatmul.msk.bf16.gmra.mxu0 %vm3545_vm2, %v4633_v16 }
 0x5c4   : > { %v4584_v54 = vpop.f32.mrf.mxu2 }
 0x5ed   : > { %v4493_v11 = vpop.f32.mrf.mxu1 }
 0x5ee   : > { %v4494_v10 = vadd.f32 %v4493_v11, %v9041_v2  ;;  %v332_v11 = vld [vmem:[%s6247_s20 + $0xd8] sm:$0xff] }
 0x5ef   : > { %v4890_v38 = vpop.f32.mrf.mxu0  ;;  %v4970_v26 = vunpack.c.h.bf16 %v332_v11 }
 0x5f0   : > { %v4891_v62 = vadd.f32 %v4890_v38, %v9050_v53  ;;  %v4583_v59 = vadd.f32 %v4582_v43, %v4494_v10 }
 0x5f2   : > { %v5024_v3 = vadd.f32 %v4960_v58, %v4891_v62  ;;  %v4617_v17 = vmax.f32 %v4583_v59, 0.0 }
 0x5f4   : > { %v5088_v48 = vmax.f32 %v5024_v3, 0.0 }
 0x5f5   : > { %v4495_v12 = vpop.f32.mrf.mxu1  ;;  %v4801_v6 = vpop.f32.mrf.mxu3 }
 0x5f6   : > { %5152 = vst [vmem:[%s9066_s23 + $0x168] sm:$0xff] %v5088_v48  ;;  %v4496_v49 = vadd.f32 %v4495_v12, %v4407_v8  ;;  %v4802_v15 = vadd.f32 %v4801_v6, %v9058_v47 }
 0x5f7   : > { %v4892_v4 = vpop.f32.mrf.mxu0 }
 0x5f8   : > { %v4585_v9 = vadd.f32 %v4584_v54, %v4496_v49  ;;  %v5023_v2 = vadd.f32 %v4959_v24, %v4802_v15  ;;  %v4893_v1 = vadd.f32 %v4892_v4, %v9050_v53  ;;  %v4969_v24 = vunpack.c.l.bf16 %v332_v11  ;;  %v333_v15 = vld [vmem:[%s6247_s20 + $0xe0] sm:$0xff] }
 0x5fa   : > { %v4618_v60 = vmax.f32 %v4585_v9, 0.0  ;;  %v5087_v56 = vmax.f32 %v5023_v2, 0.0  ;;  %v5026_v23 = vadd.f32 %v4962_v34, %v4893_v1  ;;  %v4972_v34 = vunpack.c.h.bf16 %v333_v15  ;;  %v334_v2 = vld [vmem:[%s6247_s20 + $0xe8] sm:$0xff] }
 0x5fc   : > { %v4634_v19 = vpack.c.bf16 %v4618_v60, %v4617_v17  ;;  %5151 = vst [vmem:[%s9066_s23 + $0x160] sm:$0xff] %v5087_v56  ;;  %v5090_v44 = vmax.f32 %v5026_v23, 0.0  ;;  %v4971_v17 = vunpack.c.l.bf16 %v333_v15  ;;  %v4974_v23 = vunpack.c.h.bf16 %v334_v2 }
 0x5fd   : > { %v4803_v61 = vpop.f32.mrf.mxu3 }
 0x5fe   : > { %5154 = vst [vmem:[%s9066_s23 + $0x178] sm:$0xff] %v5090_v44  ;;  %v4804_v20 = vadd.f32 %v4803_v61, %v9058_v47  ;;  %5655 = vmatmul.msk.bf16.gmra.mxu3 %vm3545_vm2, %v4634_v19  ;;  %5671 = vmatmul.msk.bf16.gmra.mxu0 %vm3545_vm2, %v4634_v19 }
 0x600   : > { %v5025_v31 = vadd.f32 %v4961_v29, %v4804_v20 }
 0x602   : > { %v5089_v37 = vmax.f32 %v5025_v31, 0.0  ;;  %v4895_v57 = vpop.f32.mrf.mxu0  ;;  %v4973_v31 = vunpack.c.l.bf16 %v334_v2 }
 0x603   : > { %v4896_v46 = vadd.f32 %v4895_v57, %v9050_v53 }
 0x604   : > { %5153 = vst [vmem:[%s9066_s23 + $0x170] sm:$0xff] %v5089_v37 }
 0x605   : > { %v5028_v52 = vadd.f32 %v4964_v63, %v4896_v46 }
 0x607   : > { %v5092_v40 = vmax.f32 %v5028_v52, 0.0  ;;  %v335_v52 = vld [vmem:[%s6247_s20 + $0xf0] sm:$0xff] }
 0x608   : > { %v4806_v5 = vpop.f32.mrf.mxu3  ;;  %v4976_v35 = vunpack.c.h.bf16 %v335_v52 }
 0x609   : > { %5156 = vst [vmem:[%s9066_s23 + $0x188] sm:$0xff] %v5092_v40  ;;  %v4807_v50 = vadd.f32 %v4806_v5, %v9058_v47 }
 0x60a   : > { %v4897_v27 = vpop.f32.mrf.mxu0 }
 0x60b   : > { %v5027_v25 = vadd.f32 %v4963_v14, %v4807_v50  ;;  %v4898_v41 = vadd.f32 %v4897_v27, %v9050_v53  ;;  %v336_v50 = vld [vmem:[%s6247_s20 + $0xf8] sm:$0xff]  ;;  %v4975_v27 = vunpack.c.l.bf16 %v335_v52 }
 0x60d   : > { %v5091_v32 = vmax.f32 %v5027_v25, 0.0  ;;  %v5030_v42 = vadd.f32 %v4966_v36, %v4898_v41 }
 0x60f   : > { %5155 = vst [vmem:[%s9066_s23 + $0x180] sm:$0xff] %v5091_v32  ;;  %v5094_v45 = vmax.f32 %v5030_v42, 0.0  ;;  %v4978_v32 = vunpack.c.h.bf16 %v336_v50 }
 0x610   : > { %v4808_v30 = vpop.f32.mrf.mxu3 }
 0x611   : > { %5158 = vst [vmem:[%s9066_s23 + $0x198] sm:$0xff] %v5094_v45  ;;  %v4809_v7 = vadd.f32 %v4808_v30, %v9058_v47 }
 0x613   : > { %v5029_v21 = vadd.f32 %v4965_v55, %v4809_v7 }
 0x615   : > { %v5093_v0 = vmax.f32 %v5029_v21, 0.0 }
 0x617   : > { %5157 = vst [vmem:[%s9066_s23 + $0x190] sm:$0xff] %v5093_v0  ;;  %v4977_v0 = vunpack.c.l.bf16 %v336_v50 }
 0x625   : > { %v4900_v16 = vpop.f32.mrf.mxu0 }
 0x626   : > { %v4901_v22 = vadd.f32 %v4900_v16, %v9050_v53 }
 0x628   : > { %v5032_v43 = vadd.f32 %v4968_v28, %v4901_v22 }
 0x62a   : > { %v5096_v51 = vmax.f32 %v5032_v43, 0.0 }
 0x62b   : > { %v4811_v58 = vpop.f32.mrf.mxu3 }
 0x62c   : > { %5160 = vst [vmem:[%s9066_s23 + $0x1a8] sm:$0xff] %v5096_v51  ;;  %v4812_v38 = vadd.f32 %v4811_v58, %v9058_v47 }
 0x62d   : > { %v4902_v62 = vpop.f32.mrf.mxu0 }
 0x62e   : > { %v5031_v10 = vadd.f32 %v4967_v18, %v4812_v38  ;;  %v4903_v3 = vadd.f32 %v4902_v62, %v9050_v53 }
 0x630   : > { %v5095_v13 = vmax.f32 %v5031_v10, 0.0  ;;  %v5034_v48 = vadd.f32 %v4970_v26, %v4903_v3 }
 0x632   : > { %5159 = vst [vmem:[%s9066_s23 + $0x1a0] sm:$0xff] %v5095_v13  ;;  %v5098_v8 = vmax.f32 %v5034_v48, 0.0 }
 0x633   : > { %v4813_v12 = vpop.f32.mrf.mxu3 }
 0x634   : > { %5162 = vst [vmem:[%s9066_s23 + $0x1b8] sm:$0xff] %v5098_v8  ;;  %v4814_v6 = vadd.f32 %v4813_v12, %v9058_v47 }
 0x636   : > { %v5033_v59 = vadd.f32 %v4969_v24, %v4814_v6 }
 0x638   : > { %v5097_v49 = vmax.f32 %v5033_v59, 0.0 }
 0x63a   : > { %5161 = vst [vmem:[%s9066_s23 + $0x1b0] sm:$0xff] %v5097_v49 }
 0x640   : > { %v4905_v54 = vpop.f32.mrf.mxu0 }
 0x641   : > { %v4906_v4 = vadd.f32 %v4905_v54, %v9050_v53 }
 0x643   : > { %v5036_v9 = vadd.f32 %v4972_v34, %v4906_v4 }
 0x645   : > { %v5100_v1 = vmax.f32 %v5036_v9, 0.0 }
 0x646   : > { %v4816_v60 = vpop.f32.mrf.mxu3 }
 0x647   : > { %5164 = vst [vmem:[%s9066_s23 + $0x1c8] sm:$0xff] %v5100_v1  ;;  %v4817_v56 = vadd.f32 %v4816_v60, %v9058_v47 }
 0x648   : > { %v4907_v19 = vpop.f32.mrf.mxu0 }
 0x649   : > { %v5035_v44 = vadd.f32 %v4971_v17, %v4817_v56  ;;  %v4908_v29 = vadd.f32 %v4907_v19, %v9050_v53 }
 0x64b   : > { %v5099_v61 = vmax.f32 %v5035_v44, 0.0  ;;  %v5038_v20 = vadd.f32 %v4974_v23, %v4908_v29 }
 0x64d   : > { %5163 = vst [vmem:[%s9066_s23 + $0x1c0] sm:$0xff] %v5099_v61  ;;  %v5102_v33 = vmax.f32 %v5038_v20, 0.0 }
 0x64e   : > { %v4818_v63 = vpop.f32.mrf.mxu3 }
 0x64f   : > { %5166 = vst [vmem:[%s9066_s23 + $0x1d8] sm:$0xff] %v5102_v33  ;;  %v4819_v37 = vadd.f32 %v4818_v63, %v9058_v47 }
 0x651   : > { %v5037_v57 = vadd.f32 %v4973_v31, %v4819_v37 }
 0x653   : > { %v5101_v46 = vmax.f32 %v5037_v57, 0.0 }
 0x655   : > { %5165 = vst [vmem:[%s9066_s23 + $0x1d0] sm:$0xff] %v5101_v46 }
 0x67b   : > { %v4910_v40 = vpop.f32.mrf.mxu0 }
 0x67c   : > { %v4911_v14 = vadd.f32 %v4910_v40, %v9050_v53 }
 0x67e   : > { %v5040_v5 = vadd.f32 %v4976_v35, %v4911_v14 }
 0x680   : > { %v5104_v36 = vmax.f32 %v5040_v5, 0.0 }
 0x681   : > { %v4821_v25 = vpop.f32.mrf.mxu3 }
 0x682   : > { %5168 = vst [vmem:[%s9066_s23 + $0x1e8] sm:$0xff] %v5104_v36  ;;  %v4822_v41 = vadd.f32 %v4821_v25, %v9058_v47 }
 0x683   : > { %v4912_v42 = vpop.f32.mrf.mxu0 }
 0x684   : > { %v5039_v45 = vadd.f32 %v4975_v27, %v4822_v41  ;;  %v4913_v55 = vadd.f32 %v4912_v42, %v9050_v53 }
 0x686   : > { %v5103_v30 = vmax.f32 %v5039_v45, 0.0  ;;  %v5042_v7 = vadd.f32 %v4978_v32, %v4913_v55 }
 0x688   : > { %5167 = vst [vmem:[%s9066_s23 + $0x1e0] sm:$0xff] %v5103_v30  ;;  %v5106_v21 = vmax.f32 %v5042_v7, 0.0 }
 0x689   : > { %v4823_v39 = vpop.f32.mrf.mxu3 }
 0x68a   : > { %5170 = vst [vmem:[%s9066_s23 + $0x1f8] sm:$0xff] %v5106_v21  ;;  %v4824_v28 = vadd.f32 %v4823_v39, %v9058_v47 }
 0x68c   : > { %v5041_v53 = vadd.f32 %v4977_v0, %v4824_v28 }
 0x68e   : > { %v5105_v16 = vmax.f32 %v5041_v53, 0.0 }
 0x690   : > { %5169 = vst [vmem:[%s9066_s23 + $0x1f0] sm:$0xff] %v5105_v16 }
 0x691   : > { %6010 = shalt.err (!%p6007_p3)
}
 0x692   : > { %s6056_s19 = smov 256   ;;  %s6057_s23 = smov 16  }
 0x693   : > { %5795 = dma.vmem_to_hbm [thread:$0]  (%p6141_p5), %s5185_s12, 8192, %s5187_s13, %s5172_s9, %s6056_s19, %s6056_s19, %s6057_s23  }
 0x694 PF: > { %p5801_p4 = scmp.ge.s32.totalorder %s6045_s30, 2  ;;  %s5201_s20 = sand.u32 1, %s6033_s27  }
 0x695   : > { %s5202_s10 = scalar_lea.sflag [#allocation3], %s5201_s20 }
 0x696   : > { %p5798_p7 = pnand %p5801_p4, %p6145_p6 }
 0x698   : > { %p5799_p8 = pneg %p5798_p7 }
 0x69a   : > { %6028 = dma.done.wait (%p5799_p8), %s5202_s10, 8192  }
 0x69b   : > { %6030 = vsyncadd (%p5799_p8), %s5202_s10, 4294959104  ;;  %p18_p9 = scmp.ge.s32.totalorder %s6128_s11, 4   ;;  %s10072_s27 = smov %s6037_s28 }
 0x69c   : > { %s10073_s28 = smov %s6041_s29  ;;  %s10074_s29 = smov %s6139_s14 }
 0x69d   : > { %s10075_s30 = smov %s6128_s11  ;;  %20 = sbr.rel (!%p18_p9) target bundleno = 3 (0x3), region = 87 }
 0x6a2   :  { %5208 = vsyncpa [#allocation3], 1 }
 0x6a3   :  { %5210 = vsyncpa [#allocation3 + $0x1], 1 }

</bundles_post_ra>
